<compile_context>
chip_gen: v7x
topology: tpu7x:2x2x1
jax: 0.10.0
libtpu: 0.0.40
codegen_flags: <defaults>
</compile_context>

<pallas_src>
import math
import numpy as np
import jax
import jax.numpy as jnp
from jax.experimental import pallas as pl
from jax.experimental.pallas import tpu as pltpu

# Full f32 matmul precision for the pure-JAX reference; the Pallas kernel
# overrides per-dot (bf16 inputs + Precision.DEFAULT -> single MXU pass).
jax.config.update("jax_default_matmul_precision", "float32")

# ---- static model configuration (mirrors EncoderModel.__init__ args) ----
NUM_LAYERS  = 2
NUM_F_MAPS  = 64
INPUT_DIM   = 40
NUM_CLASSES = 10
ANT_EMB_DIM = 32
KERNEL_SIZE = 3
CAUSAL      = False   # non-causal branch
IN_EPS      = 1e-5    # torch InstanceNorm1d default eps

BATCH   = 2
SEQ_LEN = 64

IN_PAD  = NUM_F_MAPS  # pad input channels 40 -> 64
OUT_PAD = 128         # pad classes 10 -> 128 (lane-dense output)
assert INPUT_DIM <= IN_PAD and NUM_CLASSES <= OUT_PAD
assert KERNEL_SIZE == 3

_LOG_VALID   = float(np.log(1.0 + 1e-6))
_LOG_INVALID = float(np.log(1e-6))
_ATT_SCALE   = float(1.0 / math.sqrt(NUM_F_MAPS))

# ---- packed weight-slab layout -------------------------------------------
_W_IN = 0
def _w_conv(li, j): return 1 + 8 * li + j
def _w_q(li):  return 1 + 8 * li + 3
def _w_k(li):  return 1 + 8 * li + 4
def _w_v(li):  return 1 + 8 * li + 5
def _w_f1(li): return 1 + 8 * li + 6
def _w_f2(li): return 1 + 8 * li + 7
_NUM_W = 1 + 8 * NUM_LAYERS

def _b_conv(li): return 6 * li + 0
def _b_q(li):  return 6 * li + 1
def _b_k(li):  return 6 * li + 2
def _b_v(li):  return 6 * li + 3
def _b_f1(li): return 6 * li + 4
def _b_f2(li): return 6 * li + 5
_NUM_B = 6 * NUM_LAYERS


def _dot(a, b):
    # bf16 x bf16 -> f32 accumulation, single MXU pass.
    return jnp.dot(a, b, preferred_element_type=jnp.float32,
                   precision=jax.lax.Precision.DEFAULT)


# ----------------------------------------------------------------------------
# Kernel factory: processes `nb` samples per grid step, stacked as
# (nb*SEQ_LEN, C) on the sublane axis.
# ----------------------------------------------------------------------------
def _make_kernel(nb):
    L = SEQ_LEN
    R = nb * L
    inv_len = float(1.0 / L)

    def kernel(x_ref, tpb_ref, shift_ref, w_ref, b_ref, wout_ref, bout_ref,
               out_ref):
        # Per-row position masks built in-kernel (no captured array constants).
        ridx = jax.lax.broadcasted_iota(jnp.int32, (R, 1), 0)
        pos = (ridx % L) if nb > 1 else ridx

        # conv_in (1x1) + (time_proj(swish(0)) + conv_in bias) folded into tpb.
        h = _dot(x_ref[...], w_ref[_W_IN]) + tpb_ref[...]            # (R, F) f32

        for li in range(NUM_LAYERS):                                 # static unroll
            dil = 2 ** li
            h_b = h.astype(jnp.bfloat16)

            valid_m = (pos - dil) >= 0      # tap at offset -dil
            valid_p = (pos + dil) < L       # tap at offset +dil
            vm = valid_m.astype(jnp.float32)
            vp = valid_p.astype(jnp.float32)
            logm_m = jnp.where(valid_m, _LOG_VALID, _LOG_INVALID)
            logm_p = jnp.where(valid_p, _LOG_VALID, _LOG_INVALID)

            # One-hot shift operators (zero out-of-range / cross-sample rows);
            # products with 0/1 bf16 are exact, so hm/hp equal shifted h_b.
            S_m = shift_ref[2 * li]
            S_p = shift_ref[2 * li + 1]
            hm = _dot(S_m, h_b).astype(jnp.bfloat16)
            hp = _dot(S_p, h_b).astype(jnp.bfloat16)

            bq = b_ref[pl.ds(_b_q(li), 1)]
            bk = b_ref[pl.ds(_b_k(li), 1)]
            bv = b_ref[pl.ds(_b_v(li), 1)]

            # q on unshifted rows; k/v per tap (bias masked at invalid rows,
            # matching the zero-padded gather of the reference).
            xq   = _dot(h_b, w_ref[_w_q(li)]) + bq
            xk_c = _dot(h_b, w_ref[_w_k(li)]) + bk
            xv_c = _dot(h_b, w_ref[_w_v(li)]) + bv
            xk_m = _dot(hm,  w_ref[_w_k(li)]) + bk * vm
            xv_m = _dot(hm,  w_ref[_w_v(li)]) + bv * vm
            xk_p = _dot(hp,  w_ref[_w_k(li)]) + bk * vp
            xv_p = _dot(hp,  w_ref[_w_v(li)]) + bv * vp

            # dilated conv (K=3), zero padding handled by the shift operators
            conv = (_dot(hm,  w_ref[_w_conv(li, 0)])
                    + _dot(h_b, w_ref[_w_conv(li, 1)])
                    + _dot(hp,  w_ref[_w_conv(li, 2)])
                    + b_ref[pl.ds(_b_conv(li), 1)])

            # attention scores over the 3 taps (per row)
            s_m = jnp.sum(xq * xk_m, axis=-1, keepdims=True) * _ATT_SCALE + logm_m
            s_c = jnp.sum(xq * xk_c, axis=-1, keepdims=True) * _ATT_SCALE + _LOG_VALID
            s_p = jnp.sum(xq * xk_p, axis=-1, keepdims=True) * _ATT_SCALE + logm_p

            mx = jnp.maximum(jnp.maximum(s_m, s_c), s_p)
            e_m = jnp.exp(s_m - mx)
            e_c = jnp.exp(s_c - mx)
            e_p = jnp.exp(s_p - mx)
            inv = 1.0 / (e_m + e_c + e_p)
            # xv_* are already 0 at invalid rows -> implicit post-softmax mask
            attn = (e_m * inv) * xv_m + (e_c * inv) * xv_c + (e_p * inv) * xv_p

            s = conv + attn

            # InstanceNorm1d over time (biased variance), per sample
            if nb == 1:
                mean = jnp.mean(s, axis=0, keepdims=True)
                cen = s - mean
                var = jnp.mean(cen * cen, axis=0, keepdims=True)
                sn = cen * jax.lax.rsqrt(var + IN_EPS)
            else:
                sn = jnp.zeros_like(s)
                for b in range(nb):
                    seg = ((ridx // L) == b).astype(jnp.float32)
                    mean = jnp.sum(s * seg, axis=0, keepdims=True) * inv_len
                    cen = s - mean
                    var = jnp.sum((cen * seg) ** 2, axis=0, keepdims=True) * inv_len
                    sn = sn + seg * (cen * jax.lax.rsqrt(var + IN_EPS))

            # ffn_block: 1x1 -> ReLU -> 1x1, then residual
            f = _dot(sn.astype(jnp.bfloat16), w_ref[_w_f1(li)]) + b_ref[pl.ds(_b_f1(li), 1)]
            f = jnp.maximum(f, 0.0)
            f = _dot(f.astype(jnp.bfloat16), w_ref[_w_f2(li)]) + b_ref[pl.ds(_b_f2(li), 1)]
            h = h + f

        # conv_out (1x1), lane-dense padded to 128 classes
        y = _dot(h.astype(jnp.bfloat16), wout_ref[...]) + bout_ref[...]
        out_ref[...] = y.astype(out_ref.dtype)

    return kernel


# ----------------------------------------------------------------------------
# Wrapper glue
# ----------------------------------------------------------------------------
def compute_time_proj(ant_range, params):
    half = ANT_EMB_DIM // 2
    c = math.log(10000) / (half - 1)
    freqs = jnp.exp(jnp.arange(half, dtype=jnp.float32) * -c)
    e = ant_range.astype(jnp.float32)[:, None] * freqs[None, :]
    e = jnp.concatenate([jnp.sin(e), jnp.cos(e)], axis=1)
    e = e @ params['ant0_w'].T + params['ant0_b']
    e = e * jax.nn.sigmoid(e)                          # swish
    e = e @ params['ant1_w'].T + params['ant1_b']
    e = jnp.zeros_like(e)                              # torch.zeros_like in forward
    e = e * jax.nn.sigmoid(e)                          # swish(time_emb)
    tp = e @ params['tp_w'].T + params['tp_b']         # (N, F)
    return tp


def _pack_weights(params):
    lay = params['layers']
    mats = [jnp.pad(params['conv_in_w'].T, ((0, IN_PAD - INPUT_DIM), (0, 0)))]
    for p in lay:
        for j in range(KERNEL_SIZE):
            mats.append(p['conv_w'][:, :, j].T)        # (in, out)
        mats += [p['q_w'].T, p['k_w'].T, p['v_w'].T, p['f1_w'].T, p['f2_w'].T]
    w_slab = jnp.stack(mats).astype(jnp.bfloat16)      # (_NUM_W, F, F)

    biases = []
    for p in lay:
        biases += [p['conv_b'], p['q_b'], p['k_b'], p['v_b'], p['f1_b'], p['f2_b']]
    b_slab = jnp.stack(biases).astype(jnp.float32)     # (_NUM_B, F)

    wout = jnp.pad(params['conv_out_w'].T,
                   ((0, 0), (0, OUT_PAD - NUM_CLASSES))).astype(jnp.bfloat16)
    bout = jnp.pad(params['conv_out_b'],
                   (0, OUT_PAD - NUM_CLASSES)).reshape(1, OUT_PAD).astype(jnp.float32)
    return w_slab, b_slab, wout, bout


def _build_shift_slab(nb):
    """One-hot row-shift operators per (layer, sign): out[r] = in[r+off] when
    the shifted position stays inside the same sample, else 0."""
    L = SEQ_LEN
    R = nb * L
    rows = np.arange(R)
    pos = rows % L
    mats = []
    for li in range(NUM_LAYERS):
        d = 2 ** li
        for off in (-d, d):
            m = np.zeros((R, R), np.float32)
            ok = (pos + off >= 0) & (pos + off < L)
            m[rows[ok], rows[ok] + off] = 1.0
            mats.append(m)
    return jnp.asarray(np.stack(mats)).astype(jnp.bfloat16)   # (2*NUM_LAYERS, R, R)


def _samples_per_block(n):
    # Single-TC chips (v5e / v6e): fuse the whole batch into one grid step
    # (full 128-row MXU fill, no serial grid overhead).  Dual-TC / megacore
    # chips (v7x, v4/v5p): one sample per grid step so the "parallel" batch
    # axis shards across TensorCores.
    try:
        kind = jax.devices()[0].device_kind.lower()
    except Exception:
        kind = ""
    single_tc = any(t in kind for t in ("v5 lite", "v5e", "v6 lite", "v6e"))
    return n if single_tc else 1


def encoder_forward_pallas(x_ncl, ant_range, params):
    N, _, L = x_ncl.shape
    assert L == SEQ_LEN

    nb = _samples_per_block(N)
    while N % nb:
        nb -= 1
    R = nb * L

    # inputs: (N, Cin, L) -> (N*L, IN_PAD) bf16, channels zero-padded to 64
    x_nlc = jnp.transpose(x_ncl, (0, 2, 1)).astype(jnp.float32)
    x_pad = jnp.pad(x_nlc, ((0, 0), (0, 0), (0, IN_PAD - INPUT_DIM)))
    x_rows = x_pad.reshape(N * L, IN_PAD).astype(jnp.bfloat16)

    # time-proj bias (+ conv_in bias folded in), broadcast to (N*L, F)
    tp = compute_time_proj(ant_range, params) + params['conv_in_b'][None, :]
    tpb = jnp.broadcast_to(tp[:, None, :], (N, L, NUM_F_MAPS)).reshape(N * L, NUM_F_MAPS)
    tpb = tpb.astype(jnp.float32)

    w_slab, b_slab, wout, bout = _pack_weights(params)
    shift_slab = _build_shift_slab(nb)

    def full_spec(a):
        nd = a.ndim
        return pl.BlockSpec(a.shape, lambda b, _nd=nd: (0,) * _nd)

    out = pl.pallas_call(
        _make_kernel(nb),
        out_shape=jax.ShapeDtypeStruct((N * L, OUT_PAD), jnp.float32),
        grid=(N // nb,),
        in_specs=[
            pl.BlockSpec((R, IN_PAD), lambda b: (b, 0)),
            pl.BlockSpec((R, NUM_F_MAPS), lambda b: (b, 0)),
            full_spec(shift_slab),
            full_spec(w_slab),
            full_spec(b_slab),
            full_spec(wout),
            full_spec(bout),
        ],
        out_specs=pl.BlockSpec((R, OUT_PAD), lambda b: (b, 0)),
        compiler_params=pltpu.CompilerParams(dimension_semantics=("parallel",)),
    )(x_rows, tpb, shift_slab, w_slab, b_slab, wout, bout)

    out = out.reshape(N, L, OUT_PAD)[:, :, :NUM_CLASSES]
    return jnp.transpose(out, (0, 2, 1))               # back to NCL like PyTorch
    # TODO(synk): get_features=True branch (feature collection / sigmoid taps) not implemented.


# ----------------------------------------------------------------------------
# Pure-JAX reference mirroring the PyTorch forward (correctness check).
# ----------------------------------------------------------------------------
def _ref_attention(x, p, dil):
    N, C, L = x.shape
    pad = (KERNEL_SIZE // 2) * dil
    attn_indices = jnp.arange(L)[:, None] + jnp.arange(KERNEL_SIZE)[None, :] * dil
    flat = attn_indices.reshape(-1)
    xq = jnp.einsum('dc,ncl->ndl', p['q_w'], x) + p['q_b'][None, :, None]
    xk = jnp.einsum('dc,ncl->ndl', p['k_w'], x) + p['k_b'][None, :, None]
    xv = jnp.einsum('dc,ncl->ndl', p['v_w'], x) + p['v_b'][None, :, None]
    xk_p = jnp.pad(xk, ((0, 0), (0, 0), (pad, pad)))
    xv_p = jnp.pad(xv, ((0, 0), (0, 0), (pad, pad)))
    xk_g = xk_p[:, :, flat].reshape(N, C, L, KERNEL_SIZE)
    xv_g = xv_p[:, :, flat].reshape(N, C, L, KERNEL_SIZE)
    att = jnp.einsum('ncl,nclk->nlk', xq, xk_g)
    mask = jnp.logical_and(attn_indices >= pad, attn_indices < L + pad).astype(jnp.float32)
    att = att / math.sqrt(NUM_F_MAPS)
    att = att + jnp.log(mask + 1e-6)
    att = jax.nn.softmax(att, axis=2)
    att = att * mask
    return jnp.einsum('nlk,nclk->ncl', att, xv_g)


def reference_forward(x_ncl, ant_range, params):
    tp = compute_time_proj(ant_range, params)
    h = jnp.einsum('fc,ncl->nfl', params['conv_in_w'], x_ncl) + params['conv_in_b'][None, :, None]
    h = h + tp[:, :, None]
    for li in range(NUM_LAYERS):
        dil = 2 ** li
        pad = (KERNEL_SIZE // 2) * dil
        p = params['layers'][li]
        conv = jax.lax.conv_general_dilated(
            h, p['conv_w'], window_strides=(1,), padding=[(pad, pad)],
            rhs_dilation=(dil,), dimension_numbers=('NCH', 'OIH', 'NCH'))
        conv = conv + p['conv_b'][None, :, None]
        attn = _ref_attention(h, p, dil)
        s = conv + attn
        mean = s.mean(axis=2, keepdims=True)
        var = ((s - mean) ** 2).mean(axis=2, keepdims=True)
        sn = (s - mean) / jnp.sqrt(var + IN_EPS)
        f = jnp.einsum('dc,ncl->ndl', p['f1_w'], sn) + p['f1_b'][None, :, None]
        f = jnp.maximum(f, 0.0)
        f = jnp.einsum('oc,ncl->nol', p['f2_w'], f) + p['f2_b'][None, :, None]
        h = h + f
    out = jnp.einsum('oc,ncl->nol', params['conv_out_w'], h) + params['conv_out_b'][None, :, None]
    return out


# ----------------------------------------------------------------------------
# Deterministic parameter init (torch-style shapes).
# ----------------------------------------------------------------------------
def init_params(key):
    ks = iter(jax.random.split(key, 40))

    def w(shape, scale=0.05):
        return scale * jax.random.normal(next(ks), shape, dtype=jnp.float32)

    params = {
        'ant0_w': w((ANT_EMB_DIM, ANT_EMB_DIM)), 'ant0_b': w((ANT_EMB_DIM,)),
        'ant1_w': w((ANT_EMB_DIM, ANT_EMB_DIM)), 'ant1_b': w((ANT_EMB_DIM,)),
        'tp_w': w((NUM_F_MAPS, ANT_EMB_DIM)), 'tp_b': w((NUM_F_MAPS,)),
        'conv_in_w': w((NUM_F_MAPS, INPUT_DIM)), 'conv_in_b': w((NUM_F_MAPS,)),
        'conv_out_w': w((NUM_CLASSES, NUM_F_MAPS)), 'conv_out_b': w((NUM_CLASSES,)),
        'layers': [],
    }
    for _ in range(NUM_LAYERS):
        params['layers'].append({
            'conv_w': w((NUM_F_MAPS, NUM_F_MAPS, KERNEL_SIZE)), 'conv_b': w((NUM_F_MAPS,)),
            'q_w': w((NUM_F_MAPS, NUM_F_MAPS)), 'q_b': w((NUM_F_MAPS,)),
            'k_w': w((NUM_F_MAPS, NUM_F_MAPS)), 'k_b': w((NUM_F_MAPS,)),
            'v_w': w((NUM_F_MAPS, NUM_F_MAPS)), 'v_b': w((NUM_F_MAPS,)),
            'f1_w': w((NUM_F_MAPS, NUM_F_MAPS)), 'f1_b': w((NUM_F_MAPS,)),
            'f2_w': w((NUM_F_MAPS, NUM_F_MAPS)), 'f2_b': w((NUM_F_MAPS,)),
        })
    return params


if __name__ == "__main__":
    key = jax.random.PRNGKey(0)
    kp, kx, kr = jax.random.split(key, 3)
    params = init_params(kp)

    x = jax.random.normal(kx, (BATCH, INPUT_DIM, SEQ_LEN), dtype=jnp.float32)  # NCL
    ant_range = jax.random.randint(kr, (BATCH,), 0, 100).astype(jnp.float32)

    out = jax.block_until_ready(encoder_forward_pallas(x, ant_range, params))
    ref = jax.block_until_ready(reference_forward(x, ant_range, params))

    assert out.shape == (BATCH, NUM_CLASSES, SEQ_LEN)
    np.testing.assert_allclose(np.asarray(out), np.asarray(ref), rtol=2e-2, atol=2e-2)
    print("KERNEL_OK")
</pallas_src>

<mosaic_0001>
module attributes {stable_mosaic.version = 11 : i64} {
  func.func @kernel(%arg0: i32, %arg1: memref<64x64xbf16, #tpu.memory_space<vmem>>, %arg2: memref<64x64xf32, #tpu.memory_space<vmem>>, %arg3: memref<4x64x64xbf16, #tpu.memory_space<vmem>>, %arg4: memref<17x64x64xbf16, #tpu.memory_space<vmem>>, %arg5: memref<12x64xf32, #tpu.memory_space<vmem>>, %arg6: memref<64x128xbf16, #tpu.memory_space<vmem>>, %arg7: memref<1x128xf32, #tpu.memory_space<vmem>>, %arg8: memref<64x128xf32, #tpu.memory_space<vmem>>) attributes {dimension_semantics = [#tpu.dimension_semantics<parallel>], iteration_bounds = array<i64: 2>, scalar_prefetch = 0 : i64, scratch_operands = 0 : i64, tpu.core_type = #tpu.core_type<tc>, window_params = [{transform_indices = @transform_0, window_bounds = array<i64: 64, 64>}, {transform_indices = @transform_1, window_bounds = array<i64: 64, 64>}, {pipeline_mode = #tpu.pipeline_mode<synchronous>, transform_indices = @transform_2, window_bounds = array<i64: 4, 64, 64>}, {pipeline_mode = #tpu.pipeline_mode<synchronous>, transform_indices = @transform_3, window_bounds = array<i64: 17, 64, 64>}, {pipeline_mode = #tpu.pipeline_mode<synchronous>, transform_indices = @transform_4, window_bounds = array<i64: 12, 64>}, {pipeline_mode = #tpu.pipeline_mode<synchronous>, transform_indices = @transform_5, window_bounds = array<i64: 64, 128>}, {pipeline_mode = #tpu.pipeline_mode<synchronous>, transform_indices = @transform_6, window_bounds = array<i64: 1, 128>}, {transform_indices = @transform_7, window_bounds = array<i64: 64, 128>}]} {
    %0 = tpu.iota {dimensions = array<i32: 0>} : vector<64x1xi32>
    %c0 = arith.constant 0 : index
    %c0_0 = arith.constant 0 : index
    %1 = vector.load %arg1[%c0, %c0_0] : memref<64x64xbf16, #tpu.memory_space<vmem>>, vector<64x64xbf16>
    %c0_1 = arith.constant 0 : index
    %c0_2 = arith.constant 0 : index
    %c0_3 = arith.constant 0 : index
    %2 = vector.load %arg4[%c0_1, %c0_2, %c0_3] : memref<17x64x64xbf16, #tpu.memory_space<vmem>>, vector<1x64x64xbf16>
    %3 = vector.shape_cast %2 : vector<1x64x64xbf16> to vector<64x64xbf16>
    %cst = arith.constant dense<0.000000e+00> : vector<64x64xf32>
    %4 = tpu.matmul %1, %3, %cst {dimension_numbers = #tpu.dot_dimension_numbers<[1], [0], [0], [1], [0, 0, 1, 1], [], []>} : vector<64x64xbf16>, vector<64x64xbf16>, vector<64x64xf32> -> vector<64x64xf32>
    %c0_4 = arith.constant 0 : index
    %c0_5 = arith.constant 0 : index
    %5 = vector.load %arg2[%c0_4, %c0_5] : memref<64x64xf32, #tpu.memory_space<vmem>>, vector<64x64xf32>
    %6 = arith.addf %4, %5 : vector<64x64xf32>
    %7 = arith.truncf %6 : vector<64x64xf32> to vector<64x64xbf16>
    %c1_i32 = arith.constant 1 : i32
    %8 = vector.broadcast %c1_i32 : i32 to vector<64x1xi32>
    %9 = arith.subi %0, %8 : vector<64x1xi32>
    %c0_i32 = arith.constant 0 : i32
    %10 = vector.broadcast %c0_i32 : i32 to vector<64x1xi32>
    %11 = arith.cmpi sge, %9, %10 : vector<64x1xi32>
    %c1_i32_6 = arith.constant 1 : i32
    %12 = vector.broadcast %c1_i32_6 : i32 to vector<64x1xi32>
    %13 = arith.addi %0, %12 : vector<64x1xi32>
    %c64_i32 = arith.constant 64 : i32
    %14 = vector.broadcast %c64_i32 : i32 to vector<64x1xi32>
    %15 = arith.cmpi slt, %13, %14 : vector<64x1xi32>
    %16 = arith.extui %11 : vector<64x1xi1> to vector<64x1xi32>
    %17 = arith.sitofp %16 : vector<64x1xi32> to vector<64x1xf32>
    %18 = arith.extui %15 : vector<64x1xi1> to vector<64x1xi32>
    %19 = arith.sitofp %18 : vector<64x1xi32> to vector<64x1xf32>
    %cst_7 = arith.constant 9.99999543E-7 : f32
    %cst_8 = arith.constant -13.8155107 : f32
    %20 = vector.broadcast %cst_7 : f32 to vector<64x1xf32>
    %21 = vector.broadcast %cst_8 : f32 to vector<64x1xf32>
    %22 = arith.select %11, %20, %21 : vector<64x1xi1>, vector<64x1xf32>
    %cst_9 = arith.constant 9.99999543E-7 : f32
    %cst_10 = arith.constant -13.8155107 : f32
    %23 = vector.broadcast %cst_9 : f32 to vector<64x1xf32>
    %24 = vector.broadcast %cst_10 : f32 to vector<64x1xf32>
    %25 = arith.select %15, %23, %24 : vector<64x1xi1>, vector<64x1xf32>
    %c0_11 = arith.constant 0 : index
    %c0_12 = arith.constant 0 : index
    %c0_13 = arith.constant 0 : index
    %26 = vector.load %arg3[%c0_11, %c0_12, %c0_13] : memref<4x64x64xbf16, #tpu.memory_space<vmem>>, vector<1x64x64xbf16>
    %27 = vector.shape_cast %26 : vector<1x64x64xbf16> to vector<64x64xbf16>
    %c1 = arith.constant 1 : index
    %c0_14 = arith.constant 0 : index
    %c0_15 = arith.constant 0 : index
    %28 = vector.load %arg3[%c1, %c0_14, %c0_15] : memref<4x64x64xbf16, #tpu.memory_space<vmem>>, vector<1x64x64xbf16>
    %29 = vector.shape_cast %28 : vector<1x64x64xbf16> to vector<64x64xbf16>
    %cst_16 = arith.constant dense<0.000000e+00> : vector<64x64xf32>
    %30 = tpu.matmul %27, %7, %cst_16 {dimension_numbers = #tpu.dot_dimension_numbers<[1], [0], [0], [1], [0, 0, 1, 1], [], []>} : vector<64x64xbf16>, vector<64x64xbf16>, vector<64x64xf32> -> vector<64x64xf32>
    %31 = arith.truncf %30 : vector<64x64xf32> to vector<64x64xbf16>
    %cst_17 = arith.constant dense<0.000000e+00> : vector<64x64xf32>
    %32 = tpu.matmul %29, %7, %cst_17 {dimension_numbers = #tpu.dot_dimension_numbers<[1], [0], [0], [1], [0, 0, 1, 1], [], []>} : vector<64x64xbf16>, vector<64x64xbf16>, vector<64x64xf32> -> vector<64x64xf32>
    %33 = arith.truncf %32 : vector<64x64xf32> to vector<64x64xbf16>
    %c1_18 = arith.constant 1 : index
    %c0_19 = arith.constant 0 : index
    %34 = vector.load %arg5[%c1_18, %c0_19] : memref<12x64xf32, #tpu.memory_space<vmem>>, vector<1x64xf32>
    %c2 = arith.constant 2 : index
    %c0_20 = arith.constant 0 : index
    %35 = vector.load %arg5[%c2, %c0_20] : memref<12x64xf32, #tpu.memory_space<vmem>>, vector<1x64xf32>
    %c3 = arith.constant 3 : index
    %c0_21 = arith.constant 0 : index
    %36 = vector.load %arg5[%c3, %c0_21] : memref<12x64xf32, #tpu.memory_space<vmem>>, vector<1x64xf32>
    %c4 = arith.constant 4 : index
    %c0_22 = arith.constant 0 : index
    %c0_23 = arith.constant 0 : index
    %37 = vector.load %arg4[%c4, %c0_22, %c0_23] : memref<17x64x64xbf16, #tpu.memory_space<vmem>>, vector<1x64x64xbf16>
    %38 = vector.shape_cast %37 : vector<1x64x64xbf16> to vector<64x64xbf16>
    %cst_24 = arith.constant dense<0.000000e+00> : vector<64x64xf32>
    %39 = tpu.matmul %7, %38, %cst_24 {dimension_numbers = #tpu.dot_dimension_numbers<[1], [0], [0], [1], [0, 0, 1, 1], [], []>} : vector<64x64xbf16>, vector<64x64xbf16>, vector<64x64xf32> -> vector<64x64xf32>
    %40 = vector.broadcast %34 : vector<1x64xf32> to vector<64x64xf32>
    %41 = arith.addf %39, %40 : vector<64x64xf32>
    %c5 = arith.constant 5 : index
    %c0_25 = arith.constant 0 : index
    %c0_26 = arith.constant 0 : index
    %42 = vector.load %arg4[%c5, %c0_25, %c0_26] : memref<17x64x64xbf16, #tpu.memory_space<vmem>>, vector<1x64x64xbf16>
    %43 = vector.shape_cast %42 : vector<1x64x64xbf16> to vector<64x64xbf16>
    %cst_27 = arith.constant dense<0.000000e+00> : vector<64x64xf32>
    %44 = tpu.matmul %7, %43, %cst_27 {dimension_numbers = #tpu.dot_dimension_numbers<[1], [0], [0], [1], [0, 0, 1, 1], [], []>} : vector<64x64xbf16>, vector<64x64xbf16>, vector<64x64xf32> -> vector<64x64xf32>
    %45 = vector.broadcast %35 : vector<1x64xf32> to vector<64x64xf32>
    %46 = arith.addf %44, %45 : vector<64x64xf32>
    %c6 = arith.constant 6 : index
    %c0_28 = arith.constant 0 : index
    %c0_29 = arith.constant 0 : index
    %47 = vector.load %arg4[%c6, %c0_28, %c0_29] : memref<17x64x64xbf16, #tpu.memory_space<vmem>>, vector<1x64x64xbf16>
    %48 = vector.shape_cast %47 : vector<1x64x64xbf16> to vector<64x64xbf16>
    %cst_30 = arith.constant dense<0.000000e+00> : vector<64x64xf32>
    %49 = tpu.matmul %7, %48, %cst_30 {dimension_numbers = #tpu.dot_dimension_numbers<[1], [0], [0], [1], [0, 0, 1, 1], [], []>} : vector<64x64xbf16>, vector<64x64xbf16>, vector<64x64xf32> -> vector<64x64xf32>
    %50 = vector.broadcast %36 : vector<1x64xf32> to vector<64x64xf32>
    %51 = arith.addf %49, %50 : vector<64x64xf32>
    %c5_31 = arith.constant 5 : index
    %c0_32 = arith.constant 0 : index
    %c0_33 = arith.constant 0 : index
    %52 = vector.load %arg4[%c5_31, %c0_32, %c0_33] : memref<17x64x64xbf16, #tpu.memory_space<vmem>>, vector<1x64x64xbf16>
    %53 = vector.shape_cast %52 : vector<1x64x64xbf16> to vector<64x64xbf16>
    %cst_34 = arith.constant dense<0.000000e+00> : vector<64x64xf32>
    %54 = tpu.matmul %31, %53, %cst_34 {dimension_numbers = #tpu.dot_dimension_numbers<[1], [0], [0], [1], [0, 0, 1, 1], [], []>} : vector<64x64xbf16>, vector<64x64xbf16>, vector<64x64xf32> -> vector<64x64xf32>
    %55 = vector.broadcast %35 : vector<1x64xf32> to vector<64x64xf32>
    %56 = vector.broadcast %17 : vector<64x1xf32> to vector<64x64xf32>
    %57 = arith.mulf %55, %56 : vector<64x64xf32>
    %58 = arith.addf %54, %57 : vector<64x64xf32>
    %c6_35 = arith.constant 6 : index
    %c0_36 = arith.constant 0 : index
    %c0_37 = arith.constant 0 : index
    %59 = vector.load %arg4[%c6_35, %c0_36, %c0_37] : memref<17x64x64xbf16, #tpu.memory_space<vmem>>, vector<1x64x64xbf16>
    %60 = vector.shape_cast %59 : vector<1x64x64xbf16> to vector<64x64xbf16>
    %cst_38 = arith.constant dense<0.000000e+00> : vector<64x64xf32>
    %61 = tpu.matmul %31, %60, %cst_38 {dimension_numbers = #tpu.dot_dimension_numbers<[1], [0], [0], [1], [0, 0, 1, 1], [], []>} : vector<64x64xbf16>, vector<64x64xbf16>, vector<64x64xf32> -> vector<64x64xf32>
    %62 = vector.broadcast %36 : vector<1x64xf32> to vector<64x64xf32>
    %63 = vector.broadcast %17 : vector<64x1xf32> to vector<64x64xf32>
    %64 = arith.mulf %62, %63 : vector<64x64xf32>
    %65 = arith.addf %61, %64 : vector<64x64xf32>
    %c5_39 = arith.constant 5 : index
    %c0_40 = arith.constant 0 : index
    %c0_41 = arith.constant 0 : index
    %66 = vector.load %arg4[%c5_39, %c0_40, %c0_41] : memref<17x64x64xbf16, #tpu.memory_space<vmem>>, vector<1x64x64xbf16>
    %67 = vector.shape_cast %66 : vector<1x64x64xbf16> to vector<64x64xbf16>
    %cst_42 = arith.constant dense<0.000000e+00> : vector<64x64xf32>
    %68 = tpu.matmul %33, %67, %cst_42 {dimension_numbers = #tpu.dot_dimension_numbers<[1], [0], [0], [1], [0, 0, 1, 1], [], []>} : vector<64x64xbf16>, vector<64x64xbf16>, vector<64x64xf32> -> vector<64x64xf32>
    %69 = vector.broadcast %35 : vector<1x64xf32> to vector<64x64xf32>
    %70 = vector.broadcast %19 : vector<64x1xf32> to vector<64x64xf32>
    %71 = arith.mulf %69, %70 : vector<64x64xf32>
    %72 = arith.addf %68, %71 : vector<64x64xf32>
    %c6_43 = arith.constant 6 : index
    %c0_44 = arith.constant 0 : index
    %c0_45 = arith.constant 0 : index
    %73 = vector.load %arg4[%c6_43, %c0_44, %c0_45] : memref<17x64x64xbf16, #tpu.memory_space<vmem>>, vector<1x64x64xbf16>
    %74 = vector.shape_cast %73 : vector<1x64x64xbf16> to vector<64x64xbf16>
    %cst_46 = arith.constant dense<0.000000e+00> : vector<64x64xf32>
    %75 = tpu.matmul %33, %74, %cst_46 {dimension_numbers = #tpu.dot_dimension_numbers<[1], [0], [0], [1], [0, 0, 1, 1], [], []>} : vector<64x64xbf16>, vector<64x64xbf16>, vector<64x64xf32> -> vector<64x64xf32>
    %76 = vector.broadcast %36 : vector<1x64xf32> to vector<64x64xf32>
    %77 = vector.broadcast %19 : vector<64x1xf32> to vector<64x64xf32>
    %78 = arith.mulf %76, %77 : vector<64x64xf32>
    %79 = arith.addf %75, %78 : vector<64x64xf32>
    %c1_47 = arith.constant 1 : index
    %c0_48 = arith.constant 0 : index
    %c0_49 = arith.constant 0 : index
    %80 = vector.load %arg4[%c1_47, %c0_48, %c0_49] : memref<17x64x64xbf16, #tpu.memory_space<vmem>>, vector<1x64x64xbf16>
    %81 = vector.shape_cast %80 : vector<1x64x64xbf16> to vector<64x64xbf16>
    %cst_50 = arith.constant dense<0.000000e+00> : vector<64x64xf32>
    %82 = tpu.matmul %31, %81, %cst_50 {dimension_numbers = #tpu.dot_dimension_numbers<[1], [0], [0], [1], [0, 0, 1, 1], [], []>} : vector<64x64xbf16>, vector<64x64xbf16>, vector<64x64xf32> -> vector<64x64xf32>
    %c2_51 = arith.constant 2 : index
    %c0_52 = arith.constant 0 : index
    %c0_53 = arith.constant 0 : index
    %83 = vector.load %arg4[%c2_51, %c0_52, %c0_53] : memref<17x64x64xbf16, #tpu.memory_space<vmem>>, vector<1x64x64xbf16>
    %84 = vector.shape_cast %83 : vector<1x64x64xbf16> to vector<64x64xbf16>
    %cst_54 = arith.constant dense<0.000000e+00> : vector<64x64xf32>
    %85 = tpu.matmul %7, %84, %cst_54 {dimension_numbers = #tpu.dot_dimension_numbers<[1], [0], [0], [1], [0, 0, 1, 1], [], []>} : vector<64x64xbf16>, vector<64x64xbf16>, vector<64x64xf32> -> vector<64x64xf32>
    %86 = arith.addf %82, %85 : vector<64x64xf32>
    %c3_55 = arith.constant 3 : index
    %c0_56 = arith.constant 0 : index
    %c0_57 = arith.constant 0 : index
    %87 = vector.load %arg4[%c3_55, %c0_56, %c0_57] : memref<17x64x64xbf16, #tpu.memory_space<vmem>>, vector<1x64x64xbf16>
    %88 = vector.shape_cast %87 : vector<1x64x64xbf16> to vector<64x64xbf16>
    %cst_58 = arith.constant dense<0.000000e+00> : vector<64x64xf32>
    %89 = tpu.matmul %33, %88, %cst_58 {dimension_numbers = #tpu.dot_dimension_numbers<[1], [0], [0], [1], [0, 0, 1, 1], [], []>} : vector<64x64xbf16>, vector<64x64xbf16>, vector<64x64xf32> -> vector<64x64xf32>
    %90 = arith.addf %86, %89 : vector<64x64xf32>
    %c0_59 = arith.constant 0 : index
    %c0_60 = arith.constant 0 : index
    %91 = vector.load %arg5[%c0_59, %c0_60] : memref<12x64xf32, #tpu.memory_space<vmem>>, vector<1x64xf32>
    %92 = vector.broadcast %91 : vector<1x64xf32> to vector<64x64xf32>
    %93 = arith.addf %90, %92 : vector<64x64xf32>
    %94 = arith.mulf %41, %58 : vector<64x64xf32>
    %cst_61 = arith.constant dense<0.000000e+00> : vector<64xf32>
    %95 = vector.multi_reduction <add>, %94, %cst_61 [1] : vector<64x64xf32> to vector<64xf32>
    %96 = vector.shape_cast %95 : vector<64xf32> to vector<64x1xf32>
    %cst_62 = arith.constant 1.250000e-01 : f32
    %97 = vector.broadcast %cst_62 : f32 to vector<64x1xf32>
    %98 = arith.mulf %96, %97 : vector<64x1xf32>
    %99 = arith.addf %98, %22 : vector<64x1xf32>
    %100 = arith.mulf %41, %46 : vector<64x64xf32>
    %cst_63 = arith.constant dense<0.000000e+00> : vector<64xf32>
    %101 = vector.multi_reduction <add>, %100, %cst_63 [1] : vector<64x64xf32> to vector<64xf32>
    %102 = vector.shape_cast %101 : vector<64xf32> to vector<64x1xf32>
    %cst_64 = arith.constant 1.250000e-01 : f32
    %103 = vector.broadcast %cst_64 : f32 to vector<64x1xf32>
    %104 = arith.mulf %102, %103 : vector<64x1xf32>
    %cst_65 = arith.constant 9.99999543E-7 : f32
    %105 = vector.broadcast %cst_65 : f32 to vector<64x1xf32>
    %106 = arith.addf %104, %105 : vector<64x1xf32>
    %107 = arith.mulf %41, %72 : vector<64x64xf32>
    %cst_66 = arith.constant dense<0.000000e+00> : vector<64xf32>
    %108 = vector.multi_reduction <add>, %107, %cst_66 [1] : vector<64x64xf32> to vector<64xf32>
    %109 = vector.shape_cast %108 : vector<64xf32> to vector<64x1xf32>
    %cst_67 = arith.constant 1.250000e-01 : f32
    %110 = vector.broadcast %cst_67 : f32 to vector<64x1xf32>
    %111 = arith.mulf %109, %110 : vector<64x1xf32>
    %112 = arith.addf %111, %25 : vector<64x1xf32>
    %113 = arith.maximumf %99, %106 : vector<64x1xf32>
    %114 = arith.maximumf %113, %112 : vector<64x1xf32>
    %115 = arith.subf %99, %114 : vector<64x1xf32>
    %116 = math.exp %115 : vector<64x1xf32>
    %117 = arith.subf %106, %114 : vector<64x1xf32>
    %118 = math.exp %117 : vector<64x1xf32>
    %119 = arith.subf %112, %114 : vector<64x1xf32>
    %120 = math.exp %119 : vector<64x1xf32>
    %121 = arith.addf %116, %118 : vector<64x1xf32>
    %122 = arith.addf %121, %120 : vector<64x1xf32>
    %cst_68 = arith.constant 1.000000e+00 : f32
    %123 = vector.broadcast %cst_68 : f32 to vector<64x1xf32>
    %124 = arith.divf %123, %122 : vector<64x1xf32>
    %125 = arith.mulf %116, %124 : vector<64x1xf32>
    %126 = vector.broadcast %125 : vector<64x1xf32> to vector<64x64xf32>
    %127 = arith.mulf %126, %65 : vector<64x64xf32>
    %128 = arith.mulf %118, %124 : vector<64x1xf32>
    %129 = vector.broadcast %128 : vector<64x1xf32> to vector<64x64xf32>
    %130 = arith.mulf %129, %51 : vector<64x64xf32>
    %131 = arith.addf %127, %130 : vector<64x64xf32>
    %132 = arith.mulf %120, %124 : vector<64x1xf32>
    %133 = vector.broadcast %132 : vector<64x1xf32> to vector<64x64xf32>
    %134 = arith.mulf %133, %79 : vector<64x64xf32>
    %135 = arith.addf %131, %134 : vector<64x64xf32>
    %136 = arith.addf %93, %135 : vector<64x64xf32>
    %cst_69 = arith.constant dense<0.000000e+00> : vector<64xf32>
    %137 = vector.multi_reduction <add>, %136, %cst_69 [0] : vector<64x64xf32> to vector<64xf32>
    %138 = vector.shape_cast %137 : vector<64xf32> to vector<1x64xf32>
    %cst_70 = arith.constant 6.400000e+01 : f32
    %139 = vector.broadcast %cst_70 : f32 to vector<1x64xf32>
    %140 = arith.divf %138, %139 : vector<1x64xf32>
    %141 = vector.broadcast %140 : vector<1x64xf32> to vector<64x64xf32>
    %142 = arith.subf %136, %141 : vector<64x64xf32>
    %143 = arith.mulf %142, %142 : vector<64x64xf32>
    %cst_71 = arith.constant dense<0.000000e+00> : vector<64xf32>
    %144 = vector.multi_reduction <add>, %143, %cst_71 [0] : vector<64x64xf32> to vector<64xf32>
    %145 = vector.shape_cast %144 : vector<64xf32> to vector<1x64xf32>
    %cst_72 = arith.constant 6.400000e+01 : f32
    %146 = vector.broadcast %cst_72 : f32 to vector<1x64xf32>
    %147 = arith.divf %145, %146 : vector<1x64xf32>
    %cst_73 = arith.constant 9.99999974E-6 : f32
    %148 = vector.broadcast %cst_73 : f32 to vector<1x64xf32>
    %149 = arith.addf %147, %148 : vector<1x64xf32>
    %150 = math.rsqrt %149 : vector<1x64xf32>
    %151 = vector.broadcast %150 : vector<1x64xf32> to vector<64x64xf32>
    %152 = arith.mulf %142, %151 : vector<64x64xf32>
    %153 = arith.truncf %152 : vector<64x64xf32> to vector<64x64xbf16>
    %c7 = arith.constant 7 : index
    %c0_74 = arith.constant 0 : index
    %c0_75 = arith.constant 0 : index
    %154 = vector.load %arg4[%c7, %c0_74, %c0_75] : memref<17x64x64xbf16, #tpu.memory_space<vmem>>, vector<1x64x64xbf16>
    %155 = vector.shape_cast %154 : vector<1x64x64xbf16> to vector<64x64xbf16>
    %cst_76 = arith.constant dense<0.000000e+00> : vector<64x64xf32>
    %156 = tpu.matmul %153, %155, %cst_76 {dimension_numbers = #tpu.dot_dimension_numbers<[1], [0], [0], [1], [0, 0, 1, 1], [], []>} : vector<64x64xbf16>, vector<64x64xbf16>, vector<64x64xf32> -> vector<64x64xf32>
    %c4_77 = arith.constant 4 : index
    %c0_78 = arith.constant 0 : index
    %157 = vector.load %arg5[%c4_77, %c0_78] : memref<12x64xf32, #tpu.memory_space<vmem>>, vector<1x64xf32>
    %158 = vector.broadcast %157 : vector<1x64xf32> to vector<64x64xf32>
    %159 = arith.addf %156, %158 : vector<64x64xf32>
    %cst_79 = arith.constant 0.000000e+00 : f32
    %160 = vector.broadcast %cst_79 : f32 to vector<64x64xf32>
    %161 = arith.maximumf %159, %160 : vector<64x64xf32>
    %162 = arith.truncf %161 : vector<64x64xf32> to vector<64x64xbf16>
    %c8 = arith.constant 8 : index
    %c0_80 = arith.constant 0 : index
    %c0_81 = arith.constant 0 : index
    %163 = vector.load %arg4[%c8, %c0_80, %c0_81] : memref<17x64x64xbf16, #tpu.memory_space<vmem>>, vector<1x64x64xbf16>
    %164 = vector.shape_cast %163 : vector<1x64x64xbf16> to vector<64x64xbf16>
    %cst_82 = arith.constant dense<0.000000e+00> : vector<64x64xf32>
    %165 = tpu.matmul %162, %164, %cst_82 {dimension_numbers = #tpu.dot_dimension_numbers<[1], [0], [0], [1], [0, 0, 1, 1], [], []>} : vector<64x64xbf16>, vector<64x64xbf16>, vector<64x64xf32> -> vector<64x64xf32>
    %c5_83 = arith.constant 5 : index
    %c0_84 = arith.constant 0 : index
    %166 = vector.load %arg5[%c5_83, %c0_84] : memref<12x64xf32, #tpu.memory_space<vmem>>, vector<1x64xf32>
    %167 = vector.broadcast %166 : vector<1x64xf32> to vector<64x64xf32>
    %168 = arith.addf %165, %167 : vector<64x64xf32>
    %169 = arith.addf %6, %168 : vector<64x64xf32>
    %170 = arith.truncf %169 : vector<64x64xf32> to vector<64x64xbf16>
    %c2_i32 = arith.constant 2 : i32
    %171 = vector.broadcast %c2_i32 : i32 to vector<64x1xi32>
    %172 = arith.subi %0, %171 : vector<64x1xi32>
    %c0_i32_85 = arith.constant 0 : i32
    %173 = vector.broadcast %c0_i32_85 : i32 to vector<64x1xi32>
    %174 = arith.cmpi sge, %172, %173 : vector<64x1xi32>
    %c2_i32_86 = arith.constant 2 : i32
    %175 = vector.broadcast %c2_i32_86 : i32 to vector<64x1xi32>
    %176 = arith.addi %0, %175 : vector<64x1xi32>
    %c64_i32_87 = arith.constant 64 : i32
    %177 = vector.broadcast %c64_i32_87 : i32 to vector<64x1xi32>
    %178 = arith.cmpi slt, %176, %177 : vector<64x1xi32>
    %179 = arith.extui %174 : vector<64x1xi1> to vector<64x1xi32>
    %180 = arith.sitofp %179 : vector<64x1xi32> to vector<64x1xf32>
    %181 = arith.extui %178 : vector<64x1xi1> to vector<64x1xi32>
    %182 = arith.sitofp %181 : vector<64x1xi32> to vector<64x1xf32>
    %cst_88 = arith.constant 9.99999543E-7 : f32
    %cst_89 = arith.constant -13.8155107 : f32
    %183 = vector.broadcast %cst_88 : f32 to vector<64x1xf32>
    %184 = vector.broadcast %cst_89 : f32 to vector<64x1xf32>
    %185 = arith.select %174, %183, %184 : vector<64x1xi1>, vector<64x1xf32>
    %cst_90 = arith.constant 9.99999543E-7 : f32
    %cst_91 = arith.constant -13.8155107 : f32
    %186 = vector.broadcast %cst_90 : f32 to vector<64x1xf32>
    %187 = vector.broadcast %cst_91 : f32 to vector<64x1xf32>
    %188 = arith.select %178, %186, %187 : vector<64x1xi1>, vector<64x1xf32>
    %c2_92 = arith.constant 2 : index
    %c0_93 = arith.constant 0 : index
    %c0_94 = arith.constant 0 : index
    %189 = vector.load %arg3[%c2_92, %c0_93, %c0_94] : memref<4x64x64xbf16, #tpu.memory_space<vmem>>, vector<1x64x64xbf16>
    %190 = vector.shape_cast %189 : vector<1x64x64xbf16> to vector<64x64xbf16>
    %c3_95 = arith.constant 3 : index
    %c0_96 = arith.constant 0 : index
    %c0_97 = arith.constant 0 : index
    %191 = vector.load %arg3[%c3_95, %c0_96, %c0_97] : memref<4x64x64xbf16, #tpu.memory_space<vmem>>, vector<1x64x64xbf16>
    %192 = vector.shape_cast %191 : vector<1x64x64xbf16> to vector<64x64xbf16>
    %cst_98 = arith.constant dense<0.000000e+00> : vector<64x64xf32>
    %193 = tpu.matmul %190, %170, %cst_98 {dimension_numbers = #tpu.dot_dimension_numbers<[1], [0], [0], [1], [0, 0, 1, 1], [], []>} : vector<64x64xbf16>, vector<64x64xbf16>, vector<64x64xf32> -> vector<64x64xf32>
    %194 = arith.truncf %193 : vector<64x64xf32> to vector<64x64xbf16>
    %cst_99 = arith.constant dense<0.000000e+00> : vector<64x64xf32>
    %195 = tpu.matmul %192, %170, %cst_99 {dimension_numbers = #tpu.dot_dimension_numbers<[1], [0], [0], [1], [0, 0, 1, 1], [], []>} : vector<64x64xbf16>, vector<64x64xbf16>, vector<64x64xf32> -> vector<64x64xf32>
    %196 = arith.truncf %195 : vector<64x64xf32> to vector<64x64xbf16>
    %c7_100 = arith.constant 7 : index
    %c0_101 = arith.constant 0 : index
    %197 = vector.load %arg5[%c7_100, %c0_101] : memref<12x64xf32, #tpu.memory_space<vmem>>, vector<1x64xf32>
    %c8_102 = arith.constant 8 : index
    %c0_103 = arith.constant 0 : index
    %198 = vector.load %arg5[%c8_102, %c0_103] : memref<12x64xf32, #tpu.memory_space<vmem>>, vector<1x64xf32>
    %c9 = arith.constant 9 : index
    %c0_104 = arith.constant 0 : index
    %199 = vector.load %arg5[%c9, %c0_104] : memref<12x64xf32, #tpu.memory_space<vmem>>, vector<1x64xf32>
    %c12 = arith.constant 12 : index
    %c0_105 = arith.constant 0 : index
    %c0_106 = arith.constant 0 : index
    %200 = vector.load %arg4[%c12, %c0_105, %c0_106] : memref<17x64x64xbf16, #tpu.memory_space<vmem>>, vector<1x64x64xbf16>
    %201 = vector.shape_cast %200 : vector<1x64x64xbf16> to vector<64x64xbf16>
    %cst_107 = arith.constant dense<0.000000e+00> : vector<64x64xf32>
    %202 = tpu.matmul %170, %201, %cst_107 {dimension_numbers = #tpu.dot_dimension_numbers<[1], [0], [0], [1], [0, 0, 1, 1], [], []>} : vector<64x64xbf16>, vector<64x64xbf16>, vector<64x64xf32> -> vector<64x64xf32>
    %203 = vector.broadcast %197 : vector<1x64xf32> to vector<64x64xf32>
    %204 = arith.addf %202, %203 : vector<64x64xf32>
    %c13 = arith.constant 13 : index
    %c0_108 = arith.constant 0 : index
    %c0_109 = arith.constant 0 : index
    %205 = vector.load %arg4[%c13, %c0_108, %c0_109] : memref<17x64x64xbf16, #tpu.memory_space<vmem>>, vector<1x64x64xbf16>
    %206 = vector.shape_cast %205 : vector<1x64x64xbf16> to vector<64x64xbf16>
    %cst_110 = arith.constant dense<0.000000e+00> : vector<64x64xf32>
    %207 = tpu.matmul %170, %206, %cst_110 {dimension_numbers = #tpu.dot_dimension_numbers<[1], [0], [0], [1], [0, 0, 1, 1], [], []>} : vector<64x64xbf16>, vector<64x64xbf16>, vector<64x64xf32> -> vector<64x64xf32>
    %208 = vector.broadcast %198 : vector<1x64xf32> to vector<64x64xf32>
    %209 = arith.addf %207, %208 : vector<64x64xf32>
    %c14 = arith.constant 14 : index
    %c0_111 = arith.constant 0 : index
    %c0_112 = arith.constant 0 : index
    %210 = vector.load %arg4[%c14, %c0_111, %c0_112] : memref<17x64x64xbf16, #tpu.memory_space<vmem>>, vector<1x64x64xbf16>
    %211 = vector.shape_cast %210 : vector<1x64x64xbf16> to vector<64x64xbf16>
    %cst_113 = arith.constant dense<0.000000e+00> : vector<64x64xf32>
    %212 = tpu.matmul %170, %211, %cst_113 {dimension_numbers = #tpu.dot_dimension_numbers<[1], [0], [0], [1], [0, 0, 1, 1], [], []>} : vector<64x64xbf16>, vector<64x64xbf16>, vector<64x64xf32> -> vector<64x64xf32>
    %213 = vector.broadcast %199 : vector<1x64xf32> to vector<64x64xf32>
    %214 = arith.addf %212, %213 : vector<64x64xf32>
    %c13_114 = arith.constant 13 : index
    %c0_115 = arith.constant 0 : index
    %c0_116 = arith.constant 0 : index
    %215 = vector.load %arg4[%c13_114, %c0_115, %c0_116] : memref<17x64x64xbf16, #tpu.memory_space<vmem>>, vector<1x64x64xbf16>
    %216 = vector.shape_cast %215 : vector<1x64x64xbf16> to vector<64x64xbf16>
    %cst_117 = arith.constant dense<0.000000e+00> : vector<64x64xf32>
    %217 = tpu.matmul %194, %216, %cst_117 {dimension_numbers = #tpu.dot_dimension_numbers<[1], [0], [0], [1], [0, 0, 1, 1], [], []>} : vector<64x64xbf16>, vector<64x64xbf16>, vector<64x64xf32> -> vector<64x64xf32>
    %218 = vector.broadcast %198 : vector<1x64xf32> to vector<64x64xf32>
    %219 = vector.broadcast %180 : vector<64x1xf32> to vector<64x64xf32>
    %220 = arith.mulf %218, %219 : vector<64x64xf32>
    %221 = arith.addf %217, %220 : vector<64x64xf32>
    %c14_118 = arith.constant 14 : index
    %c0_119 = arith.constant 0 : index
    %c0_120 = arith.constant 0 : index
    %222 = vector.load %arg4[%c14_118, %c0_119, %c0_120] : memref<17x64x64xbf16, #tpu.memory_space<vmem>>, vector<1x64x64xbf16>
    %223 = vector.shape_cast %222 : vector<1x64x64xbf16> to vector<64x64xbf16>
    %cst_121 = arith.constant dense<0.000000e+00> : vector<64x64xf32>
    %224 = tpu.matmul %194, %223, %cst_121 {dimension_numbers = #tpu.dot_dimension_numbers<[1], [0], [0], [1], [0, 0, 1, 1], [], []>} : vector<64x64xbf16>, vector<64x64xbf16>, vector<64x64xf32> -> vector<64x64xf32>
    %225 = vector.broadcast %199 : vector<1x64xf32> to vector<64x64xf32>
    %226 = vector.broadcast %180 : vector<64x1xf32> to vector<64x64xf32>
    %227 = arith.mulf %225, %226 : vector<64x64xf32>
    %228 = arith.addf %224, %227 : vector<64x64xf32>
    %c13_122 = arith.constant 13 : index
    %c0_123 = arith.constant 0 : index
    %c0_124 = arith.constant 0 : index
    %229 = vector.load %arg4[%c13_122, %c0_123, %c0_124] : memref<17x64x64xbf16, #tpu.memory_space<vmem>>, vector<1x64x64xbf16>
    %230 = vector.shape_cast %229 : vector<1x64x64xbf16> to vector<64x64xbf16>
    %cst_125 = arith.constant dense<0.000000e+00> : vector<64x64xf32>
    %231 = tpu.matmul %196, %230, %cst_125 {dimension_numbers = #tpu.dot_dimension_numbers<[1], [0], [0], [1], [0, 0, 1, 1], [], []>} : vector<64x64xbf16>, vector<64x64xbf16>, vector<64x64xf32> -> vector<64x64xf32>
    %232 = vector.broadcast %198 : vector<1x64xf32> to vector<64x64xf32>
    %233 = vector.broadcast %182 : vector<64x1xf32> to vector<64x64xf32>
    %234 = arith.mulf %232, %233 : vector<64x64xf32>
    %235 = arith.addf %231, %234 : vector<64x64xf32>
    %c14_126 = arith.constant 14 : index
    %c0_127 = arith.constant 0 : index
    %c0_128 = arith.constant 0 : index
    %236 = vector.load %arg4[%c14_126, %c0_127, %c0_128] : memref<17x64x64xbf16, #tpu.memory_space<vmem>>, vector<1x64x64xbf16>
    %237 = vector.shape_cast %236 : vector<1x64x64xbf16> to vector<64x64xbf16>
    %cst_129 = arith.constant dense<0.000000e+00> : vector<64x64xf32>
    %238 = tpu.matmul %196, %237, %cst_129 {dimension_numbers = #tpu.dot_dimension_numbers<[1], [0], [0], [1], [0, 0, 1, 1], [], []>} : vector<64x64xbf16>, vector<64x64xbf16>, vector<64x64xf32> -> vector<64x64xf32>
    %239 = vector.broadcast %199 : vector<1x64xf32> to vector<64x64xf32>
    %240 = vector.broadcast %182 : vector<64x1xf32> to vector<64x64xf32>
    %241 = arith.mulf %239, %240 : vector<64x64xf32>
    %242 = arith.addf %238, %241 : vector<64x64xf32>
    %c9_130 = arith.constant 9 : index
    %c0_131 = arith.constant 0 : index
    %c0_132 = arith.constant 0 : index
    %243 = vector.load %arg4[%c9_130, %c0_131, %c0_132] : memref<17x64x64xbf16, #tpu.memory_space<vmem>>, vector<1x64x64xbf16>
    %244 = vector.shape_cast %243 : vector<1x64x64xbf16> to vector<64x64xbf16>
    %cst_133 = arith.constant dense<0.000000e+00> : vector<64x64xf32>
    %245 = tpu.matmul %194, %244, %cst_133 {dimension_numbers = #tpu.dot_dimension_numbers<[1], [0], [0], [1], [0, 0, 1, 1], [], []>} : vector<64x64xbf16>, vector<64x64xbf16>, vector<64x64xf32> -> vector<64x64xf32>
    %c10 = arith.constant 10 : index
    %c0_134 = arith.constant 0 : index
    %c0_135 = arith.constant 0 : index
    %246 = vector.load %arg4[%c10, %c0_134, %c0_135] : memref<17x64x64xbf16, #tpu.memory_space<vmem>>, vector<1x64x64xbf16>
    %247 = vector.shape_cast %246 : vector<1x64x64xbf16> to vector<64x64xbf16>
    %cst_136 = arith.constant dense<0.000000e+00> : vector<64x64xf32>
    %248 = tpu.matmul %170, %247, %cst_136 {dimension_numbers = #tpu.dot_dimension_numbers<[1], [0], [0], [1], [0, 0, 1, 1], [], []>} : vector<64x64xbf16>, vector<64x64xbf16>, vector<64x64xf32> -> vector<64x64xf32>
    %249 = arith.addf %245, %248 : vector<64x64xf32>
    %c11 = arith.constant 11 : index
    %c0_137 = arith.constant 0 : index
    %c0_138 = arith.constant 0 : index
    %250 = vector.load %arg4[%c11, %c0_137, %c0_138] : memref<17x64x64xbf16, #tpu.memory_space<vmem>>, vector<1x64x64xbf16>
    %251 = vector.shape_cast %250 : vector<1x64x64xbf16> to vector<64x64xbf16>
    %cst_139 = arith.constant dense<0.000000e+00> : vector<64x64xf32>
    %252 = tpu.matmul %196, %251, %cst_139 {dimension_numbers = #tpu.dot_dimension_numbers<[1], [0], [0], [1], [0, 0, 1, 1], [], []>} : vector<64x64xbf16>, vector<64x64xbf16>, vector<64x64xf32> -> vector<64x64xf32>
    %253 = arith.addf %249, %252 : vector<64x64xf32>
    %c6_140 = arith.constant 6 : index
    %c0_141 = arith.constant 0 : index
    %254 = vector.load %arg5[%c6_140, %c0_141] : memref<12x64xf32, #tpu.memory_space<vmem>>, vector<1x64xf32>
    %255 = vector.broadcast %254 : vector<1x64xf32> to vector<64x64xf32>
    %256 = arith.addf %253, %255 : vector<64x64xf32>
    %257 = arith.mulf %204, %221 : vector<64x64xf32>
    %cst_142 = arith.constant dense<0.000000e+00> : vector<64xf32>
    %258 = vector.multi_reduction <add>, %257, %cst_142 [1] : vector<64x64xf32> to vector<64xf32>
    %259 = vector.shape_cast %258 : vector<64xf32> to vector<64x1xf32>
    %cst_143 = arith.constant 1.250000e-01 : f32
    %260 = vector.broadcast %cst_143 : f32 to vector<64x1xf32>
    %261 = arith.mulf %259, %260 : vector<64x1xf32>
    %262 = arith.addf %261, %185 : vector<64x1xf32>
    %263 = arith.mulf %204, %209 : vector<64x64xf32>
    %cst_144 = arith.constant dense<0.000000e+00> : vector<64xf32>
    %264 = vector.multi_reduction <add>, %263, %cst_144 [1] : vector<64x64xf32> to vector<64xf32>
    %265 = vector.shape_cast %264 : vector<64xf32> to vector<64x1xf32>
    %cst_145 = arith.constant 1.250000e-01 : f32
    %266 = vector.broadcast %cst_145 : f32 to vector<64x1xf32>
    %267 = arith.mulf %265, %266 : vector<64x1xf32>
    %cst_146 = arith.constant 9.99999543E-7 : f32
    %268 = vector.broadcast %cst_146 : f32 to vector<64x1xf32>
    %269 = arith.addf %267, %268 : vector<64x1xf32>
    %270 = arith.mulf %204, %235 : vector<64x64xf32>
    %cst_147 = arith.constant dense<0.000000e+00> : vector<64xf32>
    %271 = vector.multi_reduction <add>, %270, %cst_147 [1] : vector<64x64xf32> to vector<64xf32>
    %272 = vector.shape_cast %271 : vector<64xf32> to vector<64x1xf32>
    %cst_148 = arith.constant 1.250000e-01 : f32
    %273 = vector.broadcast %cst_148 : f32 to vector<64x1xf32>
    %274 = arith.mulf %272, %273 : vector<64x1xf32>
    %275 = arith.addf %274, %188 : vector<64x1xf32>
    %276 = arith.maximumf %262, %269 : vector<64x1xf32>
    %277 = arith.maximumf %276, %275 : vector<64x1xf32>
    %278 = arith.subf %262, %277 : vector<64x1xf32>
    %279 = math.exp %278 : vector<64x1xf32>
    %280 = arith.subf %269, %277 : vector<64x1xf32>
    %281 = math.exp %280 : vector<64x1xf32>
    %282 = arith.subf %275, %277 : vector<64x1xf32>
    %283 = math.exp %282 : vector<64x1xf32>
    %284 = arith.addf %279, %281 : vector<64x1xf32>
    %285 = arith.addf %284, %283 : vector<64x1xf32>
    %cst_149 = arith.constant 1.000000e+00 : f32
    %286 = vector.broadcast %cst_149 : f32 to vector<64x1xf32>
    %287 = arith.divf %286, %285 : vector<64x1xf32>
    %288 = arith.mulf %279, %287 : vector<64x1xf32>
    %289 = vector.broadcast %288 : vector<64x1xf32> to vector<64x64xf32>
    %290 = arith.mulf %289, %228 : vector<64x64xf32>
    %291 = arith.mulf %281, %287 : vector<64x1xf32>
    %292 = vector.broadcast %291 : vector<64x1xf32> to vector<64x64xf32>
    %293 = arith.mulf %292, %214 : vector<64x64xf32>
    %294 = arith.addf %290, %293 : vector<64x64xf32>
    %295 = arith.mulf %283, %287 : vector<64x1xf32>
    %296 = vector.broadcast %295 : vector<64x1xf32> to vector<64x64xf32>
    %297 = arith.mulf %296, %242 : vector<64x64xf32>
    %298 = arith.addf %294, %297 : vector<64x64xf32>
    %299 = arith.addf %256, %298 : vector<64x64xf32>
    %cst_150 = arith.constant dense<0.000000e+00> : vector<64xf32>
    %300 = vector.multi_reduction <add>, %299, %cst_150 [0] : vector<64x64xf32> to vector<64xf32>
    %301 = vector.shape_cast %300 : vector<64xf32> to vector<1x64xf32>
    %cst_151 = arith.constant 6.400000e+01 : f32
    %302 = vector.broadcast %cst_151 : f32 to vector<1x64xf32>
    %303 = arith.divf %301, %302 : vector<1x64xf32>
    %304 = vector.broadcast %303 : vector<1x64xf32> to vector<64x64xf32>
    %305 = arith.subf %299, %304 : vector<64x64xf32>
    %306 = arith.mulf %305, %305 : vector<64x64xf32>
    %cst_152 = arith.constant dense<0.000000e+00> : vector<64xf32>
    %307 = vector.multi_reduction <add>, %306, %cst_152 [0] : vector<64x64xf32> to vector<64xf32>
    %308 = vector.shape_cast %307 : vector<64xf32> to vector<1x64xf32>
    %cst_153 = arith.constant 6.400000e+01 : f32
    %309 = vector.broadcast %cst_153 : f32 to vector<1x64xf32>
    %310 = arith.divf %308, %309 : vector<1x64xf32>
    %cst_154 = arith.constant 9.99999974E-6 : f32
    %311 = vector.broadcast %cst_154 : f32 to vector<1x64xf32>
    %312 = arith.addf %310, %311 : vector<1x64xf32>
    %313 = math.rsqrt %312 : vector<1x64xf32>
    %314 = vector.broadcast %313 : vector<1x64xf32> to vector<64x64xf32>
    %315 = arith.mulf %305, %314 : vector<64x64xf32>
    %316 = arith.truncf %315 : vector<64x64xf32> to vector<64x64xbf16>
    %c15 = arith.constant 15 : index
    %c0_155 = arith.constant 0 : index
    %c0_156 = arith.constant 0 : index
    %317 = vector.load %arg4[%c15, %c0_155, %c0_156] : memref<17x64x64xbf16, #tpu.memory_space<vmem>>, vector<1x64x64xbf16>
    %318 = vector.shape_cast %317 : vector<1x64x64xbf16> to vector<64x64xbf16>
    %cst_157 = arith.constant dense<0.000000e+00> : vector<64x64xf32>
    %319 = tpu.matmul %316, %318, %cst_157 {dimension_numbers = #tpu.dot_dimension_numbers<[1], [0], [0], [1], [0, 0, 1, 1], [], []>} : vector<64x64xbf16>, vector<64x64xbf16>, vector<64x64xf32> -> vector<64x64xf32>
    %c10_158 = arith.constant 10 : index
    %c0_159 = arith.constant 0 : index
    %320 = vector.load %arg5[%c10_158, %c0_159] : memref<12x64xf32, #tpu.memory_space<vmem>>, vector<1x64xf32>
    %321 = vector.broadcast %320 : vector<1x64xf32> to vector<64x64xf32>
    %322 = arith.addf %319, %321 : vector<64x64xf32>
    %cst_160 = arith.constant 0.000000e+00 : f32
    %323 = vector.broadcast %cst_160 : f32 to vector<64x64xf32>
    %324 = arith.maximumf %322, %323 : vector<64x64xf32>
    %325 = arith.truncf %324 : vector<64x64xf32> to vector<64x64xbf16>
    %c16 = arith.constant 16 : index
    %c0_161 = arith.constant 0 : index
    %c0_162 = arith.constant 0 : index
    %326 = vector.load %arg4[%c16, %c0_161, %c0_162] : memref<17x64x64xbf16, #tpu.memory_space<vmem>>, vector<1x64x64xbf16>
    %327 = vector.shape_cast %326 : vector<1x64x64xbf16> to vector<64x64xbf16>
    %cst_163 = arith.constant dense<0.000000e+00> : vector<64x64xf32>
    %328 = tpu.matmul %325, %327, %cst_163 {dimension_numbers = #tpu.dot_dimension_numbers<[1], [0], [0], [1], [0, 0, 1, 1], [], []>} : vector<64x64xbf16>, vector<64x64xbf16>, vector<64x64xf32> -> vector<64x64xf32>
    %c11_164 = arith.constant 11 : index
    %c0_165 = arith.constant 0 : index
    %329 = vector.load %arg5[%c11_164, %c0_165] : memref<12x64xf32, #tpu.memory_space<vmem>>, vector<1x64xf32>
    %330 = vector.broadcast %329 : vector<1x64xf32> to vector<64x64xf32>
    %331 = arith.addf %328, %330 : vector<64x64xf32>
    %332 = arith.addf %169, %331 : vector<64x64xf32>
    %333 = arith.truncf %332 : vector<64x64xf32> to vector<64x64xbf16>
    %c0_166 = arith.constant 0 : index
    %c0_167 = arith.constant 0 : index
    %334 = vector.load %arg6[%c0_166, %c0_167] : memref<64x128xbf16, #tpu.memory_space<vmem>>, vector<64x128xbf16>
    %cst_168 = arith.constant dense<0.000000e+00> : vector<64x128xf32>
    %335 = tpu.matmul %333, %334, %cst_168 {dimension_numbers = #tpu.dot_dimension_numbers<[1], [0], [0], [1], [0, 0, 1, 1], [], []>} : vector<64x64xbf16>, vector<64x128xbf16>, vector<64x128xf32> -> vector<64x128xf32>
    %c0_169 = arith.constant 0 : index
    %c0_170 = arith.constant 0 : index
    %336 = vector.load %arg7[%c0_169, %c0_170] : memref<1x128xf32, #tpu.memory_space<vmem>>, vector<1x128xf32>
    %337 = vector.broadcast %336 : vector<1x128xf32> to vector<64x128xf32>
    %338 = arith.addf %335, %337 : vector<64x128xf32>
    %c0_171 = arith.constant 0 : index
    %c0_172 = arith.constant 0 : index
    %339 = vector.load %arg8[%c0_171, %c0_172] : memref<64x128xf32, #tpu.memory_space<vmem>>, vector<64x128xf32>
    tpu.vector_store %arg8[%c0_171, %c0_172], %338 {strides = array<i32>} : memref<64x128xf32, #tpu.memory_space<vmem>>, vector<64x128xf32>,
    return
  }
  func.func @transform_0(%arg0: i32) -> (i32, i32) {
    %c0_i32 = arith.constant 0 : i32
    %c0_i32_0 = arith.constant 0 : i32
    return %arg0, %c0_i32 : i32, i32
  }
  func.func @transform_1(%arg0: i32) -> (i32, i32) {
    %c0_i32 = arith.constant 0 : i32
    %c0_i32_0 = arith.constant 0 : i32
    return %arg0, %c0_i32 : i32, i32
  }
  func.func @transform_2(%arg0: i32) -> (i32, i32, i32) {
    %c0_i32 = arith.constant 0 : i32
    %c0_i32_0 = arith.constant 0 : i32
    %c0_i32_1 = arith.constant 0 : i32
    %c0_i32_2 = arith.constant 0 : i32
    return %c0_i32, %c0_i32_0, %c0_i32_1 : i32, i32, i32
  }
  func.func @transform_3(%arg0: i32) -> (i32, i32, i32) {
    %c0_i32 = arith.constant 0 : i32
    %c0_i32_0 = arith.constant 0 : i32
    %c0_i32_1 = arith.constant 0 : i32
    %c0_i32_2 = arith.constant 0 : i32
    return %c0_i32, %c0_i32_0, %c0_i32_1 : i32, i32, i32
  }
  func.func @transform_4(%arg0: i32) -> (i32, i32) {
    %c0_i32 = arith.constant 0 : i32
    %c0_i32_0 = arith.constant 0 : i32
    %c0_i32_1 = arith.constant 0 : i32
    return %c0_i32, %c0_i32_0 : i32, i32
  }
  func.func @transform_5(%arg0: i32) -> (i32, i32) {
    %c0_i32 = arith.constant 0 : i32
    %c0_i32_0 = arith.constant 0 : i32
    %c0_i32_1 = arith.constant 0 : i32
    return %c0_i32, %c0_i32_0 : i32, i32
  }
  func.func @transform_6(%arg0: i32) -> (i32, i32) {
    %c0_i32 = arith.constant 0 : i32
    %c0_i32_0 = arith.constant 0 : i32
    %c0_i32_1 = arith.constant 0 : i32
    return %c0_i32, %c0_i32_0 : i32, i32
  }
  func.func @transform_7(%arg0: i32) -> (i32, i32) {
    %c0_i32 = arith.constant 0 : i32
    %c0_i32_0 = arith.constant 0 : i32
    return %arg0, %c0_i32 : i32, i32
  }
}

</mosaic_0001>

<bundles_post_ra>
// kernel: tpu_custom_call.1
= control target key start
LH: loop header
LB: loop body
LE: loop exit
PB: predicated region body
PF: predicated region fallthrough
CT: control target
= control target key end

     0   :  { %12 = vsyncpa [#allocation3], 0  ;;  %s7516_s0 = inlined_call_operand.vmem [shape: bf16[128,64], index: 0, kind: input, shape index: {}]   ;;  %s7517_s1 = inlined_call_operand.vmem [shape: f32[128,64], index: 1, kind: input, shape index: {}]   ;;  %s7518_s2 = inlined_call_operand.vmem [shape: bf16[4,64,64], index: 2, kind: input, shape index: {}]   ;;  %s7519_s3 = inlined_call_operand.hbm [shape: bf16[17,64,64], index: 3, kind: input, shape index: {}]   ;;  %s7520_s4 = inlined_call_operand.vmem [shape: f32[12,64], index: 4, kind: input, shape index: {}]   ;;  %s7521_s5 = inlined_call_operand.vmem [shape: bf16[64,128], index: 5, kind: input, shape index: {}]   ;;  %s7522_s6 = inlined_call_operand.vmem [shape: f32[1,128], index: 6, kind: input, shape index: {}]   ;;  %s7523_s7 = inlined_call_operand.hbm [shape: f32[128,128], index: 7, kind: output, shape index: {}]  }
   0x1   :  { %13 = vsyncpa [#allocation4], 0 }
   0x2   :  { %15 = vsyncpa [#allocation4 + $0x1], 0  ;;  %s5995_s24 = smov 0   ;;  %s5997_s25 = smov 0  }
   0x3   :  { %s5999_s26 = smov 0   ;;  %s6001_s27 = smov 0  }
   0x4 LB: > { %s6016_s28 = sadd.s32 4294967295, %s5945_s27   ;;  %s4533_s29 = sadd.s32 4294967294, %s5945_s27   ;;  %s5945_s27 = sphi %s6001_s27, %s7639_s27   ;;  %s5941_s26 = sphi %s5999_s26, %s7638_s26   ;;  %s5937_s25 = sphi %s5997_s25, %s7637_s25   ;;  %s5933_s24 = sphi %s5995_s24, %s7636_s24  }
   0x5   : > { %s6020_s30 = sadd.s32 1, %s5945_s27   ;;  %s185_s8 = sadd.s32 1, %s5941_s26 }
   0x6   : > { %s182_s9 = ssub.s32 %s5945_s27, %s6020_s30  ;;  %p195_p0 = scmp.ne.s32.totalorder %s5941_s26, %s5937_s25 }
   0x7   : > { %p183_p1 = scmp.eq.s32.totalorder %s182_s9, 0  ;;  %p196_p2 = scmp.eq.s32.totalorder %s6016_s28, 1 }
   0x8   : > { %p201_p3 = scmp.ne.s32.totalorder %s5937_s25, %s5933_s24  ;;  %p202_p4 = scmp.eq.s32.totalorder %s4533_s29, 1 }
   0x9   : > { %s6031_s10 = scalar_select %p183_p1, %s5941_s26, %s185_s8  }
   0xa   : > { %p6033_p5 = por %p196_p2, %p195_p0  ;;  %p6037_p6 = por %p202_p4, %p201_p3 }
   0xb   : > { %p4534_p7 = scmp.ge.s32.totalorder %s5945_s27, 1  ;;  %p209_p8 = scmp.lt.s32.totalorder %s5945_s27, 3 }
   0xc   : > { %s7549_s11 = scalar_select %p6033_p5, 1, 0 }
   0xd   : > { %s7550_s12 = scalar_select %p6037_p6, 1, 0 }
   0xe   : > { %p7524_p9 = scmp.eq.s32.totalorder %s6016_s28, 0  ;;  %p6044_p10 = pnand %p4534_p7, %p209_p8 }
   0xf   : > { %s5947_s14 = smov [#allocation2]   ;;  %s5851_s19 = scalar_lea.hbm %s7519_s3, 8704 }
  0x10   : > { %s7551_s13 = scalar_select %p6044_p10, 1, 0 }
  0x11   : > { %s224_s15 = sshll.u32 %s5947_s14, 4  ;;  %p5577_p11 = pneg %p6044_p10  ;;  %s225_s15 = int_to_ptr.vmem [resolvable:$true] %s224_s15 }
  0x12   : > { %p5852_p13 = scmp.ne.s32.totalorder %s7519_s3, %s5851_s19  ;;  %p5858_p3 = scmp.lt.u32.totalorder %s5851_s19, %s7519_s3 }
  0x13   : > { %p6052_p12 = pnand %p7524_p9, %p5577_p11 }
  0x15   : > { %p5853_p0 = pneg %p6052_p12 }
  0x17   : > { %p5854_p1 = pnand %p5853_p0, %p5852_p13 }
  0x19   : > { %p5855_p2 = pneg %p5854_p1 }
  0x1b   : > { %p5860_p4 = pnand %p5858_p3, %p5855_p2 }
  0x1d   : > { %5863 = shalt.err (!%p5860_p4)
}
  0x1e   : > { %s5864_s29 = scalar_lea.vmem %s225_s15, 8704  ;;  %p5872_p9 = scmp.lt.s32.totalorder %s225_s15, %s225_s15 }
  0x1f   : > { %p5865_p7 = scmp.ne.s32.totalorder %s225_s15, %s5864_s29  ;;  %p5873_p6 = scmp.lt.s32.totalorder %s5864_s29, %s5864_s29 }
  0x21   : > { %p5867_p8 = pnand %p5865_p7, %p5853_p0  ;;  %p5874_p5 = por %p5873_p6, %p5872_p9 }
  0x23   : > { %p5868_p11 = pneg %p5867_p8 }
  0x25   : > { %p5875_p10 = pnand %p5874_p5, %p5868_p11 }
  0x27   : > { %5878 = shalt.err (!%p5875_p10)
}
  0x28   : > { %s5948_s8 = smov 64   ;;  %s5949_s9 = smov 4  }
  0x29   : > { %5580 = dma.hbm_to_vmem [thread:$0]  (!%p6052_p12), %s7519_s3, 8704, %s225_s15, [#allocation3], %s5948_s8, %s5948_s8, %s5949_s9  }
  0x2a   : > { %p7553_p13 = scmp.ne.s32.totalorder %s7551_s13, 0 }
  0x2c   : > { %267 = sbr.rel (%p7553_p13) target bundleno = 2929 (0xb71), region = 48 }
  0x33   : > { %p7554_p1 = scmp.eq.s32.totalorder %s6016_s28, 0 }
  0x35   : > { %5924 = dma.done.wait (%p7554_p1), [#allocation3], 8704   ;;  %p7555_p0 = pmov %p7554_p1 }
  0x36   : > { %s4540_s18 = sshll.u32 %s6016_s28, 3  ;;  %v5627_v0 = vld [vmem:[#allocation2] sm:$0xff]   ;;  %v5628_v1 = vld [vmem:[#allocation2 + $0x8] sm:$0xff]   ;;  %v5629_v2 = vld [vmem:[#allocation2 + $0x10] sm:$0xff]   ;;  %vm395_vm0 = vcmask 523264   ;;  %s301_s15 = sand.u32 1, %s5937_s25  }
  0x37   : > { %5926 = vsyncadd (%p7555_p0), [#allocation3], 4294958592  ;;  %p305_p5 = scmp.lt.s32.totalorder %s4540_s18, 15  ;;  %5059 = vmatprep.subr.bf16.mxu0 %v5627_v0  ;;  %v5630_v4 = vld [vmem:[#allocation2 + $0x18] sm:$0xff]   ;;  %v5635_v8 = vld [vmem:[%s7518_s2] sm:$0xff]   ;;  %p7634_p9 = scmp.ne.s32.totalorder %s7549_s11, 0 }
  0x38   : > { %5060 = vmatpush3.bf16.msra.mxu0 %v5627_v0  ;;  %v5636_v9 = vld [vmem:[%s7518_s2 + $0x20] sm:$0xff]   ;;  %5083 = vmatprep.mubr.msk.bf16.mxu1 %vm395_vm0, %v5635_v8  ;;  %v5637_v40 = vld [vmem:[%s7518_s2 + $0x8] sm:$0xff]   ;;  %v5643_v44 = vld [vmem:[%s7518_s2 + $0x10] sm:$0xff]  }
  0x39   : > { %s7641_s18 = smov (!%p305_p5, %s4540_s18), 15  ;;  %5061 = vmatprep.subr.bf16.mxu0 %v5628_v1  ;;  %v5639_v38 = vld [vmem:[#allocation2 + $0x80] sm:$0xff]   ;;  %v5638_v41 = vld [vmem:[%s7518_s2 + $0x28] sm:$0xff]   ;;  %v5644_v45 = vld [vmem:[%s7518_s2 + $0x30] sm:$0xff]  }
  0x3a   : > { %s4541_s16 = sshll.u32 %s7641_s18, 2  ;;  %s4543_s29 = sshll.u32 %s7641_s18, 3  ;;  %v6147_v39 = vld [vmem:[#allocation2 + $0xa0] sm:$0xff]   ;;  %v5641_v42 = vld [vmem:[#allocation2 + $0x88] sm:$0xff]   ;;  %v5647_v46 = vld [vmem:[#allocation2 + $0x90] sm:$0xff]  }
  0x3b   : > { %s308_s13 = scalar_lea.vmem %s7516_s0, %s4541_s16  ;;  %s314_s14 = scalar_lea.vmem %s7517_s1, %s4543_s29  ;;  %v6158_v43 = vld [vmem:[#allocation2 + $0xa8] sm:$0xff]   ;;  %v6170_v47 = vld [vmem:[#allocation2 + $0xb0] sm:$0xff]   ;;  %v5645_v48 = vld [vmem:[%s7518_s2 + $0x18] sm:$0xff]  }
  0x3c   : > { %v5631_v3 = vld [vmem:[%s308_s13] sm:$0xff]   ;;  %5062 = vmatpush3.bf16.msra.mxu0 %v5628_v1  ;;  %v5632_v5 = vld [vmem:[%s308_s13 + $0x8] sm:$0xff]   ;;  %v5633_v6 = vld [vmem:[%s308_s13 + $0x10] sm:$0xff]   ;;  %s4818_s29 = sshll.u32 %s6016_s28, 10  ;;  %s7475_s28 = scalar_lea.sflag [#allocation4], %s301_s15 }
  0x3d   : > { %5067 = vmatprep.mubr.msk.bf16.mxu0 %vm395_vm0, %v5631_v3  ;;  %5063 = vmatprep.subr.bf16.mxu0 %v5629_v2  ;;  %v5634_v7 = vld [vmem:[%s308_s13 + $0x18] sm:$0xff]   ;;  %v345_v10 = vld [vmem:[%s314_s14 + $0x10] sm:$0xff]  ;;  %v343_v11 = vld [vmem:[%s314_s14] sm:$0xff]  ;;  %s4539_s13 = sshll.u32 %s301_s15, 6  ;;  %s5952_s18 = smov [#allocation5]  }
  0x3e   : > { %v346_v13 = vld [vmem:[%s314_s14 + $0x18] sm:$0xff]  ;;  %v344_v16 = vld [vmem:[%s314_s14 + $0x8] sm:$0xff]  ;;  %v349_v23 = vld [vmem:[%s314_s14 + $0x30] sm:$0xff]  ;;  %s303_s22 = scalar_lea.vmem [#allocation5], %s4539_s13  ;;  %s5883_s16 = sshll.u32 %s5952_s18, 4  ;;  %s5884_s16 = int_to_ptr.vmem [resolvable:$false] %s5883_s16 }
  0x3f   : > { %v347_v24 = vld [vmem:[%s314_s14 + $0x20] sm:$0xff]  ;;  %v350_v27 = vld [vmem:[%s314_s14 + $0x38] sm:$0xff]  ;;  %v348_v30 = vld [vmem:[%s314_s14 + $0x28] sm:$0xff]  ;;  %s4447_s23 = sshll.u32 %s303_s22, 4  ;;  %s7471_s14 = scalar_lea.hbm %s7523_s7, %s4818_s29  ;;  %s7466_s23 = int_to_ptr.vmem [resolvable:$true] %s4447_s23 }
  0x40   : > { %5064 = vmatpush3.bf16.msra.mxu0 %v5629_v2  ;;  %v5646_v49 = vld [vmem:[%s7518_s2 + $0x38] sm:$0xff]   ;;  %v5651_v52 = vld [vmem:[#allocation2 + $0xc0] sm:$0xff]   ;;  %v6193_v53 = vld [vmem:[#allocation2 + $0xc8] sm:$0xff]   ;;  %s5879_s17 = scalar_lea.vmem %s7466_s23, 1024  ;;  %s5885_s19 = scalar_lea.vmem %s5884_s16, 2048 }
  0x41   : > { %5065 = vmatprep.subr.bf16.mxu0 %v5630_v4  ;;  %v5649_v50 = vld [vmem:[#allocation2 + $0x98] sm:$0xff]   ;;  %v6205_v54 = vld [vmem:[#allocation2 + $0xd0] sm:$0xff]   ;;  %p5880_p6 = scmp.ne.s32.totalorder %s7466_s23, %s5879_s17  ;;  %p5886_p2 = scmp.lt.s32.totalorder %s7466_s23, %s5884_s16 }
  0x42   : > { %v6182_v51 = vld [vmem:[#allocation2 + $0xb8] sm:$0xff]   ;;  %p5887_p3 = scmp.lt.s32.totalorder %s5885_s19, %s5879_s17 }
  0x43   : > { %v6211_v55 = vld [vmem:[#allocation2 + $0xd8] sm:$0xff]   ;;  %p5881_p10 = pnand %p5880_p6, %p7634_p9 }
  0x44   : > { %5066 = vmatpush3.bf16.msra.mxu0 %v5630_v4  ;;  %p5888_p4 = por %p5887_p3, %p5886_p2 }
  0x45   : > { %p5882_p12 = pneg %p5881_p10 }
  0x47   : > { %5068 = vmatmul.mubr.msk.bf16.vlgmr.msra.gmra.mrb[0].mxu0 %vm395_vm0, %v5632_v5  ;;  %p5889_p7 = pnand %p5888_p4, %p5882_p12 }
  0x48   : > { %5071 = vmatprep.mubr.msk.bf16.mxu0 %vm395_vm0, %v5633_v6 }
  0x4f   : > { %5072 = vmatmul.mubr.msk.bf16.gmra.mrb[4].mxu0 %vm395_vm0, %v5634_v7 }
  0x50   : > { %5099 = vmatprep.mubr.msk.bf16.mxu0 %vm395_vm0, %v5636_v9 }
 0x11a   : > { %v5069_v12 = vpop.f32.mrb[0].mxu0 }
 0x11b   : > { %v6101_v14 = vadd.f32 %v5069_v12, %v345_v10  ;;  %v442_v15 = vpop.f32.mrb[1].mxu0 }
 0x11c   : > { %v6103_v17 = vadd.f32 %v442_v15, %v343_v11  ;;  %v5070_v18 = vpop.f32.mrb[2].mxu0 }
 0x11d   : > { %7556 = vst [vmem:[#allocation8_spill] sm:$0xff] %v6101_v14  ;;  %v6105_v19 = vadd.f32 %v5070_v18, %v346_v13  ;;  %v445_v20 = vpop.f32.mrb[3].mxu0  ;;  %v4590_v18 = vld [vmem:[%s7520_s4 + $0x1] ss:$0 sm:$0xff] }
 0x11e   : > { %7557 = vst [vmem:[#allocation9_spill] sm:$0xff] %v6103_v17  ;;  %v6107_v21 = vadd.f32 %v445_v20, %v344_v16  ;;  %v6285_v20 = vld [vmem:[%s7520_s4 + $0x2] ss:$0 sm:$0xff] }
 0x11f   : > { %7558 = vst [vmem:[#allocation10_spill] sm:$0xff] %v6105_v19  ;;  %v6115_v25 = vpack.c.bf16 %v6105_v19, %v6101_v14 }
 0x120   : > { %7559 = vst [vmem:[#allocation11_spill] sm:$0xff] %v6107_v21  ;;  %v6111_v22 = vpack.c.bf16 %v6107_v21, %v6103_v17 }
 0x122   : > { %v5073_v26 = vpop.f32.mrb[4].mxu0  ;;  %5075 = vmatprep.subr.bf16.mxu1 %v6111_v22  ;;  %5091 = vmatprep.subr.bf16.mxu0 %v6111_v22 }
 0x123   : > { %v6119_v28 = vadd.f32 %v5073_v26, %v349_v23  ;;  %v458_v29 = vpop.f32.mrb[5].mxu0  ;;  %5076 = vmatpush3.bf16.msra.mxu1 %v6111_v22  ;;  %5092 = vmatpush3.bf16.msra.mxu0 %v6111_v22 }
 0x124   : > { %v6123_v31 = vadd.f32 %v458_v29, %v347_v24  ;;  %v5074_v32 = vpop.f32.mrb[6].mxu0  ;;  %5077 = vmatprep.subr.bf16.mxu1 %v6115_v25  ;;  %5093 = vmatprep.subr.bf16.mxu0 %v6115_v25  ;;  %v5655_v29 = vld [vmem:[#allocation2 + $0x40] sm:$0xff]  }
 0x125   : > { %7560 = vst [vmem:[#allocation12_spill] sm:$0xff] %v6119_v28  ;;  %v6127_v33 = vadd.f32 %v5074_v32, %v350_v27  ;;  %v461_v34 = vpop.f32.mrb[7].mxu0 }
 0x126   : > { %7561 = vst [vmem:[#allocation13_spill] sm:$0xff] %v6123_v31  ;;  %v6129_v35 = vadd.f32 %v461_v34, %v348_v30 }
 0x127   : > { %7562 = vst [vmem:[#allocation14_spill] sm:$0xff] %v6127_v33  ;;  %5078 = vmatpush3.bf16.msra.mxu1 %v6115_v25  ;;  %5094 = vmatpush3.bf16.msra.mxu0 %v6115_v25  ;;  %v6139_v37 = vpack.c.bf16 %v6127_v33, %v6119_v28  ;;  %v7539_v28 = vmov -13.815511  }
 0x128   : > { %7563 = vst [vmem:[#allocation15_spill] sm:$0xff] %v6129_v35  ;;  %v6135_v36 = vpack.c.bf16 %v6129_v35, %v6123_v31 }
 0x12a   : > { %5079 = vmatprep.subr.bf16.mxu1 %v6135_v36  ;;  %5095 = vmatprep.subr.bf16.mxu0 %v6135_v36 }
 0x12b   : > { %5080 = vmatpush3.bf16.msra.mxu1 %v6135_v36  ;;  %5096 = vmatpush3.bf16.msra.mxu0 %v6135_v36 }
 0x12c   : > { %5081 = vmatprep.subr.bf16.mxu1 %v6139_v37  ;;  %5097 = vmatprep.subr.bf16.mxu0 %v6139_v37 }
 0x12f   : > { %5082 = vmatpush3.bf16.msra.mxu1 %v6139_v37  ;;  %5098 = vmatpush3.bf16.msra.mxu0 %v6139_v37 }
 0x130   : > { %5107 = vmatprep.subr.bf16.mxu1 %v5639_v38  ;;  %5123 = vmatprep.subr.bf16.mxu0 %v6147_v39 }
 0x132   : > { %5084 = vmatmul.mubr.msk.bf16.vlgmr.msra.gmra.mrb[0].mxu1 %vm395_vm0, %v5637_v40  ;;  %5100 = vmatmul.mubr.msk.bf16.vlgmr.msra.gmra.mrb[8].mxu0 %vm395_vm0, %v5638_v41 }
 0x133   : > { %5108 = vmatpush3.bf16.msra.mxu1 %v5639_v38  ;;  %5124 = vmatpush3.bf16.msra.mxu0 %v6147_v39 }
 0x134   : > { %5109 = vmatprep.subr.bf16.mxu1 %v5641_v42  ;;  %5125 = vmatprep.subr.bf16.mxu0 %v6158_v43 }
 0x135   : > { %5087 = vmatprep.mubr.msk.bf16.mxu1 %vm395_vm0, %v5643_v44  ;;  %5103 = vmatprep.mubr.msk.bf16.mxu0 %vm395_vm0, %v5644_v45 }
 0x137   : > { %5110 = vmatpush3.bf16.msra.mxu1 %v5641_v42  ;;  %5126 = vmatpush3.bf16.msra.mxu0 %v6158_v43 }
 0x138   : > { %5111 = vmatprep.subr.bf16.mxu1 %v5647_v46  ;;  %5127 = vmatprep.subr.bf16.mxu0 %v6170_v47 }
 0x13a   : > { %5088 = vmatmul.mubr.msk.bf16.gmra.mrb[4].mxu1 %vm395_vm0, %v5645_v48  ;;  %5104 = vmatmul.mubr.msk.bf16.gmra.mrb[12].mxu0 %vm395_vm0, %v5646_v49 }
 0x13b   : > { %5112 = vmatpush3.bf16.msra.mxu1 %v5647_v46  ;;  %5115 = vmatprep.mubr.msk.bf16.mxu1 %vm395_vm0, %v6111_v22  ;;  %v5656_v46 = vld [vmem:[#allocation2 + $0x48] sm:$0xff]  }
 0x13c   : > { %5128 = vmatpush3.bf16.msra.mxu0 %v6170_v47  ;;  %5131 = vmatprep.mubr.msk.bf16.mxu0 %vm395_vm0, %v6111_v22 }
 0x13d   : > { %5113 = vmatprep.subr.bf16.mxu1 %v5649_v50  ;;  %5129 = vmatprep.subr.bf16.mxu0 %v6182_v51 }
 0x13f   : > { %5114 = vmatpush3.bf16.msra.mxu1 %v5649_v50 }
 0x140   : > { %5130 = vmatpush3.bf16.msra.mxu0 %v6182_v51  ;;  %5139 = vmatprep.subr.bf16.mxu1 %v5651_v52 }
 0x141   : > { %5155 = vmatprep.subr.bf16.mxu0 %v6147_v39 }
 0x142   : > { %5116 = vmatmul.mubr.msk.bf16.vlgmr.msra.gmra.mrb[8].mxu1 %vm395_vm0, %v6115_v25 }
 0x143   : > { %5132 = vmatmul.mubr.msk.bf16.vlgmr.msra.gmra.mrb[16].mxu0 %vm395_vm0, %v6115_v25  ;;  %5119 = vmatprep.mubr.msk.bf16.mxu1 %vm395_vm0, %v6135_v36 }
 0x144   : > { %5135 = vmatprep.mubr.msk.bf16.mxu0 %vm395_vm0, %v6135_v36  ;;  %5140 = vmatpush3.bf16.msra.mxu1 %v5651_v52 }
 0x145   : > { %5141 = vmatprep.subr.bf16.mxu1 %v6193_v53  ;;  %5156 = vmatpush3.bf16.msra.mxu0 %v6147_v39 }
 0x146   : > { %5157 = vmatprep.subr.bf16.mxu0 %v6158_v43 }
 0x148   : > { %5142 = vmatpush3.bf16.msra.mxu1 %v6193_v53 }
 0x149   : > { %5143 = vmatprep.subr.bf16.mxu1 %v6205_v54  ;;  %5158 = vmatpush3.bf16.msra.mxu0 %v6158_v43 }
 0x14a   : > { %5120 = vmatmul.mubr.msk.bf16.gmra.mrb[12].mxu1 %vm395_vm0, %v6139_v37  ;;  %5159 = vmatprep.subr.bf16.mxu0 %v6170_v47 }
 0x14b   : > { %5136 = vmatmul.mubr.msk.bf16.gmra.mrb[20].mxu0 %vm395_vm0, %v6139_v37  ;;  %5147 = vmatprep.mubr.msk.bf16.mxu1 %vm395_vm0, %v6111_v22 }
 0x14c   : > { %5144 = vmatpush3.bf16.msra.mxu1 %v6205_v54 }
 0x14d   : > { %5145 = vmatprep.subr.bf16.mxu1 %v6211_v55  ;;  %5160 = vmatpush3.bf16.msra.mxu0 %v6170_v47 }
 0x14e   : > { %5161 = vmatprep.subr.bf16.mxu0 %v6182_v51 }
 0x150   : > { %5146 = vmatpush3.bf16.msra.mxu1 %v6211_v55 }
 0x151   : > { %5171 = vmatprep.subr.bf16.mxu1 %v5651_v52  ;;  %5162 = vmatpush3.bf16.msra.mxu0 %v6182_v51 }
 0x152   : > { %5187 = vmatprep.subr.bf16.mxu0 %v6147_v39 }
 0x153   : > { %5148 = vmatmul.mubr.msk.bf16.vlgmr.msra.gmra.mrb[16].mxu1 %vm395_vm0, %v6115_v25 }
 0x154   : > { %5151 = vmatprep.mubr.msk.bf16.mxu1 %vm395_vm0, %v6135_v36  ;;  %5172 = vmatpush3.bf16.msra.mxu1 %v5651_v52 }
 0x155   : > { %5173 = vmatprep.subr.bf16.mxu1 %v6193_v53 }
 0x158   : > { %5174 = vmatpush3.bf16.msra.mxu1 %v6193_v53 }
 0x159   : > { %5175 = vmatprep.subr.bf16.mxu1 %v6205_v54 }
 0x15b   : > { %5152 = vmatmul.mubr.msk.bf16.gmra.mrb[20].mxu1 %vm395_vm0, %v6139_v37 }
 0x15c   : > { %5176 = vmatpush3.bf16.msra.mxu1 %v6205_v54 }
 0x15d   : > { %5177 = vmatprep.subr.bf16.mxu1 %v6211_v55 }
 0x160   : > { %5178 = vmatpush3.bf16.msra.mxu1 %v6211_v55 }
 0x161   : > { %5203 = vmatprep.subr.bf16.mxu1 %v5651_v52 }
 0x205   : > { %v5085_v56 = vpop.f32.mrb[0].mxu1  ;;  %v5101_v57 = vpop.f32.mrb[8].mxu0 }
 0x206   : > { %v640_v58 = vpop.f32.mrb[1].mxu1  ;;  %v741_v59 = vpop.f32.mrb[9].mxu0 }
 0x207   : > { %v5086_v60 = vpop.f32.mrb[2].mxu1  ;;  %v5102_v61 = vpop.f32.mrb[10].mxu0 }
 0x208   : > { %v6240_v62 = vpack.c.bf16 %v5086_v60, %v5085_v56  ;;  %v643_v63 = vpop.f32.mrb[3].mxu1  ;;  %v6242_v0 = vpack.c.bf16 %v5102_v61, %v5101_v57  ;;  %v744_v1 = vpop.f32.mrb[11].mxu0  ;;  %v5657_v56 = vld [vmem:[#allocation2 + $0x50] sm:$0xff]  }
 0x209   : > { %v6244_v2 = vpack.c.bf16 %v643_v63, %v640_v58  ;;  %v6246_v3 = vpack.c.bf16 %v744_v1, %v741_v59 }
 0x20b   : > { %5163 = vmatprep.mubr.msk.bf16.mxu0 %vm395_vm0, %v6244_v2  ;;  %5179 = vmatprep.mubr.msk.bf16.mxu1 %vm395_vm0, %v6244_v2 }
 0x20c   : > { %5164 = vmatmul.mubr.msk.bf16.vlgmr.msra.gmra.mrb[24].mxu0 %vm395_vm0, %v6240_v62  ;;  %5180 = vmatmul.mubr.msk.bf16.vlgmr.msra.gmra.mrb[24].mxu1 %vm395_vm0, %v6240_v62 }
 0x20d   : > { %v5089_v4 = vpop.f32.mrb[4].mxu1  ;;  %5188 = vmatpush3.bf16.msra.mxu0 %v6147_v39  ;;  %5204 = vmatpush3.bf16.msra.mxu1 %v5651_v52  ;;  %v5105_v5 = vpop.f32.mrb[12].mxu0 }
 0x20e   : > { %v656_v6 = vpop.f32.mrb[5].mxu1  ;;  %5189 = vmatprep.subr.bf16.mxu0 %v6158_v43  ;;  %5205 = vmatprep.subr.bf16.mxu1 %v6193_v53  ;;  %v757_v7 = vpop.f32.mrb[13].mxu0 }
 0x20f   : > { %v5090_v8 = vpop.f32.mrb[6].mxu1  ;;  %v5106_v9 = vpop.f32.mrb[14].mxu0 }
 0x210   : > { %v6259_v10 = vpack.c.bf16 %v5090_v8, %v5089_v4  ;;  %v659_v11 = vpop.f32.mrb[7].mxu1  ;;  %v6261_v12 = vpack.c.bf16 %v5106_v9, %v5105_v5  ;;  %v760_v13 = vpop.f32.mrb[15].mxu0 }
 0x211   : > { %v6263_v15 = vpack.c.bf16 %v659_v11, %v656_v6  ;;  %5190 = vmatpush3.bf16.msra.mxu0 %v6158_v43  ;;  %5206 = vmatpush3.bf16.msra.mxu1 %v6193_v53  ;;  %v6267_v16 = vpack.c.bf16 %v760_v13, %v757_v7 }
 0x212   : > { %5191 = vmatprep.subr.bf16.mxu0 %v6170_v47  ;;  %5207 = vmatprep.subr.bf16.mxu1 %v6205_v54 }
 0x213   : > { %5167 = vmatprep.mubr.msk.bf16.mxu0 %vm395_vm0, %v6263_v15  ;;  %5183 = vmatprep.mubr.msk.bf16.mxu1 %vm395_vm0, %v6263_v15 }
 0x214   : > { %5168 = vmatmul.mubr.msk.bf16.gmra.mrb[28].mxu0 %vm395_vm0, %v6259_v10  ;;  %5184 = vmatmul.mubr.msk.bf16.gmra.mrb[28].mxu1 %vm395_vm0, %v6259_v10 }
 0x215   : > { %v5117_v23 = vpop.f32.mrb[8].mxu1  ;;  %5192 = vmatpush3.bf16.msra.mxu0 %v6170_v47  ;;  %5208 = vmatpush3.bf16.msra.mxu1 %v6205_v54 }
 0x216   : > { %v6289_v24 = vadd.f32 %v5117_v23, %v4590_v18  ;;  %v5133_v26 = vpop.f32.mrb[16].mxu0  ;;  %v862_v27 = vpop.f32.mrb[9].mxu1  ;;  %5193 = vmatprep.subr.bf16.mxu0 %v6182_v51  ;;  %5209 = vmatprep.subr.bf16.mxu1 %v6211_v55 }
 0x217   : > { %v973_v30 = vadd.f32 %v5133_v26, %v6285_v20  ;;  %v6294_v32 = vadd.f32 %v4590_v18, %v862_v27  ;;  %v964_v34 = vpop.f32.mrb[17].mxu0  ;;  %v5118_v38 = vpop.f32.mrb[10].mxu1  ;;  %5195 = vmatprep.mubr.msk.bf16.mxu0 %vm395_vm0, %v6246_v3  ;;  %5211 = vmatprep.mubr.msk.bf16.mxu1 %vm395_vm0, %v6246_v3 }
 0x218   : > { %v965_v39 = vadd.f32 %v6285_v20, %v964_v34  ;;  %v5134_v40 = vpop.f32.mrb[18].mxu0  ;;  %v865_v41 = vpop.f32.mrb[11].mxu1  ;;  %v6304_v44 = vadd.f32 %v5118_v38, %v4590_v18 }
 0x219   : > { %v967_v42 = vpop.f32.mrb[19].mxu0  ;;  %5194 = vmatpush3.bf16.msra.mxu0 %v6182_v51  ;;  %5210 = vmatpush3.bf16.msra.mxu1 %v6211_v55  ;;  %v1778_v43 = vmul.f32 %v973_v30, %v6289_v24  ;;  %v976_v45 = vadd.f32 %v5134_v40, %v6285_v20  ;;  %v6311_v49 = vadd.f32 %v4590_v18, %v865_v41  ;;  %v5659_v41 = vld [vmem:[#allocation2 + $0x20] sm:$0xff]  }
 0x21a   : > { %5219 = vmatprep.subr.bf16.mxu0 %v5655_v29  ;;  %v1776_v48 = vmul.f32 %v965_v39, %v6294_v32  ;;  %v968_v51 = vadd.f32 %v6285_v20, %v967_v42 }
 0x21b   : > { %v1790_v47 = vsel %vm395_vm0, %v1778_v43, 0.0  ;;  %v1779_v55 = vmul.f32 %v976_v45, %v6304_v44 }
 0x21c   : > { %1791 = vadd.xlane.f32.xlu1 %v1790_v47  ;;  %5196 = vmatmul.mubr.msk.bf16.vlgmr.msra.gmra.mrb[32].mxu0 %vm395_vm0, %v6242_v0  ;;  %v1784_v61 = vsel %vm395_vm0, %v1776_v48, 0.0  ;;  %v1777_v13 = vmul.f32 %v968_v51, %v6311_v49  ;;  %v5661_v48 = vld [vmem:[#allocation2 + $0x30] sm:$0xff]  }
 0x21d   : > { %5212 = vmatmul.mubr.msk.bf16.vlgmr.msra.gmra.mrb[32].mxu1 %vm395_vm0, %v6242_v0  ;;  %v5121_v50 = vpop.f32.mrb[12].mxu1  ;;  %5220 = vmatpush3.bf16.msra.mxu0 %v5655_v29  ;;  %v1793_v11 = vsel %vm395_vm0, %v1779_v55, 0.0  ;;  %v5658_v29 = vld [vmem:[#allocation2 + $0x58] sm:$0xff]  }
 0x21e   : > { %v6316_v52 = vadd.f32 %v5121_v50, %v4590_v18  ;;  %v5137_v53 = vpop.f32.mrb[20].mxu0  ;;  %v878_v54 = vpop.f32.mrb[13].mxu1  ;;  %5221 = vmatprep.subr.bf16.mxu0 %v5656_v46  ;;  %5199 = vmatprep.mubr.msk.bf16.mxu0 %vm395_vm0, %v6267_v16  ;;  %v1787_v39 = vsel %vm395_vm0, %v1777_v13, 0.0 }
 0x21f   : > { %v989_v57 = vadd.f32 %v5137_v53, %v6285_v20  ;;  %v6322_v58 = vadd.f32 %v4590_v18, %v878_v54  ;;  %v980_v59 = vpop.f32.mrb[21].mxu0  ;;  %v5122_v60 = vpop.f32.mrb[14].mxu1  ;;  %5215 = vmatprep.mubr.msk.bf16.mxu1 %vm395_vm0, %v6267_v16  ;;  %v5662_v53 = vld [vmem:[#allocation2 + $0x38] sm:$0xff]   ;;  %v5665_v54 = vld [vmem:[#allocation2 + $0x70] sm:$0xff]  }
 0x220   : > { %v981_v63 = vadd.f32 %v6285_v20, %v980_v59  ;;  %v6328_v1 = vadd.f32 %v5122_v60, %v4590_v18  ;;  %v5138_v4 = vpop.f32.mrb[22].mxu0  ;;  %1785 = vadd.xlane.f32.xlu1 %v1784_v61  ;;  %v881_v5 = vpop.f32.mrb[15].mxu1 }
 0x221   : > { %v992_v6 = vadd.f32 %v5138_v4, %v6285_v20  ;;  %v983_v7 = vpop.f32.mrb[23].mxu0  ;;  %5222 = vmatpush3.bf16.msra.mxu0 %v5656_v46  ;;  %v1782_v8 = vmul.f32 %v989_v57, %v6316_v52  ;;  %v6332_v9 = vadd.f32 %v4590_v18, %v881_v5 }
 0x222   : > { %5223 = vmatprep.subr.bf16.mxu0 %v5657_v56  ;;  %v984_v23 = vadd.f32 %v6285_v20, %v983_v7  ;;  %v1780_v27 = vmul.f32 %v981_v63, %v6322_v58 }
 0x223   : > { %v1802_v26 = vsel %vm395_vm0, %v1782_v8, 0.0  ;;  %v6340_v30 = vmul.f32 %v992_v6, %v6328_v1 }
 0x224   : > { %1803 = vadd.xlane.f32.xlu0 %v1802_v26  ;;  %1794 = vadd.xlane.f32.xlu1 %v1793_v11  ;;  %v1796_v38 = vsel %vm395_vm0, %v1780_v27, 0.0  ;;  %v1781_v40 = vmul.f32 %v984_v23, %v6332_v9 }
 0x225   : > { %5200 = vmatmul.mubr.msk.bf16.gmra.mrb[36].mxu0 %vm395_vm0, %v6261_v12  ;;  %5216 = vmatmul.mubr.msk.bf16.gmra.mrb[36].mxu1 %vm395_vm0, %v6261_v12 }
 0x226   : > { %v6346_v18 = vpop.f32.mrb[16].mxu1  ;;  %5224 = vmatpush3.bf16.msra.mxu0 %v5657_v56  ;;  %5227 = vmatprep.mubr.msk.bf16.mxu0 %vm395_vm0, %v6111_v22  ;;  %v1799_v45 = vsel %vm395_vm0, %v1781_v40, 0.0  ;;  %v5660_v22 = vld [vmem:[#allocation2 + $0x28] sm:$0xff]  }
 0x227   : > { %v6350_v34 = vpop.f32.mrb[17].mxu1  ;;  %5225 = vmatprep.subr.bf16.mxu0 %v5658_v29 }
 0x228   : > { %v6355_v42 = vpop.f32.mrb[18].mxu1  ;;  %1797 = vadd.xlane.f32.xlu0 %v1796_v38  ;;  %1788 = vadd.xlane.f32.xlu1 %v1787_v39 }
 0x229   : > { %v6357_v43 = vpop.f32.mrb[19].mxu1 }
 0x22a   : > { %5226 = vmatpush3.bf16.msra.mxu0 %v5658_v29 }
 0x22b   : > { %5235 = vmatprep.subr.bf16.mxu0 %v5659_v41 }
 0x22c   : > { %1800 = vadd.xlane.f32.xlu1 %v1799_v45 }
 0x22d   : > { %5228 = vmatmul.mubr.msk.bf16.vlgmr.msra.gmra.mrb[40].mxu0 %vm395_vm0, %v6115_v25  ;;  %v5663_v25 = vld [vmem:[#allocation2 + $0x60] sm:$0xff]  }
 0x22e   : > { %v6362_v46 = vpop.f32.mrb[20].mxu1  ;;  %5231 = vmatprep.mubr.msk.bf16.mxu0 %vm395_vm0, %v6135_v36  ;;  %5236 = vmatpush3.bf16.msra.mxu0 %v5659_v41  ;;  %v5664_v36 = vld [vmem:[#allocation2 + $0x68] sm:$0xff]  }
 0x22f   : > { %7564 = vst [vmem:[#allocation16_spill] sm:$0xff] %v6362_v46  ;;  %v6366_v47 = vpop.f32.mrb[21].mxu1  ;;  %5237 = vmatprep.subr.bf16.mxu0 %v5660_v22 }
 0x230   : > { %v6368_v50 = vpop.f32.mrb[22].mxu1 }
 0x231   : > { %v6370_v51 = vpop.f32.mrb[23].mxu1 }
 0x232   : > { %5238 = vmatpush3.bf16.msra.mxu0 %v5660_v22 }
 0x233   : > { %5239 = vmatprep.subr.bf16.mxu0 %v5661_v48 }
 0x235   : > { %5232 = vmatmul.mubr.msk.bf16.gmra.mrb[44].mxu0 %vm395_vm0, %v6139_v37  ;;  %v5666_v37 = vld [vmem:[#allocation2 + $0x78] sm:$0xff]  }
 0x236   : > { %5240 = vmatpush3.bf16.msra.mxu0 %v5661_v48  ;;  %5243 = vmatprep.mubr.msk.bf16.mxu0 %vm395_vm0, %v6244_v2 }
 0x237   : > { %5241 = vmatprep.subr.bf16.mxu0 %v5662_v53 }
 0x23a   : > { %5242 = vmatpush3.bf16.msra.mxu0 %v5662_v53 }
 0x23b   : > { %5251 = vmatprep.subr.bf16.mxu0 %v5663_v25 }
 0x23d   : > { %5244 = vmatmul.mubr.msk.bf16.vlgmr.msra.gmra.mrb[40].mxu0 %vm395_vm0, %v6240_v62  ;;  %v318_v62 = vlaneseq }
 0x23e   : > { %5247 = vmatprep.mubr.msk.bf16.mxu0 %vm395_vm0, %v6263_v15  ;;  %5252 = vmatpush3.bf16.msra.mxu0 %v5663_v25 }
 0x23f   : > { %5253 = vmatprep.subr.bf16.mxu0 %v5664_v36  ;;  %v6390_v2 = vshrl.u32 %v318_v62, 7 }
 0x241   : > { %7565 = vst [vmem:[#allocation17_spill] sm:$0xff] %v6390_v2  ;;  %v6424_v39 = vadd.s32 56, %v6390_v2 }
 0x242   : > { %5254 = vmatpush3.bf16.msra.mxu0 %v5664_v36 }
 0x243   : > { %5255 = vmatprep.subr.bf16.mxu0 %v5665_v54  ;;  %7567 = vst [vmem:[#allocation19_spill] sm:$0xff] %v6424_v39 }
 0x245   : > { %5248 = vmatmul.mubr.msk.bf16.gmra.mrb[44].mxu0 %vm395_vm0, %v6259_v10  ;;  %v6393_v10 = vadd.s32 4294967295, %v6390_v2 }
 0x246   : > { %5256 = vmatpush3.bf16.msra.mxu0 %v5665_v54  ;;  %5259 = vmatprep.mubr.msk.bf16.mxu0 %vm395_vm0, %v6246_v3  ;;  %v7527_v3 = vmov 0.0  }
 0x247   : > { %5257 = vmatprep.subr.bf16.mxu0 %v5666_v37  ;;  %vm485_vm1 = vcmp.ge.s32.totalorder %v6393_v10, 0 }
 0x248   : > { %v4564_v15 = vsel %vm485_vm1, 1.0, %v7527_v3  ;;  %v541_v35 = vsel %vm485_vm1, 9.999995e-07, %v7539_v28 }
 0x24a   : > { %5258 = vmatpush3.bf16.msra.mxu0 %v5666_v37 }
 0x24d   : > { %5260 = vmatmul.mubr.msk.bf16.vlgmr.msra.gmra.mrb[40].mxu0 %vm395_vm0, %v6242_v0  ;;  %v6402_v0 = vld [vmem:[%s7520_s4 + $0x3] ss:$0 sm:$0xff] }
 0x24e   : > { %5263 = vmatprep.mubr.msk.bf16.mxu0 %vm395_vm0, %v6267_v16  ;;  %v1182_v16 = vmul.f32 %v6402_v0, %v4564_v15 }
 0x255   : > { %5264 = vmatmul.mubr.msk.bf16.gmra.mrb[44].mxu0 %vm395_vm0, %v6261_v12  ;;  %v1097_v12 = vmul.f32 %v6285_v20, %v4564_v15 }
 0x2df   : > { %v5165_v55 = vpop.f32.mrb[24].mxu0  ;;  %v6406_v56 = vpop.f32.mrb[24].mxu1 }
 0x2e0   : > { %v1160_v57 = vadd.f32 %v5165_v55, %v6285_v20  ;;  %v1151_v59 = vpop.f32.mrb[25].mxu0  ;;  %v1224_v60 = vpop.f32.mrb[25].mxu1 }
 0x2e1   : > { %v1152_v61 = vadd.f32 %v1151_v59, %v1097_v12  ;;  %v6409_v63 = vadd.f32 %v1224_v60, %v1182_v16  ;;  %v5166_v4 = vpop.f32.mrb[26].mxu0  ;;  %v6411_v5 = vpop.f32.mrb[26].mxu1  ;;  %v6440_v16 = vadd.s32 1, %v6424_v39 }
 0x2e2   : > { %v1154_v6 = vpop.f32.mrb[27].mxu0  ;;  %v6413_v7 = vpop.f32.mrb[27].mxu1  ;;  %v1730_v8 = vmul.f32 %v1160_v57, %v6289_v24  ;;  %v1163_v11 = vadd.f32 %v5166_v4, %v6285_v20 }
 0x2e3   : > { %v1728_v23 = vmul.f32 %v1152_v61, %v6294_v32  ;;  %v1155_v26 = vadd.f32 %v6285_v20, %v1154_v6  ;;  %vm508_vm2 = vcmp.lt.s32.totalorder %v6440_v16, 64 }
 0x2e4   : > { %v1742_v13 = vsel %vm395_vm0, %v1730_v8, 0.0  ;;  %v1731_v38 = vmul.f32 %v1163_v11, %v6304_v44 }
 0x2e5   : > { %1743 = vadd.xlane.f32.xlu0 %v1742_v13  ;;  %v1736_v22 = vsel %vm395_vm0, %v1728_v23, 0.0  ;;  %v1729_v12 = vmul.f32 %v1155_v26, %v6311_v49 }
 0x2e6   : > { %v1745_v15 = vsel %vm395_vm0, %v1731_v38, 0.0 }
 0x2e7   : > { %v5169_v27 = vpop.f32.mrb[28].mxu0  ;;  %v6420_v29 = vpop.f32.mrb[28].mxu1  ;;  %v1739_v11 = vsel %vm395_vm0, %v1729_v12, 0.0 }
 0x2e8   : > { %7566 = vst [vmem:[#allocation18_spill] sm:$0xff] %v6420_v29  ;;  %v1176_v40 = vadd.f32 %v5169_v27, %v6285_v20  ;;  %v1167_v41 = vpop.f32.mrb[29].mxu0  ;;  %v6427_v45 = vpop.f32.mrb[29].mxu1 }
 0x2e9   : > { %v1168_v48 = vadd.f32 %v6285_v20, %v1167_v41  ;;  %1737 = vadd.xlane.f32.xlu0 %v1736_v22  ;;  %v5170_v53 = vpop.f32.mrb[30].mxu0  ;;  %v6431_v25 = vpop.f32.mrb[30].mxu1 }
 0x2ea   : > { %7568 = vst [vmem:[#allocation20_spill] sm:$0xff] %v6431_v25  ;;  %v1179_v36 = vadd.f32 %v5170_v53, %v6285_v20  ;;  %v1170_v54 = vpop.f32.mrb[31].mxu0  ;;  %v6434_v37 = vpop.f32.mrb[31].mxu1  ;;  %v1734_v62 = vmul.f32 %v1176_v40, %v6316_v52  ;;  %v4565_v53 = vsel %vm508_vm2, 1.0, %v7527_v3 }
 0x2eb   : > { %v1171_v55 = vadd.f32 %v6285_v20, %v1170_v54  ;;  %v1732_v59 = vmul.f32 %v1168_v48, %v6322_v58 }
 0x2ec   : > { %v1754_v57 = vsel %vm395_vm0, %v1734_v62, 0.0  ;;  %v1735_v60 = vmul.f32 %v1179_v36, %v6328_v1 }
 0x2ed   : > { %1746 = vadd.xlane.f32.xlu0 %v1745_v15  ;;  %1755 = vadd.xlane.f32.xlu1 %v1754_v57  ;;  %v1748_v13 = vsel %vm395_vm0, %v1732_v59, 0.0  ;;  %v1733_v23 = vmul.f32 %v1171_v55, %v6332_v9  ;;  %v1262_v57 = vmul.f32 %v6285_v20, %v4565_v53  ;;  %v1347_v59 = vmul.f32 %v6402_v0, %v4565_v53 }
 0x2ef   : > { %v5197_v61 = vpop.f32.mrb[32].mxu0  ;;  %v1751_v54 = vsel %vm395_vm0, %v1733_v23, 0.0 }
 0x2f0   : > { %v1318_v4 = vadd.f32 %v5197_v61, %v6285_v20  ;;  %v6448_v6 = vpop.f32.mrb[32].mxu1  ;;  %v1309_v8 = vpop.f32.mrb[33].mxu0 }
 0x2f1   : > { %v6453_v26 = vpop.f32.mrb[33].mxu1  ;;  %1740 = vadd.xlane.f32.xlu0 %v1739_v11  ;;  %v5198_v27 = vpop.f32.mrb[34].mxu0  ;;  %1749 = vadd.xlane.f32.xlu1 %v1748_v13  ;;  %v1310_v36 = vadd.f32 %v6285_v20, %v1309_v8 }
 0x2f2   : > { %v1321_v38 = vadd.f32 %v5198_v27, %v6285_v20  ;;  %v6456_v40 = vpop.f32.mrb[34].mxu1  ;;  %v1312_v41 = vpop.f32.mrb[35].mxu0  ;;  %v1826_v15 = vmul.f32 %v1318_v4, %v6289_v24 }
 0x2f3   : > { %v1313_v22 = vadd.f32 %v6285_v20, %v1312_v41  ;;  %v6459_v48 = vpop.f32.mrb[35].mxu1  ;;  %v1824_v13 = vmul.f32 %v1310_v36, %v6294_v32 }
 0x2f4   : > { %v1827_v62 = vmul.f32 %v1321_v38, %v6304_v44  ;;  %v1838_v8 = vsel %vm395_vm0, %v1826_v15, 0.0 }
 0x2f5   : > { %1752 = vadd.xlane.f32.xlu0 %v1751_v54  ;;  %v1825_v55 = vmul.f32 %v1313_v22, %v6311_v49  ;;  %v1832_v32 = vsel %vm395_vm0, %v1824_v13, 0.0 }
 0x2f6   : > { %v1841_v12 = vsel %vm395_vm0, %v1827_v62, 0.0  ;;  %v1805_v62 = vsel %vm395_vm0, %v6340_v30, 0.0 }
 0x2f7   : > { %1842 = vadd.xlane.f32.xlu1 %v1841_v12  ;;  %v1835_v49 = vsel %vm395_vm0, %v1825_v55, 0.0  ;;  %v1757_v55 = vsel %vm395_vm0, %v1735_v60, 0.0 }
 0x2f8   : > { %v5201_v61 = vpop.f32.mrb[36].mxu0  ;;  %v6472_v11 = vpop.f32.mrb[36].mxu1 }
 0x2f9   : > { %7569 = vst [vmem:[#allocation21_spill] sm:$0xff] %v6472_v11  ;;  %v1325_v44 = vpop.f32.mrb[37].mxu0  ;;  %v6476_v23 = vpop.f32.mrb[37].mxu1  ;;  %1839 = vadd.xlane.f32.xlu0 %v1838_v8  ;;  %v1334_v12 = vadd.f32 %v5201_v61, %v6285_v20 }
 0x2fa   : > { %7570 = vst [vmem:[#allocation22_spill] sm:$0xff] %v6476_v23  ;;  %v5202_v24 = vpop.f32.mrb[38].mxu0  ;;  %v5218_v4 = vpop.f32.mrb[38].mxu1  ;;  %v1326_v53 = vadd.f32 %v6285_v20, %v1325_v44 }
 0x2fb   : > { %v1337_v27 = vadd.f32 %v5202_v24, %v1262_v57  ;;  %v6479_v38 = vadd.f32 %v5218_v4, %v1347_v59  ;;  %v1328_v41 = vpop.f32.mrb[39].mxu0  ;;  %v6481_v22 = vpop.f32.mrb[39].mxu1  ;;  %1836 = vadd.xlane.f32.xlu1 %v1835_v49  ;;  %v5667_v4 = vld [vmem:[#allocation2 + $0xe0] sm:$0xff]   ;;  %v5668_v49 = vld [vmem:[#allocation2 + $0xe8] sm:$0xff]  }
 0x2fc   : > { %v1329_v54 = vadd.f32 %v6285_v20, %v1328_v41  ;;  %v1828_v57 = vmul.f32 %v1326_v53, %v6322_v58  ;;  %5267 = vmatprep.subr.bf16.mxu1 %v5667_v4  ;;  %v5670_v41 = vld [vmem:[#allocation2 + $0xf8] sm:$0xff]   ;;  %v1792_v53 = vpop.xlane.xlu1 %1791 }
 0x2fd   : > { %7571 = vst [vmem:[#allocation23_spill] sm:$0xff] %v6479_v38  ;;  %1833 = vadd.xlane.f32.xlu0 %v1832_v32  ;;  %v1831_v36 = vmul.f32 %v1337_v27, %v6328_v1  ;;  %v1830_v1 = vmul.f32 %v1334_v12, %v6316_v52  ;;  %5268 = vmatpush3.bf16.msra.mxu1 %v5667_v4  ;;  %v5669_v27 = vld [vmem:[#allocation2 + $0xf0] sm:$0xff]   ;;  %v6514_v32 = vpop.xlane.xlu0 %1803 }
 0x2fe   : > { %v1829_v15 = vmul.f32 %v1329_v54, %v6332_v9  ;;  %v1844_v8 = vsel %vm395_vm0, %v1828_v57, 0.0  ;;  %5269 = vmatprep.subr.bf16.mxu1 %v5668_v49 }
 0x2ff   : > { %1806 = vadd.xlane.f32.xlu1 %v1805_v62  ;;  %v1853_v30 = vsel %vm395_vm0, %v1831_v36, 0.0  ;;  %v1850_v9 = vsel %vm395_vm0, %v1830_v1, 0.0 }
 0x300   : > { %v1847_v59 = vsel %vm395_vm0, %v1829_v15, 0.0  ;;  %v1786_v54 = vpop.xlane.xlu1 %1785 }
 0x301   : > { %1758 = vadd.xlane.f32.xlu0 %v1757_v55  ;;  %5270 = vmatpush3.bf16.msra.mxu1 %v5668_v49  ;;  %v1798_v62 = vpop.xlane.xlu0 %1797  ;;  %v1808_v3 = vmul.f32 0.125, %v1786_v54 }
 0x302   : > { %5271 = vmatprep.subr.bf16.mxu1 %v5669_v27  ;;  %v1812_v2 = vmul.f32 0.125, %v1798_v62 }
 0x303   : > { %1848 = vadd.xlane.f32.xlu1 %v1847_v59 }
 0x304   : > { %v1795_v36 = vpop.xlane.xlu1 %1794 }
 0x305   : > { %1845 = vadd.xlane.f32.xlu0 %v1844_v8  ;;  %5272 = vmatpush3.bf16.msra.mxu1 %v5669_v27  ;;  %v1811_v4 = vmul.f32 0.125, %v1795_v36  ;;  %v1810_v27 = vmul.f32 0.125, %v1792_v53 }
 0x306   : > { %5273 = vmatprep.subr.bf16.mxu1 %v5670_v41 }
 0x307   : > { %1854 = vadd.xlane.f32.xlu1 %v1853_v30  ;;  %v1819_v17 = vadd.f32 9.999995e-07, %v1811_v4  ;;  %v1818_v36 = vadd.f32 9.999995e-07, %v1810_v27 }
 0x308   : > { %v1789_v15 = vpop.xlane.xlu1 %1788 }
 0x309   : > { %1851 = vadd.xlane.f32.xlu0 %v1850_v9  ;;  %5274 = vmatpush3.bf16.msra.mxu1 %v5670_v41  ;;  %v1809_v31 = vmul.f32 0.125, %v1789_v15 }
 0x30c   : > { %v1801_v55 = vpop.xlane.xlu1 %1800 }
 0x30d   : > { %v1813_v14 = vmul.f32 0.125, %v1801_v55 }
 0x30f   : > { %v6525_v15 = vadd.f32 9.999995e-07, %v1813_v14 }
 0x320   : > { %v6498_v20 = vpop.f32.mrb[40].mxu0 }
 0x321   : > { %v6500_v60 = vpop.f32.mrb[41].mxu0 }
 0x322   : > { %v6502_v58 = vpop.f32.mrb[42].mxu0 }
 0x323   : > { %v6504_v61 = vpop.f32.mrb[43].mxu0 }
 0x328   : > { %v6506_v13 = vpop.f32.mrb[44].mxu0 }
 0x329   : > { %7572 = vst [vmem:[#allocation24_spill] sm:$0xff] %v6506_v13  ;;  %v6508_v44 = vpop.f32.mrb[45].mxu0 }
 0x32a   : > { %7573 = vst [vmem:[#allocation25_spill] sm:$0xff] %v6508_v44  ;;  %v6510_v52 = vpop.f32.mrb[46].mxu0 }
 0x32b   : > { %7574 = vst [vmem:[#allocation26_spill] sm:$0xff] %v6510_v52  ;;  %v6512_v24 = vpop.f32.mrb[47].mxu0 }
 0x32c   : > { %7575 = vst [vmem:[#allocation27_spill] sm:$0xff] %v6512_v24 }
 0x372   : > { %v1744_v12 = vpop.xlane.xlu0 %1743 }
 0x373   : > { %v1762_v49 = vmul.f32 0.125, %v1744_v12  ;;  %v6519_v12 = vadd.f32 9.999995e-07, %v1808_v3 }
 0x376   : > { %v1738_v57 = vpop.xlane.xlu0 %1737 }
 0x377   : > { %v1760_v39 = vmul.f32 0.125, %v1738_v57  ;;  %v6523_v57 = vadd.f32 9.999995e-07, %v1812_v2 }
 0x379   : > { %v6521_v53 = vadd.f32 %v1760_v39, %v541_v35 }
 0x37a   : > { %v1747_v59 = vpop.xlane.xlu0 %1746  ;;  %v1756_v8 = vpop.xlane.xlu1 %1755 }
 0x37b   : > { %v1763_v30 = vmul.f32 0.125, %v1747_v59  ;;  %v1770_v59 = vadd.f32 9.999995e-07, %v1762_v49  ;;  %v1872_v35 = vmax.f32 %v6521_v53, %v6519_v12  ;;  %v6529_v3 = vmul.f32 0.125, %v1756_v8 }
 0x37d   : > { %v1771_v33 = vadd.f32 9.999995e-07, %v1763_v30  ;;  %v1817_v30 = vadd.f32 9.999995e-07, %v1809_v31  ;;  %v1874_v4 = vmax.f32 %v1770_v59, %v1818_v36 }
 0x37e   : > { %v1741_v1 = vpop.xlane.xlu0 %1740  ;;  %v1750_v9 = vpop.xlane.xlu1 %1749 }
 0x37f   : > { %v1761_v21 = vmul.f32 0.125, %v1741_v1  ;;  %v1764_v54 = vmul.f32 0.125, %v1750_v9  ;;  %v1875_v52 = vmax.f32 %v1771_v33, %v1819_v17  ;;  %v7576_v9 = vmov -13.815511  }
 0x380   : > { %v6536_v31 = vsel %vm508_vm2, 9.999995e-07, %v7576_v9 }
 0x381   : > { %v1769_v55 = vadd.f32 9.999995e-07, %v1761_v21  ;;  %v6531_v39 = vadd.f32 9.999995e-07, %v1764_v54 }
 0x382   : > { %v1753_v41 = vpop.xlane.xlu0 %1752 }
 0x384   : > { %v1843_v19 = vpop.xlane.xlu1 %1842 }
 0x385   : > { %v1859_v13 = vmul.f32 0.125, %v1843_v19 }
 0x386   : > { %v1840_v62 = vpop.xlane.xlu0 %1839 }
 0x387   : > { %v1867_v10 = vadd.f32 9.999995e-07, %v1859_v13  ;;  %v1858_v28 = vmul.f32 0.125, %v1840_v62 }
 0x388   : > { %v1837_v1 = vpop.xlane.xlu1 %1836 }
 0x389   : > { %v1883_v49 = vmax.f32 %v1875_v52, %v1867_v10  ;;  %v1866_v19 = vadd.f32 9.999995e-07, %v1858_v28  ;;  %v1857_v27 = vmul.f32 0.125, %v1837_v1  ;;  %v1873_v52 = vmax.f32 %v1769_v55, %v1817_v30 }
 0x38a   : > { %v1834_v2 = vpop.xlane.xlu0 %1833  ;;  %v1765_v28 = vmul.f32 0.125, %v1753_v41 }
 0x38b   : > { %v1891_v14 = vsub.f32 %v1771_v33, %v1883_v49  ;;  %v1915_v21 = vsub.f32 %v1819_v17, %v1883_v49  ;;  %v1939_v13 = vsub.f32 %v1867_v10, %v1883_v49  ;;  %v1882_v62 = vmax.f32 %v1874_v4, %v1866_v19 }
 0x38c   : > { %v1865_v1 = vadd.f32 9.999995e-07, %v1857_v27  ;;  %v1856_v11 = vmul.f32 0.125, %v1834_v2  ;;  %v1807_v38 = vpop.xlane.xlu1 %1806  ;;  %v1876_v33 = vmax.f32 %v6531_v39, %v6523_v57 }
 0x38d   : > { %v1902_v44 = vmul.f32 1.442695, %v1891_v14  ;;  %v1926_v8 = vmul.f32 1.442695, %v1915_v21  ;;  %v1950_v29 = vmul.f32 1.442695, %v1939_v13  ;;  %v1890_v54 = vsub.f32 %v1770_v59, %v1882_v62 }
 0x38e   : > { %v1914_v46 = vsub.f32 %v1818_v36, %v1882_v62  ;;  %v1938_v23 = vsub.f32 %v1866_v19, %v1882_v62  ;;  %v1881_v24 = vmax.f32 %v1873_v52, %v1865_v1  ;;  %v1864_v25 = vadd.f32 9.999995e-07, %v1856_v11  ;;  %v1759_v16 = vpop.xlane.xlu0 %1758 }
 0x38f   : > { %5719 = vpow2.f32 %v1902_v44  ;;  %v1900_v17 = vmul.f32 1.442695, %v1890_v54  ;;  %v1767_v10 = vmul.f32 0.125, %v1759_v16  ;;  %v1773_v36 = vadd.f32 9.999995e-07, %v1765_v28 }
 0x390   : > { %5721 = vpow2.f32 %v1926_v8  ;;  %v1924_v41 = vmul.f32 1.442695, %v1914_v46  ;;  %v1948_v4 = vmul.f32 1.442695, %v1938_v23  ;;  %v1889_v49 = vsub.f32 %v1769_v55, %v1881_v24  ;;  %v1849_v27 = vpop.xlane.xlu1 %1848 }
 0x391   : > { %5723 = vpow2.f32 %v1950_v29  ;;  %v1913_v2 = vsub.f32 %v1817_v30, %v1881_v24  ;;  %v1937_v14 = vsub.f32 %v1865_v1, %v1881_v24  ;;  %v1880_v59 = vmax.f32 %v1872_v35, %v1864_v25 }
 0x392   : > { %5725 = vpow2.f32 %v1900_v17  ;;  %v1898_v19 = vmul.f32 1.442695, %v1889_v49  ;;  %v1815_v11 = vmul.f32 0.125, %v1807_v38  ;;  %v1846_v21 = vpop.xlane.xlu0 %1845  ;;  %v6542_v55 = vadd.f32 9.999995e-07, %v1767_v10 }
 0x393   : > { %5727 = vpow2.f32 %v1924_v41  ;;  %v1922_v13 = vmul.f32 1.442695, %v1913_v2  ;;  %v1946_v62 = vmul.f32 1.442695, %v1937_v14  ;;  %v1888_v44 = vsub.f32 %v6521_v53, %v1880_v59 }
 0x394   : > { %5729 = vpow2.f32 %v1948_v4  ;;  %v1912_v46 = vsub.f32 %v6519_v12, %v1880_v59  ;;  %v1936_v23 = vsub.f32 %v1864_v25, %v1880_v59  ;;  %v1855_v29 = vpop.xlane.xlu1 %1854  ;;  %v1861_v30 = vmul.f32 0.125, %v1849_v27 }
 0x395   : > { %5731 = vpow2.f32 %v1898_v19  ;;  %v1896_v24 = vmul.f32 1.442695, %v1888_v44  ;;  %v1860_v35 = vmul.f32 0.125, %v1846_v21  ;;  %v1863_v28 = vmul.f32 0.125, %v1855_v29 }
 0x396   : > { %5733 = vpow2.f32 %v1922_v13  ;;  %v1920_v52 = vmul.f32 1.442695, %v1912_v46  ;;  %v1944_v38 = vmul.f32 1.442695, %v1936_v23  ;;  %v1852_v1 = vpop.xlane.xlu0 %1851  ;;  %v1877_v8 = vmax.f32 %v1773_v36, %v6525_v15 }
 0x397   : > { %5735 = vpow2.f32 %v1946_v62  ;;  %v1869_v53 = vadd.f32 9.999995e-07, %v1861_v30  ;;  %v1868_v54 = vadd.f32 9.999995e-07, %v1860_v35  ;;  %v1814_v12 = vmul.f32 0.125, %v6514_v32 }
 0x398   : > { %5737 = vpow2.f32 %v1896_v24  ;;  %v6546_v25 = vadd.f32 9.999995e-07, %v1815_v11  ;;  %v1862_v16 = vmul.f32 0.125, %v1852_v1  ;;  %v6551_v4 = vadd.f32 %v1863_v28, %v6536_v31  ;;  %v6585_v1 = vld [vmem:[#allocation2 + $0x100] sm:$0xff]  }
 0x399   : > { %v6548_v17 = vpop.eup %5719  ;;  %5739 = vpow2.f32 %v1920_v52  ;;  %v1885_v10 = vmax.f32 %v1877_v8, %v1869_v53  ;;  %v1884_v41 = vmax.f32 %v1876_v33, %v1868_v54  ;;  %v6556_v27 = vadd.f32 9.999995e-07, %v6529_v3  ;;  %5283 = vmatprep.subr.bf16.mxu1 %v6585_v1 }
 0x39a   : > { %v6553_v49 = vpop.eup %5721  ;;  %5741 = vpow2.f32 %v1944_v38  ;;  %v1879_v32 = vmax.f32 %v6542_v55, %v6546_v25  ;;  %v1822_v11 = vadd.f32 9.999995e-07, %v1814_v12  ;;  %v6568_v3 = vadd.f32 9.999995e-07, %v1862_v16 }
 0x39b   : > { %v6560_v2 = vpop.eup %5723  ;;  %v1963_v14 = vadd.f32 %v6553_v49, %v6548_v17  ;;  %v1893_v59 = vsub.f32 %v1773_v36, %v1885_v10  ;;  %v1917_v33 = vsub.f32 %v6525_v15, %v1885_v10  ;;  %v1941_v19 = vsub.f32 %v1869_v53, %v1885_v10 }
 0x39c   : > { %v6565_v31 = vpop.eup %5725  ;;  %v1892_v21 = vsub.f32 %v6531_v39, %v1884_v41  ;;  %v1887_v23 = vmax.f32 %v1879_v32, %v6551_v4  ;;  %v1916_v36 = vsub.f32 %v6523_v57, %v1884_v41  ;;  %v1878_v39 = vmax.f32 %v6556_v27, %v1822_v11 }
 0x39d   : > { %v6570_v13 = vpop.eup %5727  ;;  %v1971_v62 = vadd.f32 %v6560_v2, %v1963_v14  ;;  %v1906_v44 = vmul.f32 1.442695, %v1893_v59  ;;  %v1930_v46 = vmul.f32 1.442695, %v1917_v33  ;;  %v1954_v30 = vmul.f32 1.442695, %v1941_v19 }
 0x39e   : > { %v6574_v29 = vpop.eup %5729  ;;  %v1962_v15 = vadd.f32 %v6570_v13, %v6565_v31  ;;  %v1940_v35 = vsub.f32 %v1868_v54, %v1884_v41  ;;  %v1904_v28 = vmul.f32 1.442695, %v1892_v21  ;;  %v1895_v53 = vsub.f32 %v6542_v55, %v1887_v23 }
 0x39f   : > { %v6579_v24 = vpop.eup %5731  ;;  %5743 = vrcp.f32 %v1971_v62  ;;  %v1886_v12 = vmax.f32 %v1878_v39, %v6568_v3  ;;  %v1928_v54 = vmul.f32 1.442695, %v1916_v36  ;;  %v1919_v10 = vsub.f32 %v6546_v25, %v1887_v23 }
 0x3a0   : > { %v6582_v52 = vpop.eup %5733  ;;  %v1970_v38 = vadd.f32 %v6574_v29, %v1962_v15  ;;  %5745 = vpow2.f32 %v1906_v44  ;;  %v1952_v14 = vmul.f32 1.442695, %v1940_v35  ;;  %v1943_v33 = vsub.f32 %v6551_v4, %v1887_v23 }
 0x3a1   : > { %v6587_v8 = vpop.eup %5735  ;;  %v1961_v57 = vadd.f32 %v6582_v52, %v6579_v24  ;;  %5747 = vpow2.f32 %v1930_v46  ;;  %v1910_v19 = vmul.f32 1.442695, %v1895_v53  ;;  %v1894_v25 = vsub.f32 %v6556_v27, %v1886_v12 }
 0x3a2   : > { %v6593_v16 = vpop.eup %5737  ;;  %5749 = vrcp.f32 %v1970_v38  ;;  %v1918_v21 = vsub.f32 %v1822_v11, %v1886_v12  ;;  %v1075_v62 = vadd.f32 %v6346_v18, %v6402_v0  ;;  %v1934_v46 = vmul.f32 1.442695, %v1919_v10 }
 0x3a3   : > { %v6597_v41 = vpop.eup %5739  ;;  %v1969_v32 = vadd.f32 %v6587_v8, %v1961_v57  ;;  %5751 = vpow2.f32 %v1954_v30  ;;  %v6611_v15 = vadd.f32 %v6402_v0, %v6350_v34  ;;  %v1078_v36 = vadd.f32 %v6355_v42, %v6402_v0 }
 0x3a4   : > { %v6600_v59 = vpop.eup %5741  ;;  %v1960_v55 = vadd.f32 %v6597_v41, %v6593_v16  ;;  %5753 = vpow2.f32 %v1904_v28  ;;  %v1942_v4 = vsub.f32 %v6568_v3, %v1886_v12  ;;  %v1070_v27 = vadd.f32 %v6402_v0, %v6357_v43 }
 0x3a5   : > { %5755 = vrcp.f32 %v1969_v32  ;;  %v1233_v18 = vadd.f32 %v6406_v56, %v6402_v0  ;;  %v1958_v11 = vmul.f32 1.442695, %v1943_v33  ;;  %v1236_v39 = vadd.f32 %v6411_v5, %v6402_v0 }
 0x3a6   : > { %v1968_v44 = vadd.f32 %v6600_v59, %v1960_v55  ;;  %5757 = vpow2.f32 %v1928_v54  ;;  %v1908_v34 = vmul.f32 1.442695, %v1894_v25  ;;  %v1932_v30 = vmul.f32 1.442695, %v1918_v21 }
 0x3a7   : > { %5759 = vpow2.f32 %v1952_v14  ;;  %v1228_v56 = vadd.f32 %v6402_v0, %v6413_v7  ;;  %v1391_v5 = vadd.f32 %v6448_v6, %v6402_v0  ;;  %v1394_v28 = vadd.f32 %v6456_v40, %v6402_v0  ;;  %v6647_v40 = vld [vmem:[%s7520_s4] ss:$0 sm:$0xff] }
 0x3a8   : > { %5761 = vrcp.f32 %v1968_v44  ;;  %v1956_v57 = vmul.f32 1.442695, %v1942_v4 }
 0x3a9   : > { %v5744_v23 = vpop.eup %5743  ;;  %5763 = vpow2.f32 %v1910_v19 }
 0x3aa   : > { %v6622_v35 = vpop.eup %5745  ;;  %v1995_v42 = vmul.f32 %v5744_v23, %v6548_v17  ;;  %v2011_v3 = vmul.f32 %v5744_v23, %v6553_v49  ;;  %v2035_v43 = vmul.f32 %v5744_v23, %v6560_v2  ;;  %5765 = vpow2.f32 %v1934_v46 }
 0x3ab   : > { %v6627_v38 = vpop.eup %5747  ;;  %5767 = vpow2.f32 %v1958_v11 }
 0x3ac   : > { %v5750_v53 = vpop.eup %5749  ;;  %v2003_v12 = vmul.f32 %v1995_v42, %v1236_v39  ;;  %v2019_v17 = vmul.f32 %v2011_v3, %v1078_v36  ;;  %v1965_v49 = vadd.f32 %v6627_v38, %v6622_v35  ;;  %5769 = vpow2.f32 %v1908_v34 }
 0x3ad   : > { %v6637_v2 = vpop.eup %5751  ;;  %v1994_v54 = vmul.f32 %v5750_v53, %v6565_v31  ;;  %v2010_v7 = vmul.f32 %v5750_v53, %v6570_v13  ;;  %v2034_v10 = vmul.f32 %v5750_v53, %v6574_v29  ;;  %v2043_v14 = vmul.f32 %v2035_v43, %v1394_v28 }
 0x3ae   : > { %v6642_v6 = vpop.eup %5753  ;;  %v2027_v32 = vadd.f32 %v2019_v17, %v2003_v12  ;;  %v1973_v55 = vadd.f32 %v6637_v2, %v1965_v49  ;;  %5771 = vpow2.f32 %v1932_v30  ;;  %v1723_v31 = vadd.f32 %v6502_v58, %v6647_v40 }
 0x3af   : > { %v5756_v33 = vpop.eup %5755  ;;  %v2002_v13 = vmul.f32 %v1994_v54, %v1233_v18  ;;  %v2018_v19 = vmul.f32 %v2010_v7, %v1075_v62  ;;  %5773 = vpow2.f32 %v1956_v57  ;;  %v2042_v11 = vmul.f32 %v2034_v10, %v1391_v5 }
 0x3b0   : > { %v6652_v29 = vpop.eup %5757  ;;  %v2051_v25 = vadd.f32 %v2043_v14, %v2027_v32  ;;  %v1993_v21 = vmul.f32 %v5756_v33, %v6579_v24  ;;  %v2009_v44 = vmul.f32 %v5756_v33, %v6582_v52  ;;  %v2033_v46 = vmul.f32 %v5756_v33, %v6587_v8 }
 0x3b1   : > { %v6657_v36 = vpop.eup %5759  ;;  %v2026_v4 = vadd.f32 %v2018_v19, %v2002_v13  ;;  %5775 = vrcp.f32 %v1973_v55  ;;  %v1964_v58 = vadd.f32 %v6652_v29, %v6642_v6  ;;  %v1386_v62 = vadd.f32 %v6402_v0, %v6459_v48 }
 0x3b2   : > { %v5762_v18 = vpop.eup %5761  ;;  %v6663_v23 = vadd.f32 %v2051_v25, %v1723_v31  ;;  %v2001_v39 = vmul.f32 %v1993_v21, %v1228_v56  ;;  %v2017_v24 = vmul.f32 %v2009_v44, %v1070_v27  ;;  %v1722_v52 = vadd.f32 %v6498_v20, %v6647_v40 }
 0x3b3   : > { %v6665_v34 = vpop.eup %5763  ;;  %v2050_v8 = vadd.f32 %v2042_v11, %v2026_v4  ;;  %v1992_v30 = vmul.f32 %v5762_v18, %v6593_v16  ;;  %v2008_v42 = vmul.f32 %v5762_v18, %v6597_v41  ;;  %v2041_v43 = vmul.f32 %v2033_v46, %v1386_v62 }
 0x3b4   : > { %v5766_v3 = vpop.eup %5765  ;;  %v2032_v5 = vmul.f32 %v5762_v18, %v6600_v59  ;;  %v1972_v48 = vadd.f32 %v6657_v36, %v1964_v58  ;;  %v2025_v28 = vadd.f32 %v2017_v24, %v2001_v39  ;;  %v1383_v27 = vadd.f32 %v6402_v0, %v6453_v26  ;;  %v7577_v24 = vld [vmem:[#allocation20_spill] sm:$0xff] }
 0x3b5   : > { %v6675_v56 = vadd.f32 %v2050_v8, %v1722_v52  ;;  %v1967_v57 = vadd.f32 %v5766_v3, %v6665_v34  ;;  %v2000_v20 = vmul.f32 %v1992_v30, %v6409_v63  ;;  %v5768_v53 = vpop.eup %5767  ;;  %v1721_v16 = vadd.f32 %v6647_v40, %v6504_v61  ;;  %v7578_v52 = vld [vmem:[#allocation27_spill] sm:$0xff] }
 0x3b6   : > { %5777 = vrcp.f32 %v1972_v48  ;;  %v2016_v41 = vmul.f32 %v2008_v42, %v6611_v15  ;;  %v2049_v59 = vadd.f32 %v2041_v43, %v2025_v28  ;;  %v5770_v12 = vpop.eup %5769  ;;  %v2040_v54 = vmul.f32 %v2032_v5, %v1383_v27  ;;  %v7579_v43 = vld [vmem:[#allocation22_spill] sm:$0xff] }
 0x3b7   : > { %v1975_v17 = vadd.f32 %v5768_v53, %v1967_v57  ;;  %v1720_v63 = vadd.f32 %v6647_v40, %v6500_v60  ;;  %v1086_v61 = vadd.f32 %v6402_v0, %v6370_v51  ;;  %v1244_v15 = vadd.f32 %v6402_v0, %v6434_v37 }
 0x3b8   : > { %v5772_v49 = vpop.eup %5771  ;;  %v2024_v7 = vadd.f32 %v2016_v41, %v2000_v20  ;;  %v6682_v26 = vadd.f32 %v2049_v59, %v1721_v16  ;;  %v1402_v60 = vadd.f32 %v6402_v0, %v6481_v22  ;;  %v1241_v22 = vadd.f32 %v6402_v0, %v6427_v45  ;;  %v7580_v41 = vld [vmem:[#allocation16_spill] sm:$0xff] }
 0x3b9   : > { %v5774_v10 = vpop.eup %5773  ;;  %5779 = vrcp.f32 %v1975_v17  ;;  %v1966_v32 = vadd.f32 %v5772_v49, %v5770_v12  ;;  %v2067_v58 = vsel %vm395_vm0, %v6675_v56, 0.0  ;;  %v1725_v8 = vadd.f32 %v6647_v40, %v7578_v52 }
 0x3ba   : > { %v2048_v14 = vadd.f32 %v2040_v54, %v2024_v7  ;;  %v2065_v37 = vsel %vm395_vm0, %v6682_v26, 0.0  ;;  %v2069_v45 = vsel %vm395_vm0, %v6663_v23, 0.0  ;;  %v1399_v5 = vadd.f32 %v6402_v0, %v7579_v43 }
 0x3bb   : > { %v5776_v55 = vpop.eup %5775  ;;  %v1974_v33 = vadd.f32 %v5774_v10, %v1966_v32  ;;  %v1091_v59 = vadd.f32 %v7580_v41, %v6402_v0  ;;  %v7581_v32 = vld [vmem:[#allocation18_spill] sm:$0xff] }
 0x3bc   : > { %v1997_v31 = vmul.f32 %v5776_v55, %v6622_v35  ;;  %v2013_v13 = vmul.f32 %v5776_v55, %v6627_v38  ;;  %v2037_v19 = vmul.f32 %v5776_v55, %v6637_v2  ;;  %v6693_v25 = vadd.f32 %v2048_v14, %v1720_v63  ;;  %v7582_v14 = vld [vmem:[#allocation25_spill] sm:$0xff] }
 0x3bd   : > { %5781 = vrcp.f32 %v1974_v33  ;;  %v1083_v35 = vadd.f32 %v6402_v0, %v6366_v47  ;;  %v1094_v38 = vadd.f32 %v6368_v50, %v6402_v0  ;;  %v1252_v50 = vadd.f32 %v7577_v24, %v6402_v0 }
 0x3be   : > { %v2005_v21 = vmul.f32 %v1997_v31, %v1244_v15  ;;  %v2021_v44 = vmul.f32 %v2013_v13, %v1086_v61  ;;  %v2064_v51 = vsel %vm395_vm0, %v6693_v25, 0.0  ;;  %v2045_v11 = vmul.f32 %v2037_v19, %v1402_v60  ;;  %v7583_v15 = vld [vmem:[#allocation23_spill] sm:$0xff]  ;;  %v7584_v13 = vld [vmem:[#allocation21_spill] sm:$0xff] }
 0x3bf   : > { %v2066_v2 = vadd.f32 %v2065_v37, %v2064_v51  ;;  %v1249_v63 = vadd.f32 %v7581_v32, %v6402_v0  ;;  %v1724_v55 = vadd.f32 %v6647_v40, %v7582_v14  ;;  %v1407_v19 = vadd.f32 %v7584_v13, %v6402_v0 }
 0x3c0   : > { %v5778_v46 = vpop.eup %5777  ;;  %v2029_v4 = vadd.f32 %v2021_v44, %v2005_v21  ;;  %v7585_v21 = vld [vmem:[#allocation26_spill] sm:$0xff] }
 0x3c1   : > { %v1996_v18 = vmul.f32 %v5778_v46, %v6642_v6  ;;  %v2012_v62 = vmul.f32 %v5778_v46, %v6652_v29  ;;  %v2036_v39 = vmul.f32 %v5778_v46, %v6657_v36  ;;  %v2068_v47 = vadd.f32 %v2067_v58, %v2066_v2 }
 0x3c2   : > { %v2053_v30 = vadd.f32 %v2045_v11, %v2029_v4  ;;  %v1727_v44 = vadd.f32 %v7585_v21, %v6647_v40 }
 0x3c3   : > { %v5780_v42 = vpop.eup %5779  ;;  %v2004_v6 = vmul.f32 %v1996_v18, %v1241_v22  ;;  %v2020_v48 = vmul.f32 %v2012_v62, %v1083_v35  ;;  %v2070_v29 = vadd.f32 %v2069_v45, %v2068_v47  ;;  %v2044_v16 = vmul.f32 %v2036_v39, %v1399_v5 }
 0x3c4   : > { %v2061_v28 = vadd.f32 %v2053_v30, %v1725_v8  ;;  %v1999_v36 = vmul.f32 %v5780_v42, %v6665_v34  ;;  %v2015_v27 = vmul.f32 %v5780_v42, %v5766_v3  ;;  %v2039_v57 = vmul.f32 %v5780_v42, %v5768_v53 }
 0x3c5   : > { %v2028_v20 = vadd.f32 %v2020_v48, %v2004_v6 }
 0x3c6   : > { %v2007_v17 = vmul.f32 %v1999_v36, %v1252_v50  ;;  %v2023_v54 = vmul.f32 %v2015_v27, %v1094_v38  ;;  %v2047_v33 = vmul.f32 %v2039_v57, %v7583_v15 }
 0x3c7   : > { %v5782_v7 = vpop.eup %5781  ;;  %v2052_v61 = vadd.f32 %v2044_v16, %v2028_v20 }
 0x3c8   : > { %v2031_v34 = vadd.f32 %v2023_v54, %v2007_v17  ;;  %v1998_v3 = vmul.f32 %v5782_v7, %v5770_v12  ;;  %v2014_v53 = vmul.f32 %v5782_v7, %v5772_v49  ;;  %v2038_v31 = vmul.f32 %v5782_v7, %v5774_v10  ;;  %v7586_v49 = vld [vmem:[#allocation24_spill] sm:$0xff] }
 0x3c9   : > { %v2060_v60 = vadd.f32 %v2052_v61, %v1724_v55  ;;  %v2073_v12 = vsel %vm395_vm0, %v2061_v28, 0.0  ;;  %v1726_v10 = vadd.f32 %v7586_v49, %v6647_v40 }
 0x3ca   : > { %v2055_v51 = vadd.f32 %v2047_v33, %v2031_v34  ;;  %v2006_v37 = vmul.f32 %v1998_v3, %v1249_v63  ;;  %v2022_v35 = vmul.f32 %v2014_v53, %v1091_v59  ;;  %v2046_v22 = vmul.f32 %v2038_v31, %v1407_v19 }
 0x3cb   : > { %v2071_v38 = vsel %vm395_vm0, %v2060_v60, 0.0 }
 0x3cc   : > { %v2063_v2 = vadd.f32 %v2055_v51, %v1727_v44  ;;  %v2030_v46 = vadd.f32 %v2022_v35, %v2006_v37  ;;  %v2072_v4 = vadd.f32 %v2071_v38, %v2070_v29 }
 0x3ce   : > { %v2054_v11 = vadd.f32 %v2046_v22, %v2030_v46  ;;  %v2074_v0 = vadd.f32 %v2073_v12, %v2072_v4  ;;  %v2077_v39 = vsel %vm395_vm0, %v2063_v2, 0.0 }
 0x3d0   : > { %v2062_v58 = vadd.f32 %v2054_v11, %v1726_v10 }
 0x3d2   : > { %v2075_v18 = vsel %vm395_vm0, %v2062_v58, 0.0 }
 0x3d3   : > { %v2076_v62 = vadd.f32 %v2075_v18, %v2074_v0 }
 0x3d5   : > { %v2078_v47 = vadd.f32 %v2077_v39, %v2076_v62  ;;  %v5672_v62 = vld [vmem:[#allocation2 + $0x108] sm:$0xff]   ;;  %v5673_v39 = vld [vmem:[#allocation2 + $0x110] sm:$0xff]  }
 0x3d7   : > { %v2079_v24 = vrot.slane %v2078_v47, 4 }
 0x3d9   : > { %v2080_v50 = vadd.f32 %v2079_v24, %v2078_v47  ;;  %v5674_v47 = vld [vmem:[#allocation2 + $0x118] sm:$0xff]   ;;  %v4658_v24 = vld [vmem:[%s7520_s4 + $0x4] ss:$0 sm:$0xff] }
 0x3db   : > { %v2081_v52 = vrot.slane %v2080_v50, 2 }
 0x3dd   : > { %v2082_v8 = vadd.f32 %v2081_v52, %v2080_v50 }
 0x3df   : > { %v2083_v30 = vrot.slane %v2082_v8, 1 }
 0x3e1   : > { %v2084_v45 = vadd.f32 %v2083_v30, %v2082_v8 }
 0x3e3   : > { %v2086_v42 = vmul.f32 0.015625, %v2084_v45 }
 0x3e5   : > { %v2087_v43 = vsub.f32 %v6693_v25, %v2086_v42  ;;  %v2088_v40 = vsub.f32 %v6682_v26, %v2086_v42  ;;  %v2089_v5 = vsub.f32 %v6675_v56, %v2086_v42  ;;  %v2090_v6 = vsub.f32 %v6663_v23, %v2086_v42 }
 0x3e6   : > { %v2091_v48 = vsub.f32 %v2060_v60, %v2086_v42  ;;  %v2092_v29 = vsub.f32 %v2061_v28, %v2086_v42  ;;  %v2093_v36 = vsub.f32 %v2062_v58, %v2086_v42  ;;  %v2094_v27 = vsub.f32 %v2063_v2, %v2086_v42 }
 0x3e7   : > { %v2095_v57 = vmul.f32 %v2087_v43, %v2087_v43  ;;  %v2096_v20 = vmul.f32 %v2088_v40, %v2088_v40  ;;  %v2097_v16 = vmul.f32 %v2089_v5, %v2089_v5  ;;  %v2098_v41 = vmul.f32 %v2090_v6, %v2090_v6 }
 0x3e8   : > { %v2099_v25 = vmul.f32 %v2091_v48, %v2091_v48  ;;  %v2100_v56 = vmul.f32 %v2092_v29, %v2092_v29  ;;  %v2101_v28 = vmul.f32 %v2093_v36, %v2093_v36  ;;  %v2102_v55 = vmul.f32 %v2094_v27, %v2094_v27 }
 0x3e9   : > { %v2103_v59 = vsel %vm395_vm0, %v2095_v57, 0.0  ;;  %v2104_v17 = vsel %vm395_vm0, %v2096_v20, 0.0  ;;  %v2106_v26 = vsel %vm395_vm0, %v2097_v16, 0.0  ;;  %v2108_v23 = vsel %vm395_vm0, %v2098_v41, 0.0 }
 0x3ea   : > { %v2105_v54 = vadd.f32 %v2104_v17, %v2103_v59  ;;  %v2110_v63 = vsel %vm395_vm0, %v2099_v25, 0.0  ;;  %v2112_v61 = vsel %vm395_vm0, %v2100_v56, 0.0  ;;  %v2114_v33 = vsel %vm395_vm0, %v2101_v28, 0.0  ;;  %v5675_v28 = vld [vmem:[%s7518_s2 + $0x40] sm:$0xff]  }
 0x3eb   : > { %v2116_v3 = vsel %vm395_vm0, %v2102_v55, 0.0 }
 0x3ec   : > { %v2107_v7 = vadd.f32 %v2106_v26, %v2105_v54 }
 0x3ee   : > { %v2109_v32 = vadd.f32 %v2108_v23, %v2107_v7 }
 0x3f0   : > { %v2111_v14 = vadd.f32 %v2110_v63, %v2109_v32  ;;  %v5676_v63 = vld [vmem:[%s7518_s2 + $0x60] sm:$0xff]  }
 0x3f1   : > { %5323 = vmatprep.mubr.msk.bf16.mxu0 %vm395_vm0, %v5676_v63 }
 0x3f2   : > { %v2113_v15 = vadd.f32 %v2112_v61, %v2111_v14  ;;  %v4667_v14 = vld [vmem:[%s7520_s4 + $0x5] ss:$0 sm:$0xff] }
 0x3f4   : > { %v2115_v34 = vadd.f32 %v2114_v33, %v2113_v15 }
 0x3f6   : > { %v2117_v53 = vadd.f32 %v2116_v3, %v2115_v34 }
 0x3f8   : > { %v2118_v31 = vrot.slane %v2117_v53, 4 }
 0x3fa   : > { %v2119_v13 = vadd.f32 %v2118_v31, %v2117_v53 }
 0x3fc   : > { %v2120_v19 = vrot.slane %v2119_v13, 2 }
 0x3fe   : > { %v2121_v60 = vadd.f32 %v2120_v19, %v2119_v13  ;;  %v7587_v13 = vld [vmem:[#allocation9_spill] sm:$0xff] }
 0x400   : > { %v2122_v21 = vrot.slane %v2121_v60, 1 }
 0x402   : > { %v2123_v44 = vadd.f32 %v2122_v21, %v2121_v60  ;;  %v7589_v60 = vld [vmem:[#allocation10_spill] sm:$0xff] }
 0x404   : > { %v2124_v51 = vmul.f32 0.015625, %v2123_v44  ;;  %v7591_v44 = vld [vmem:[#allocation11_spill] sm:$0xff] }
 0x406   : > { %v2125_v37 = vadd.f32 1e-05, %v2124_v51 }
 0x408   : > { %5783 = vrsqrt.f32 %v2125_v37  ;;  %v7593_v37 = vld [vmem:[#allocation8_spill] sm:$0xff] }
 0x412   : > { %v5784_v35 = vpop.eup %5783 }
 0x413   : > { %v2127_v38 = vmul.f32 %v5784_v35, %v2087_v43  ;;  %v2128_v2 = vmul.f32 %v5784_v35, %v2088_v40  ;;  %v2129_v46 = vmul.f32 %v5784_v35, %v2089_v5  ;;  %v2130_v22 = vmul.f32 %v5784_v35, %v2090_v6 }
 0x414   : > { %v2131_v4 = vmul.f32 %v5784_v35, %v2091_v48  ;;  %v2132_v12 = vmul.f32 %v5784_v35, %v2092_v29  ;;  %v2133_v49 = vmul.f32 %v5784_v35, %v2093_v36  ;;  %v2134_v10 = vmul.f32 %v5784_v35, %v2094_v27 }
 0x415   : > { %v2135_v11 = vpack.c.bf16 %v2128_v2, %v2127_v38  ;;  %v2136_v0 = vpack.c.bf16 %v2130_v22, %v2129_v46 }
 0x416   : > { %v2137_v58 = vpack.c.bf16 %v2132_v12, %v2131_v4  ;;  %v2138_v18 = vpack.c.bf16 %v2134_v10, %v2133_v49 }
 0x417   : > { %5275 = vmatprep.mubr.msk.bf16.mxu1 %vm395_vm0, %v2135_v11 }
 0x418   : > { %5276 = vmatmul.mubr.msk.bf16.vlgmr.msra.gmra.mrb[40].mxu1 %vm395_vm0, %v2136_v0 }
 0x419   : > { %5279 = vmatprep.mubr.msk.bf16.mxu1 %vm395_vm0, %v2137_v58  ;;  %5284 = vmatpush3.bf16.msra.mxu1 %v6585_v1  ;;  %v7595_v58 = vld [vmem:[#allocation13_spill] sm:$0xff] }
 0x41a   : > { %5285 = vmatprep.subr.bf16.mxu1 %v5672_v62 }
 0x41d   : > { %5286 = vmatpush3.bf16.msra.mxu1 %v5672_v62  ;;  %v7597_v62 = vld [vmem:[#allocation14_spill] sm:$0xff] }
 0x41e   : > { %5287 = vmatprep.subr.bf16.mxu1 %v5673_v39 }
 0x420   : > { %5280 = vmatmul.mubr.msk.bf16.gmra.mrb[44].mxu1 %vm395_vm0, %v2138_v18 }
 0x421   : > { %5288 = vmatpush3.bf16.msra.mxu1 %v5673_v39 }
 0x422   : > { %5289 = vmatprep.subr.bf16.mxu1 %v5674_v47 }
 0x425   : > { %5290 = vmatpush3.bf16.msra.mxu1 %v5674_v47  ;;  %v7599_v47 = vld [vmem:[#allocation15_spill] sm:$0xff] }
 0x4eb   : > { %v5277_v50 = vpop.f32.mrb[40].mxu1 }
 0x4ec   : > { %v2232_v52 = vadd.f32 %v5277_v50, %v4658_v24  ;;  %v2223_v8 = vpop.f32.mrb[41].mxu1  ;;  %v7601_v50 = vld [vmem:[#allocation12_spill] sm:$0xff] }
 0x4ed   : > { %v2224_v30 = vadd.f32 %v4658_v24, %v2223_v8  ;;  %v5278_v45 = vpop.f32.mrb[42].mxu1 }
 0x4ee   : > { %v2235_v1 = vadd.f32 %v5278_v45, %v4658_v24  ;;  %v2226_v42 = vpop.f32.mrb[43].mxu1  ;;  %v2256_v40 = vmax.f32 %v2232_v52, 0.0  ;;  %v5679_v45 = vld [vmem:[#allocation2 + $0x180] sm:$0xff]  }
 0x4ef   : > { %v2227_v43 = vadd.f32 %v4658_v24, %v2226_v42  ;;  %v2254_v6 = vmax.f32 %v2224_v30, 0.0  ;;  %v5677_v42 = vld [vmem:[%s7518_s2 + $0x48] sm:$0xff]  }
 0x4f0   : > { %v2257_v5 = vmax.f32 %v2235_v1, 0.0  ;;  %v6827_v1 = vld [vmem:[#allocation2 + $0x1a0] sm:$0xff]  }
 0x4f1   : > { %v2255_v48 = vmax.f32 %v2227_v43, 0.0  ;;  %v5678_v43 = vld [vmem:[%s7518_s2 + $0x68] sm:$0xff]  }
 0x4f2   : > { %v2263_v29 = vpack.c.bf16 %v2257_v5, %v2256_v40  ;;  %v5681_v40 = vld [vmem:[#allocation2 + $0x188] sm:$0xff]  }
 0x4f3   : > { %v2262_v36 = vpack.c.bf16 %v2255_v48, %v2254_v6  ;;  %v5281_v27 = vpop.f32.mrb[44].mxu1  ;;  %v6838_v5 = vld [vmem:[#allocation2 + $0x1a8] sm:$0xff]   ;;  %v5683_v6 = vld [vmem:[%s7518_s2 + $0x50] sm:$0xff]  }
 0x4f4   : > { %v2248_v57 = vadd.f32 %v5281_v27, %v4658_v24  ;;  %v2239_v20 = vpop.f32.mrb[45].mxu1  ;;  %v5684_v48 = vld [vmem:[%s7518_s2 + $0x70] sm:$0xff]   ;;  %v5685_v27 = vld [vmem:[%s7518_s2 + $0x58] sm:$0xff]  }
 0x4f5   : > { %v2240_v16 = vadd.f32 %v4658_v24, %v2239_v20  ;;  %v5282_v41 = vpop.f32.mrb[46].mxu1  ;;  %5291 = vmatprep.mubr.msk.bf16.mxu1 %vm395_vm0, %v2262_v36  ;;  %v6850_v36 = vld [vmem:[#allocation2 + $0x1b0] sm:$0xff]   ;;  %v5689_v20 = vld [vmem:[#allocation2 + $0x198] sm:$0xff]  }
 0x4f6   : > { %v2251_v59 = vadd.f32 %v5282_v41, %v4658_v24  ;;  %v2242_v17 = vpop.f32.mrb[47].mxu1  ;;  %5292 = vmatmul.mubr.msk.bf16.vlgmr.msra.gmra.mrb[48].mxu1 %vm395_vm0, %v2263_v29  ;;  %v2260_v25 = vmax.f32 %v2248_v57, 0.0  ;;  %v5687_v29 = vld [vmem:[#allocation2 + $0x190] sm:$0xff]   ;;  %v5686_v57 = vld [vmem:[%s7518_s2 + $0x78] sm:$0xff]   ;;  %v5691_v41 = vld [vmem:[#allocation2 + $0x1c0] sm:$0xff]  }
 0x4f7   : > { %v2243_v54 = vadd.f32 %v4658_v24, %v2242_v17  ;;  %v2258_v7 = vmax.f32 %v2240_v16, 0.0  ;;  %v6862_v16 = vld [vmem:[#allocation2 + $0x1b8] sm:$0xff]   ;;  %v6885_v17 = vld [vmem:[#allocation2 + $0x1d0] sm:$0xff]  }
 0x4f8   : > { %v2261_v26 = vmax.f32 %v2251_v59, 0.0  ;;  %v6873_v59 = vld [vmem:[#allocation2 + $0x1c8] sm:$0xff]  }
 0x4f9   : > { %v2259_v56 = vmax.f32 %v2243_v54, 0.0  ;;  %v6891_v54 = vld [vmem:[#allocation2 + $0x1d8] sm:$0xff]  }
 0x4fa   : > { %v2265_v23 = vpack.c.bf16 %v2261_v26, %v2260_v25 }
 0x4fb   : > { %v2264_v32 = vpack.c.bf16 %v2259_v56, %v2258_v7 }
 0x4fd   : > { %5295 = vmatprep.mubr.msk.bf16.mxu1 %vm395_vm0, %v2264_v32 }
 0x4fe   : > { %5296 = vmatmul.mubr.msk.bf16.gmra.mrb[52].mxu1 %vm395_vm0, %v2265_v23 }
 0x4ff   : > { %5307 = vmatprep.mubr.msk.bf16.mxu1 %vm395_vm0, %v5675_v28 }
 0x5c9   : > { %v5293_v55 = vpop.f32.mrb[48].mxu1 }
 0x5ca   : > { %v2350_v61 = vpop.f32.mrb[49].mxu1  ;;  %v2359_v53 = vadd.f32 %v5293_v55, %v4667_v14 }
 0x5cb   : > { %v2351_v15 = vadd.f32 %v4667_v14, %v2350_v61  ;;  %v5294_v33 = vpop.f32.mrb[50].mxu1 }
 0x5cc   : > { %v2362_v34 = vadd.f32 %v5294_v33, %v4667_v14  ;;  %v2353_v3 = vpop.f32.mrb[51].mxu1  ;;  %v6783_v35 = vadd.f32 %v2359_v53, %v7593_v37 }
 0x5cd   : > { %v2354_v31 = vadd.f32 %v4667_v14, %v2353_v3  ;;  %v6774_v19 = vadd.f32 %v2351_v15, %v7587_v13 }
 0x5ce   : > { %v6777_v21 = vadd.f32 %v2362_v34, %v7589_v60  ;;  %7594 = vst [vmem:[#allocation16_spill] sm:$0xff] %v6783_v35 }
 0x5cf   : > { %7588 = vst [vmem:[#allocation20_spill] sm:$0xff] %v6774_v19  ;;  %v6780_v51 = vadd.f32 %v2354_v31, %v7591_v44 }
 0x5d0   : > { %7590 = vst [vmem:[#allocation27_spill] sm:$0xff] %v6777_v21  ;;  %v6791_v22 = vpack.c.bf16 %v6777_v21, %v6783_v35 }
 0x5d1   : > { %7592 = vst [vmem:[#allocation22_spill] sm:$0xff] %v6780_v51  ;;  %v6787_v38 = vpack.c.bf16 %v6780_v51, %v6774_v19  ;;  %v5297_v2 = vpop.f32.mrb[52].mxu1 }
 0x5d2   : > { %v2366_v46 = vpop.f32.mrb[53].mxu1  ;;  %v2375_v11 = vadd.f32 %v5297_v2, %v4667_v14 }
 0x5d3   : > { %v2367_v4 = vadd.f32 %v4667_v14, %v2366_v46  ;;  %v5298_v12 = vpop.f32.mrb[54].mxu1  ;;  %5299 = vmatprep.subr.bf16.mxu1 %v6787_v38  ;;  %5315 = vmatprep.subr.bf16.mxu0 %v6787_v38 }
 0x5d4   : > { %v2378_v49 = vadd.f32 %v5298_v12, %v4667_v14  ;;  %v2369_v10 = vpop.f32.mrb[55].mxu1  ;;  %5300 = vmatpush3.bf16.msra.mxu1 %v6787_v38  ;;  %5316 = vmatpush3.bf16.msra.mxu0 %v6787_v38  ;;  %v6811_v52 = vadd.f32 %v2375_v11, %v7601_v50  ;;  %v4718_v12 = vld [vmem:[%s7520_s4 + $0x7] ss:$0 sm:$0xff] }
 0x5d5   : > { %v2370_v0 = vadd.f32 %v4667_v14, %v2369_v10  ;;  %5301 = vmatprep.subr.bf16.mxu1 %v6791_v22  ;;  %5317 = vmatprep.subr.bf16.mxu0 %v6791_v22  ;;  %v6800_v18 = vadd.f32 %v2367_v4, %v7595_v58 }
 0x5d6   : > { %v6803_v39 = vadd.f32 %v2378_v49, %v7597_v62  ;;  %7602 = vst [vmem:[#allocation21_spill] sm:$0xff] %v6811_v52  ;;  %v6965_v49 = vld [vmem:[%s7520_s4 + $0x8] ss:$0 sm:$0xff]  ;;  %v5695_v62 = vld [vmem:[#allocation2 + $0x140] sm:$0xff]  }
 0x5d7   : > { %7596 = vst [vmem:[#allocation18_spill] sm:$0xff] %v6800_v18  ;;  %v6806_v24 = vadd.f32 %v2370_v0, %v7599_v47 }
 0x5d8   : > { %7598 = vst [vmem:[#allocation25_spill] sm:$0xff] %v6803_v39  ;;  %5302 = vmatpush3.bf16.msra.mxu1 %v6791_v22  ;;  %5318 = vmatpush3.bf16.msra.mxu0 %v6791_v22  ;;  %v6819_v30 = vpack.c.bf16 %v6803_v39, %v6811_v52 }
 0x5d9   : > { %7600 = vst [vmem:[#allocation23_spill] sm:$0xff] %v6806_v24  ;;  %v6815_v8 = vpack.c.bf16 %v6806_v24, %v6800_v18 }
 0x5db   : > { %5303 = vmatprep.subr.bf16.mxu1 %v6815_v8  ;;  %5319 = vmatprep.subr.bf16.mxu0 %v6815_v8 }
 0x5dc   : > { %5304 = vmatpush3.bf16.msra.mxu1 %v6815_v8  ;;  %5320 = vmatpush3.bf16.msra.mxu0 %v6815_v8 }
 0x5dd   : > { %5305 = vmatprep.subr.bf16.mxu1 %v6819_v30  ;;  %5321 = vmatprep.subr.bf16.mxu0 %v6819_v30 }
 0x5e0   : > { %5306 = vmatpush3.bf16.msra.mxu1 %v6819_v30  ;;  %5322 = vmatpush3.bf16.msra.mxu0 %v6819_v30 }
 0x5e1   : > { %5331 = vmatprep.subr.bf16.mxu1 %v5679_v45  ;;  %5347 = vmatprep.subr.bf16.mxu0 %v6827_v1 }
 0x5e3   : > { %5308 = vmatmul.mubr.msk.bf16.vlgmr.msra.gmra.mrb[56].mxu1 %vm395_vm0, %v5677_v42  ;;  %5324 = vmatmul.mubr.msk.bf16.vlgmr.msra.gmra.mrb[48].mxu0 %vm395_vm0, %v5678_v43 }
 0x5e4   : > { %5332 = vmatpush3.bf16.msra.mxu1 %v5679_v45  ;;  %5348 = vmatpush3.bf16.msra.mxu0 %v6827_v1 }
 0x5e5   : > { %5333 = vmatprep.subr.bf16.mxu1 %v5681_v40  ;;  %5349 = vmatprep.subr.bf16.mxu0 %v6838_v5 }
 0x5e6   : > { %5311 = vmatprep.mubr.msk.bf16.mxu1 %vm395_vm0, %v5683_v6  ;;  %5327 = vmatprep.mubr.msk.bf16.mxu0 %vm395_vm0, %v5684_v48 }
 0x5e8   : > { %5334 = vmatpush3.bf16.msra.mxu1 %v5681_v40  ;;  %5350 = vmatpush3.bf16.msra.mxu0 %v6838_v5 }
 0x5e9   : > { %5335 = vmatprep.subr.bf16.mxu1 %v5687_v29  ;;  %5351 = vmatprep.subr.bf16.mxu0 %v6850_v36 }
 0x5eb   : > { %5312 = vmatmul.mubr.msk.bf16.gmra.mrb[60].mxu1 %vm395_vm0, %v5685_v27  ;;  %5328 = vmatmul.mubr.msk.bf16.gmra.mrb[52].mxu0 %vm395_vm0, %v5686_v57 }
 0x5ec   : > { %5336 = vmatpush3.bf16.msra.mxu1 %v5687_v29  ;;  %5339 = vmatprep.mubr.msk.bf16.mxu1 %vm395_vm0, %v6787_v38 }
 0x5ed   : > { %5352 = vmatpush3.bf16.msra.mxu0 %v6850_v36  ;;  %5355 = vmatprep.mubr.msk.bf16.mxu0 %vm395_vm0, %v6787_v38 }
 0x5ee   : > { %5337 = vmatprep.subr.bf16.mxu1 %v5689_v20  ;;  %5353 = vmatprep.subr.bf16.mxu0 %v6862_v16 }
 0x5f0   : > { %5338 = vmatpush3.bf16.msra.mxu1 %v5689_v20 }
 0x5f1   : > { %5354 = vmatpush3.bf16.msra.mxu0 %v6862_v16  ;;  %5363 = vmatprep.subr.bf16.mxu1 %v5691_v41 }
 0x5f2   : > { %5379 = vmatprep.subr.bf16.mxu0 %v6827_v1 }
 0x5f3   : > { %5340 = vmatmul.mubr.msk.bf16.vlgmr.msra.gmra.mrb[64].mxu1 %vm395_vm0, %v6791_v22 }
 0x5f4   : > { %5356 = vmatmul.mubr.msk.bf16.vlgmr.msra.gmra.mrb[56].mxu0 %vm395_vm0, %v6791_v22  ;;  %5343 = vmatprep.mubr.msk.bf16.mxu1 %vm395_vm0, %v6815_v8 }
 0x5f5   : > { %5359 = vmatprep.mubr.msk.bf16.mxu0 %vm395_vm0, %v6815_v8  ;;  %5364 = vmatpush3.bf16.msra.mxu1 %v5691_v41 }
 0x5f6   : > { %5365 = vmatprep.subr.bf16.mxu1 %v6873_v59  ;;  %5380 = vmatpush3.bf16.msra.mxu0 %v6827_v1 }
 0x5f7   : > { %5381 = vmatprep.subr.bf16.mxu0 %v6838_v5 }
 0x5f9   : > { %5366 = vmatpush3.bf16.msra.mxu1 %v6873_v59 }
 0x5fa   : > { %5367 = vmatprep.subr.bf16.mxu1 %v6885_v17  ;;  %5382 = vmatpush3.bf16.msra.mxu0 %v6838_v5 }
 0x5fb   : > { %5344 = vmatmul.mubr.msk.bf16.gmra.mrb[68].mxu1 %vm395_vm0, %v6819_v30  ;;  %5383 = vmatprep.subr.bf16.mxu0 %v6850_v36 }
 0x5fc   : > { %5360 = vmatmul.mubr.msk.bf16.gmra.mrb[60].mxu0 %vm395_vm0, %v6819_v30  ;;  %5371 = vmatprep.mubr.msk.bf16.mxu1 %vm395_vm0, %v6787_v38 }
 0x5fd   : > { %5368 = vmatpush3.bf16.msra.mxu1 %v6885_v17 }
 0x5fe   : > { %5369 = vmatprep.subr.bf16.mxu1 %v6891_v54  ;;  %5384 = vmatpush3.bf16.msra.mxu0 %v6850_v36 }
 0x5ff   : > { %5385 = vmatprep.subr.bf16.mxu0 %v6862_v16 }
 0x601   : > { %5370 = vmatpush3.bf16.msra.mxu1 %v6891_v54 }
 0x602   : > { %5395 = vmatprep.subr.bf16.mxu1 %v5691_v41  ;;  %5386 = vmatpush3.bf16.msra.mxu0 %v6862_v16 }
 0x603   : > { %5411 = vmatprep.subr.bf16.mxu0 %v6827_v1 }
 0x604   : > { %5372 = vmatmul.mubr.msk.bf16.vlgmr.msra.gmra.mrb[72].mxu1 %vm395_vm0, %v6791_v22 }
 0x605   : > { %5375 = vmatprep.mubr.msk.bf16.mxu1 %vm395_vm0, %v6815_v8  ;;  %5396 = vmatpush3.bf16.msra.mxu1 %v5691_v41 }
 0x606   : > { %5397 = vmatprep.subr.bf16.mxu1 %v6873_v59 }
 0x609   : > { %5398 = vmatpush3.bf16.msra.mxu1 %v6873_v59 }
 0x60a   : > { %5399 = vmatprep.subr.bf16.mxu1 %v6885_v17 }
 0x60c   : > { %5376 = vmatmul.mubr.msk.bf16.gmra.mrb[76].mxu1 %vm395_vm0, %v6819_v30 }
 0x60d   : > { %5400 = vmatpush3.bf16.msra.mxu1 %v6885_v17 }
 0x60e   : > { %5401 = vmatprep.subr.bf16.mxu1 %v6891_v54 }
 0x611   : > { %5402 = vmatpush3.bf16.msra.mxu1 %v6891_v54 }
 0x612   : > { %5427 = vmatprep.subr.bf16.mxu1 %v5691_v41 }
 0x6b6   : > { %v5309_v25 = vpop.f32.mrb[56].mxu1  ;;  %v5325_v26 = vpop.f32.mrb[48].mxu0 }
 0x6b7   : > { %v2557_v7 = vpop.f32.mrb[57].mxu1  ;;  %v2658_v56 = vpop.f32.mrb[49].mxu0 }
 0x6b8   : > { %v5310_v23 = vpop.f32.mrb[58].mxu1  ;;  %v5326_v32 = vpop.f32.mrb[50].mxu0 }
 0x6b9   : > { %v6920_v28 = vpack.c.bf16 %v5310_v23, %v5309_v25  ;;  %v2560_v63 = vpop.f32.mrb[59].mxu1  ;;  %v6922_v14 = vpack.c.bf16 %v5326_v32, %v5325_v26  ;;  %v2661_v55 = vpop.f32.mrb[51].mxu0 }
 0x6ba   : > { %v6924_v61 = vpack.c.bf16 %v2560_v63, %v2557_v7  ;;  %v6926_v15 = vpack.c.bf16 %v2661_v55, %v2658_v56 }
 0x6bc   : > { %5387 = vmatprep.mubr.msk.bf16.mxu0 %vm395_vm0, %v6924_v61  ;;  %5403 = vmatprep.mubr.msk.bf16.mxu1 %vm395_vm0, %v6924_v61 }
 0x6bd   : > { %5388 = vmatmul.mubr.msk.bf16.vlgmr.msra.gmra.mrb[64].mxu0 %vm395_vm0, %v6920_v28  ;;  %5404 = vmatmul.mubr.msk.bf16.vlgmr.msra.gmra.mrb[80].mxu1 %vm395_vm0, %v6920_v28 }
 0x6be   : > { %v5313_v33 = vpop.f32.mrb[60].mxu1  ;;  %5412 = vmatpush3.bf16.msra.mxu0 %v6827_v1  ;;  %5428 = vmatpush3.bf16.msra.mxu1 %v5691_v41  ;;  %v5329_v34 = vpop.f32.mrb[52].mxu0 }
 0x6bf   : > { %v2573_v3 = vpop.f32.mrb[61].mxu1  ;;  %5413 = vmatprep.subr.bf16.mxu0 %v6838_v5  ;;  %5429 = vmatprep.subr.bf16.mxu1 %v6873_v59  ;;  %v2674_v53 = vpop.f32.mrb[53].mxu0 }
 0x6c0   : > { %v5314_v31 = vpop.f32.mrb[62].mxu1  ;;  %v5330_v13 = vpop.f32.mrb[54].mxu0 }
 0x6c1   : > { %v6939_v60 = vpack.c.bf16 %v5314_v31, %v5313_v33  ;;  %v2576_v44 = vpop.f32.mrb[63].mxu1  ;;  %v6941_v37 = vpack.c.bf16 %v5330_v13, %v5329_v34  ;;  %v2677_v2 = vpop.f32.mrb[55].mxu0  ;;  %v5697_v33 = vld [vmem:[#allocation2 + $0x150] sm:$0xff]  }
 0x6c2   : > { %v6943_v46 = vpack.c.bf16 %v2576_v44, %v2573_v3  ;;  %5414 = vmatpush3.bf16.msra.mxu0 %v6838_v5  ;;  %5430 = vmatpush3.bf16.msra.mxu1 %v6873_v59  ;;  %v6947_v4 = vpack.c.bf16 %v2677_v2, %v2674_v53  ;;  %v5696_v59 = vld [vmem:[#allocation2 + $0x148] sm:$0xff]  }
 0x6c3   : > { %5415 = vmatprep.subr.bf16.mxu0 %v6850_v36  ;;  %5431 = vmatprep.subr.bf16.mxu1 %v6885_v17 }
 0x6c4   : > { %5391 = vmatprep.mubr.msk.bf16.mxu0 %vm395_vm0, %v6943_v46  ;;  %5407 = vmatprep.mubr.msk.bf16.mxu1 %vm395_vm0, %v6943_v46 }
 0x6c5   : > { %5392 = vmatmul.mubr.msk.bf16.gmra.mrb[68].mxu0 %vm395_vm0, %v6939_v60  ;;  %5408 = vmatmul.mubr.msk.bf16.gmra.mrb[84].mxu1 %vm395_vm0, %v6939_v60 }
 0x6c6   : > { %v5341_v10 = vpop.f32.mrb[64].mxu1  ;;  %5416 = vmatpush3.bf16.msra.mxu0 %v6850_v36  ;;  %5432 = vmatpush3.bf16.msra.mxu1 %v6885_v17 }
 0x6c7   : > { %v6969_v11 = vadd.f32 %v5341_v10, %v4718_v12  ;;  %v5357_v0 = vpop.f32.mrb[56].mxu0  ;;  %v2779_v58 = vpop.f32.mrb[65].mxu1  ;;  %5417 = vmatprep.subr.bf16.mxu0 %v6862_v16  ;;  %5433 = vmatprep.subr.bf16.mxu1 %v6891_v54 }
 0x6c8   : > { %v2890_v47 = vadd.f32 %v5357_v0, %v6965_v49  ;;  %v6974_v50 = vadd.f32 %v4718_v12, %v2779_v58  ;;  %v2881_v45 = vpop.f32.mrb[57].mxu0  ;;  %v5342_v1 = vpop.f32.mrb[66].mxu1  ;;  %5419 = vmatprep.mubr.msk.bf16.mxu0 %vm395_vm0, %v6926_v15  ;;  %5435 = vmatprep.mubr.msk.bf16.mxu1 %vm395_vm0, %v6926_v15 }
 0x6c9   : > { %v2882_v42 = vadd.f32 %v6965_v49, %v2881_v45  ;;  %v6981_v43 = vadd.f32 %v5342_v1, %v4718_v12  ;;  %v5358_v40 = vpop.f32.mrb[58].mxu0  ;;  %v2782_v5 = vpop.f32.mrb[67].mxu1  ;;  %v5698_v45 = vld [vmem:[#allocation2 + $0x158] sm:$0xff]  }
 0x6ca   : > { %v2893_v6 = vadd.f32 %v5358_v40, %v6965_v49  ;;  %v2884_v48 = vpop.f32.mrb[59].mxu0  ;;  %5418 = vmatpush3.bf16.msra.mxu0 %v6862_v16  ;;  %5434 = vmatpush3.bf16.msra.mxu1 %v6891_v54  ;;  %v3695_v29 = vmul.f32 %v2890_v47, %v6969_v11  ;;  %v6988_v27 = vadd.f32 %v4718_v12, %v2782_v5 }
 0x6cb   : > { %5443 = vmatprep.subr.bf16.mxu0 %v5695_v62  ;;  %v3693_v36 = vmul.f32 %v2882_v42, %v6974_v50  ;;  %v2885_v57 = vadd.f32 %v6965_v49, %v2884_v48  ;;  %v5699_v48 = vld [vmem:[#allocation2 + $0x120] sm:$0xff]  }
 0x6cc   : > { %v3707_v20 = vsel %vm395_vm0, %v3695_v29, 0.0  ;;  %v3696_v41 = vmul.f32 %v2893_v6, %v6981_v43 }
 0x6cd   : > { %3708 = vadd.xlane.f32.xlu1 %v3707_v20  ;;  %v3701_v17 = vsel %vm395_vm0, %v3693_v36, 0.0  ;;  %5420 = vmatmul.mubr.msk.bf16.vlgmr.msra.gmra.mrb[72].mxu0 %vm395_vm0, %v6922_v14  ;;  %v3694_v55 = vmul.f32 %v2885_v57, %v6988_v27  ;;  %v5700_v57 = vld [vmem:[#allocation2 + $0x128] sm:$0xff]  }
 0x6ce   : > { %3702 = vadd.xlane.f32.xlu0 %v3701_v17  ;;  %5436 = vmatmul.mubr.msk.bf16.vlgmr.msra.gmra.mrb[88].mxu1 %vm395_vm0, %v6922_v14  ;;  %v5345_v16 = vpop.f32.mrb[68].mxu1  ;;  %v3710_v32 = vsel %vm395_vm0, %v3696_v41, 0.0  ;;  %v5701_v41 = vld [vmem:[#allocation2 + $0x130] sm:$0xff]  }
 0x6cf   : > { %v6998_v54 = vadd.f32 %v5345_v16, %v4718_v12  ;;  %v5361_v25 = vpop.f32.mrb[60].mxu0  ;;  %5444 = vmatpush3.bf16.msra.mxu0 %v5695_v62  ;;  %v2795_v26 = vpop.f32.mrb[69].mxu1  ;;  %5423 = vmatprep.mubr.msk.bf16.mxu0 %vm395_vm0, %v6947_v4  ;;  %v3704_v58 = vsel %vm395_vm0, %v3694_v55, 0.0  ;;  %v5702_v16 = vld [vmem:[#allocation2 + $0x138] sm:$0xff]  }
 0x6d0   : > { %v2906_v7 = vadd.f32 %v5361_v25, %v6965_v49  ;;  %v7003_v56 = vadd.f32 %v4718_v12, %v2795_v26  ;;  %v2897_v23 = vpop.f32.mrb[61].mxu0  ;;  %v5346_v63 = vpop.f32.mrb[70].mxu1  ;;  %5445 = vmatprep.subr.bf16.mxu0 %v5696_v59  ;;  %5439 = vmatprep.mubr.msk.bf16.mxu1 %vm395_vm0, %v6947_v4  ;;  %v5705_v25 = vld [vmem:[#allocation2 + $0x170] sm:$0xff]  }
 0x6d1   : > { %v2898_v34 = vadd.f32 %v6965_v49, %v2897_v23  ;;  %v5362_v3 = vpop.f32.mrb[62].mxu0  ;;  %3711 = vadd.xlane.f32.xlu1 %v3710_v32  ;;  %v7010_v53 = vadd.f32 %v5346_v63, %v4718_v12  ;;  %v2798_v31 = vpop.f32.mrb[71].mxu1 }
 0x6d2   : > { %v2909_v13 = vadd.f32 %v5362_v3, %v6965_v49  ;;  %v7013_v44 = vadd.f32 %v4718_v12, %v2798_v31  ;;  %v2900_v2 = vpop.f32.mrb[63].mxu0  ;;  %v3699_v10 = vmul.f32 %v2906_v7, %v6998_v54 }
 0x6d3   : > { %v2901_v0 = vadd.f32 %v6965_v49, %v2900_v2  ;;  %5446 = vmatpush3.bf16.msra.mxu0 %v5696_v59  ;;  %v3697_v47 = vmul.f32 %v2898_v34, %v7003_v56 }
 0x6d4   : > { %v3719_v62 = vsel %vm395_vm0, %v3699_v10, 0.0  ;;  %5447 = vmatprep.subr.bf16.mxu0 %v5697_v33  ;;  %v7021_v1 = vmul.f32 %v2909_v13, %v7010_v53 }
 0x6d5   : > { %3705 = vadd.xlane.f32.xlu1 %v3704_v58  ;;  %3720 = vadd.xlane.f32.xlu0 %v3719_v62  ;;  %v3698_v12 = vmul.f32 %v2901_v0, %v7013_v44  ;;  %v3713_v6 = vsel %vm395_vm0, %v3697_v47, 0.0 }
 0x6d6   : > { %5424 = vmatmul.mubr.msk.bf16.gmra.mrb[76].mxu0 %vm395_vm0, %v6941_v37  ;;  %5440 = vmatmul.mubr.msk.bf16.gmra.mrb[92].mxu1 %vm395_vm0, %v6941_v37 }
 0x6d7   : > { %v7028_v42 = vpop.f32.mrb[72].mxu1  ;;  %5448 = vmatpush3.bf16.msra.mxu0 %v5697_v33  ;;  %5451 = vmatprep.mubr.msk.bf16.mxu0 %vm395_vm0, %v6787_v38  ;;  %v3716_v40 = vsel %vm395_vm0, %v3698_v12, 0.0 }
 0x6d8   : > { %v7033_v5 = vpop.f32.mrb[73].mxu1  ;;  %5449 = vmatprep.subr.bf16.mxu0 %v5698_v45 }
 0x6d9   : > { %v7036_v29 = vpop.f32.mrb[74].mxu1  ;;  %3717 = vadd.xlane.f32.xlu1 %v3716_v40  ;;  %3714 = vadd.xlane.f32.xlu0 %v3713_v6 }
 0x6da   : > { %v7038_v36 = vpop.f32.mrb[75].mxu1 }
 0x6db   : > { %5450 = vmatpush3.bf16.msra.mxu0 %v5698_v45 }
 0x6dc   : > { %5459 = vmatprep.subr.bf16.mxu0 %v5699_v48 }
 0x6de   : > { %5452 = vmatmul.mubr.msk.bf16.vlgmr.msra.gmra.mrb[80].mxu0 %vm395_vm0, %v6791_v22  ;;  %v5703_v22 = vld [vmem:[#allocation2 + $0x160] sm:$0xff]  }
 0x6df   : > { %v7042_v38 = vpop.f32.mrb[76].mxu1  ;;  %5455 = vmatprep.mubr.msk.bf16.mxu0 %vm395_vm0, %v6815_v8  ;;  %5460 = vmatpush3.bf16.msra.mxu0 %v5699_v48  ;;  %v5704_v8 = vld [vmem:[#allocation2 + $0x168] sm:$0xff]  }
 0x6e0   : > { %v7046_v20 = vpop.f32.mrb[77].mxu1  ;;  %5461 = vmatprep.subr.bf16.mxu0 %v5700_v57 }
 0x6e1   : > { %v7048_v59 = vpop.f32.mrb[78].mxu1 }
 0x6e2   : > { %7603 = vst [vmem:[#allocation26_spill] sm:$0xff] %v7048_v59  ;;  %v7050_v17 = vpop.f32.mrb[79].mxu1 }
 0x6e3   : > { %5462 = vmatpush3.bf16.msra.mxu0 %v5700_v57 }
 0x6e4   : > { %5463 = vmatprep.subr.bf16.mxu0 %v5701_v41 }
 0x6e6   : > { %5456 = vmatmul.mubr.msk.bf16.gmra.mrb[84].mxu0 %vm395_vm0, %v6819_v30  ;;  %v5706_v30 = vld [vmem:[#allocation2 + $0x178] sm:$0xff]  }
 0x6e7   : > { %5464 = vmatpush3.bf16.msra.mxu0 %v5701_v41  ;;  %5467 = vmatprep.mubr.msk.bf16.mxu0 %vm395_vm0, %v6924_v61 }
 0x6e8   : > { %5465 = vmatprep.subr.bf16.mxu0 %v5702_v16 }
 0x6eb   : > { %5466 = vmatpush3.bf16.msra.mxu0 %v5702_v16 }
 0x6ec   : > { %5475 = vmatprep.subr.bf16.mxu0 %v5703_v22 }
 0x6ee   : > { %5468 = vmatmul.mubr.msk.bf16.vlgmr.msra.gmra.mrb[80].mxu0 %vm395_vm0, %v6920_v28  ;;  %v7604_v28 = vld [vmem:[#allocation17_spill] sm:$0xff] }
 0x6ef   : > { %5471 = vmatprep.mubr.msk.bf16.mxu0 %vm395_vm0, %v6943_v46  ;;  %5476 = vmatpush3.bf16.msra.mxu0 %v5703_v22  ;;  %v7071_v61 = vadd.s32 4294967294, %v7604_v28  ;;  %v7080_v46 = vld [vmem:[%s7520_s4 + $0x9] ss:$0 sm:$0xff] }
 0x6f0   : > { %5477 = vmatprep.subr.bf16.mxu0 %v5704_v8 }
 0x6f1   : > { %vm2401_vm3 = vcmp.ge.s32.totalorder %v7071_v61, 0 }
 0x6f2   : > { %v2457_v39 = vsel %vm2401_vm3, 9.999995e-07, %v7576_v9 }
 0x6f3   : > { %5478 = vmatpush3.bf16.msra.mxu0 %v5704_v8 }
 0x6f4   : > { %5479 = vmatprep.subr.bf16.mxu0 %v5705_v25 }
 0x6f6   : > { %5472 = vmatmul.mubr.msk.bf16.gmra.mrb[84].mxu0 %vm395_vm0, %v6939_v60  ;;  %v7605_v60 = vmov 0.0  }
 0x6f7   : > { %5480 = vmatpush3.bf16.msra.mxu0 %v5705_v25  ;;  %5483 = vmatprep.mubr.msk.bf16.mxu0 %vm395_vm0, %v6926_v15  ;;  %v4684_v15 = vsel %vm2401_vm3, 1.0, %v7605_v60 }
 0x6f8   : > { %5481 = vmatprep.subr.bf16.mxu0 %v5706_v30 }
 0x6fb   : > { %5482 = vmatpush3.bf16.msra.mxu0 %v5706_v30 }
 0x6fe   : > { %5484 = vmatmul.mubr.msk.bf16.vlgmr.msra.gmra.mrb[80].mxu0 %vm395_vm0, %v6922_v14  ;;  %v3014_v14 = vmul.f32 %v6965_v49, %v4684_v15 }
 0x6ff   : > { %5487 = vmatprep.mubr.msk.bf16.mxu0 %vm395_vm0, %v6947_v4  ;;  %v3099_v4 = vmul.f32 %v7080_v46, %v4684_v15 }
 0x706   : > { %5488 = vmatmul.mubr.msk.bf16.gmra.mrb[84].mxu0 %vm395_vm0, %v6941_v37 }
 0x790   : > { %v5389_v26 = vpop.f32.mrb[64].mxu0  ;;  %v7084_v37 = vpop.f32.mrb[80].mxu1 }
 0x791   : > { %v3077_v7 = vadd.f32 %v5389_v26, %v6965_v49  ;;  %v3068_v23 = vpop.f32.mrb[65].mxu0  ;;  %v3141_v32 = vpop.f32.mrb[81].mxu1 }
 0x792   : > { %v3069_v63 = vadd.f32 %v3068_v23, %v3014_v14  ;;  %v7087_v55 = vadd.f32 %v3141_v32, %v3099_v4  ;;  %v5390_v33 = vpop.f32.mrb[66].mxu0  ;;  %v7089_v34 = vpop.f32.mrb[82].mxu1 }
 0x793   : > { %v3071_v3 = vpop.f32.mrb[67].mxu0  ;;  %v7091_v31 = vpop.f32.mrb[83].mxu1  ;;  %v3647_v13 = vmul.f32 %v3077_v7, %v6969_v11  ;;  %v3080_v10 = vadd.f32 %v5390_v33, %v6965_v49 }
 0x794   : > { %v3072_v2 = vadd.f32 %v6965_v49, %v3071_v3  ;;  %v3645_v58 = vmul.f32 %v3069_v63, %v6974_v50  ;;  %v7608_v63 = vld [vmem:[#allocation19_spill] sm:$0xff] }
 0x795   : > { %v3659_v0 = vsel %vm395_vm0, %v3647_v13, 0.0  ;;  %v3648_v41 = vmul.f32 %v3080_v10, %v6981_v43  ;;  %v7121_v33 = vadd.s32 2, %v7608_v63 }
 0x796   : > { %3660 = vadd.xlane.f32.xlu0 %v3659_v0  ;;  %v3646_v62 = vmul.f32 %v3072_v2, %v6988_v27  ;;  %v3653_v57 = vsel %vm395_vm0, %v3645_v58, 0.0 }
 0x797   : > { %v3662_v4 = vsel %vm395_vm0, %v3648_v41, 0.0  ;;  %vm2424_vm4 = vcmp.lt.s32.totalorder %v7121_v33, 64 }
 0x798   : > { %v5393_v47 = vpop.f32.mrb[68].mxu0  ;;  %v7099_v45 = vpop.f32.mrb[84].mxu1  ;;  %v3656_v12 = vsel %vm395_vm0, %v3646_v62, 0.0 }
 0x799   : > { %7606 = vst [vmem:[#allocation24_spill] sm:$0xff] %v7099_v45  ;;  %v3093_v40 = vadd.f32 %v5393_v47, %v6965_v49  ;;  %3657 = vadd.xlane.f32.xlu1 %v3656_v12  ;;  %v3084_v6 = vpop.f32.mrb[69].mxu0  ;;  %v7103_v48 = vpop.f32.mrb[85].mxu1 }
 0x79a   : > { %v3085_v16 = vadd.f32 %v6965_v49, %v3084_v6  ;;  %3654 = vadd.xlane.f32.xlu0 %v3653_v57  ;;  %v5394_v22 = vpop.f32.mrb[70].mxu0  ;;  %v7108_v8 = vpop.f32.mrb[86].mxu1 }
 0x79b   : > { %7607 = vst [vmem:[#allocation9_spill] sm:$0xff] %v7108_v8  ;;  %v3096_v25 = vadd.f32 %v5394_v22, %v6965_v49  ;;  %v3087_v30 = vpop.f32.mrb[71].mxu0  ;;  %v7111_v28 = vpop.f32.mrb[87].mxu1  ;;  %v3651_v15 = vmul.f32 %v3093_v40, %v6998_v54 }
 0x79c   : > { %v3088_v14 = vadd.f32 %v6965_v49, %v3087_v30  ;;  %v3649_v7 = vmul.f32 %v3085_v16, %v7003_v56 }
 0x79d   : > { %v3671_v26 = vsel %vm395_vm0, %v3651_v15, 0.0  ;;  %v3652_v23 = vmul.f32 %v3096_v25, %v7010_v53  ;;  %v4685_v15 = vsel %vm2424_vm4, 1.0, %v7605_v60 }
 0x79e   : > { %3663 = vadd.xlane.f32.xlu0 %v3662_v4  ;;  %3672 = vadd.xlane.f32.xlu1 %v3671_v26  ;;  %v3650_v32 = vmul.f32 %v3088_v14, %v7013_v44  ;;  %v3665_v58 = vsel %vm395_vm0, %v3649_v7, 0.0  ;;  %v3264_v7 = vmul.f32 %v7080_v46, %v4685_v15 }
 0x7a0   : > { %v5421_v3 = vpop.f32.mrb[72].mxu0  ;;  %v3668_v13 = vsel %vm395_vm0, %v3650_v32, 0.0 }
 0x7a1   : > { %v3235_v2 = vadd.f32 %v5421_v3, %v6965_v49  ;;  %v7125_v10 = vpop.f32.mrb[88].mxu1  ;;  %v3226_v0 = vpop.f32.mrb[73].mxu0 }
 0x7a2   : > { %v3227_v62 = vadd.f32 %v6965_v49, %v3226_v0  ;;  %v7129_v47 = vpop.f32.mrb[89].mxu1  ;;  %v5422_v12 = vpop.f32.mrb[74].mxu0  ;;  %3669 = vadd.xlane.f32.xlu0 %v3668_v13  ;;  %3666 = vadd.xlane.f32.xlu1 %v3665_v58 }
 0x7a3   : > { %v3238_v40 = vadd.f32 %v5422_v12, %v6965_v49  ;;  %v7133_v6 = vpop.f32.mrb[90].mxu1  ;;  %v3229_v57 = vpop.f32.mrb[75].mxu0  ;;  %v3743_v41 = vmul.f32 %v3235_v2, %v6969_v11  ;;  %v3179_v11 = vmul.f32 %v6965_v49, %v4685_v15 }
 0x7a4   : > { %v3230_v16 = vadd.f32 %v6965_v49, %v3229_v57  ;;  %v7137_v22 = vpop.f32.mrb[91].mxu1  ;;  %v3741_v14 = vmul.f32 %v3227_v62, %v6974_v50 }
 0x7a5   : > { %v3755_v25 = vsel %vm395_vm0, %v3743_v41, 0.0  ;;  %v3744_v30 = vmul.f32 %v3238_v40, %v6981_v43  ;;  %v3674_v41 = vsel %vm395_vm0, %v3652_v23, 0.0 }
 0x7a6   : > { %3756 = vadd.xlane.f32.xlu0 %v3755_v25  ;;  %v3742_v26 = vmul.f32 %v3230_v16, %v6988_v27  ;;  %v3749_v43 = vsel %vm395_vm0, %v3741_v14, 0.0 }
 0x7a7   : > { %v3758_v4 = vsel %vm395_vm0, %v3744_v30, 0.0  ;;  %v3722_v30 = vsel %vm395_vm0, %v7021_v1, 0.0 }
 0x7a8   : > { %3759 = vadd.xlane.f32.xlu1 %v3758_v4  ;;  %v3752_v27 = vsel %vm395_vm0, %v3742_v26, 0.0 }
 0x7a9   : > { %v5425_v32 = vpop.f32.mrb[76].mxu0  ;;  %v7149_v63 = vpop.f32.mrb[92].mxu1 }
 0x7aa   : > { %7609 = vst [vmem:[#allocation10_spill] sm:$0xff] %v7149_v63  ;;  %v3242_v3 = vpop.f32.mrb[77].mxu0  ;;  %v7152_v13 = vpop.f32.mrb[93].mxu1  ;;  %3750 = vadd.xlane.f32.xlu0 %v3749_v43  ;;  %v3251_v40 = vadd.f32 %v5425_v32, %v6965_v49  ;;  %v5707_v43 = vld [vmem:[#allocation2 + $0x1e0] sm:$0xff]  }
 0x7ab   : > { %v3243_v50 = vadd.f32 %v6965_v49, %v3242_v3  ;;  %v5426_v60 = vpop.f32.mrb[78].mxu0  ;;  %v5442_v2 = vpop.f32.mrb[94].mxu1  ;;  %v5708_v3 = vld [vmem:[#allocation2 + $0x1e8] sm:$0xff]   ;;  %5491 = vmatprep.subr.bf16.mxu1 %v5707_v43 }
 0x7ac   : > { %v3254_v0 = vadd.f32 %v5426_v60, %v3179_v11  ;;  %v7156_v58 = vadd.f32 %v5442_v2, %v3264_v7  ;;  %v3245_v62 = vpop.f32.mrb[79].mxu0  ;;  %v7158_v12 = vpop.f32.mrb[95].mxu1  ;;  %3753 = vadd.xlane.f32.xlu1 %v3752_v27  ;;  %v3747_v4 = vmul.f32 %v3251_v40, %v6998_v54  ;;  %5492 = vmatpush3.bf16.msra.mxu1 %v5707_v43  ;;  %v5710_v60 = vld [vmem:[#allocation2 + $0x1f8] sm:$0xff]  }
 0x7ad   : > { %7611 = vst [vmem:[#allocation8_spill] sm:$0xff] %v7158_v12  ;;  %v3246_v57 = vadd.f32 %v6965_v49, %v3245_v62  ;;  %v3745_v16 = vmul.f32 %v3243_v50, %v7003_v56  ;;  %5493 = vmatprep.subr.bf16.mxu1 %v5708_v3  ;;  %v5709_v50 = vld [vmem:[#allocation2 + $0x1f0] sm:$0xff]   ;;  %v3709_v2 = vpop.xlane.xlu1 %3708  ;;  %v3703_v27 = vpop.xlane.xlu0 %3702 }
 0x7ae   : > { %7610 = vst [vmem:[#allocation11_spill] sm:$0xff] %v7156_v58  ;;  %3675 = vadd.xlane.f32.xlu0 %v3674_v41  ;;  %v3748_v25 = vmul.f32 %v3254_v0, %v7010_v53  ;;  %v3767_v23 = vsel %vm395_vm0, %v3747_v4, 0.0 }
 0x7af   : > { %v3746_v15 = vmul.f32 %v3246_v57, %v7013_v44  ;;  %v3761_v14 = vsel %vm395_vm0, %v3745_v16, 0.0 }
 0x7b0   : > { %3723 = vadd.xlane.f32.xlu1 %v3722_v30  ;;  %v3770_v56 = vsel %vm395_vm0, %v3748_v25, 0.0  ;;  %5494 = vmatpush3.bf16.msra.mxu1 %v5708_v3 }
 0x7b1   : > { %v3764_v49 = vsel %vm395_vm0, %v3746_v15, 0.0  ;;  %5495 = vmatprep.subr.bf16.mxu1 %v5709_v50  ;;  %v3712_v0 = vpop.xlane.xlu1 %3711  ;;  %v3721_v62 = vpop.xlane.xlu0 %3720 }
 0x7b2   : > { %3762 = vadd.xlane.f32.xlu0 %v3761_v14  ;;  %v3728_v3 = vmul.f32 0.125, %v3712_v0  ;;  %v3731_v51 = vmul.f32 0.125, %v3721_v62 }
 0x7b4   : > { %3765 = vadd.xlane.f32.xlu1 %v3764_v49  ;;  %5496 = vmatpush3.bf16.msra.mxu1 %v5709_v50  ;;  %v3727_v49 = vmul.f32 0.125, %v3709_v2  ;;  %v3736_v2 = vadd.f32 9.999995e-07, %v3728_v3 }
 0x7b5   : > { %5497 = vmatprep.subr.bf16.mxu1 %v5710_v60  ;;  %v3706_v40 = vpop.xlane.xlu1 %3705  ;;  %v3715_v57 = vpop.xlane.xlu0 %3714 }
 0x7b6   : > { %3768 = vadd.xlane.f32.xlu0 %v3767_v23  ;;  %v3735_v52 = vadd.f32 9.999995e-07, %v3727_v49  ;;  %v3729_v58 = vmul.f32 0.125, %v3715_v57 }
 0x7b8   : > { %3771 = vadd.xlane.f32.xlu1 %v3770_v56  ;;  %5498 = vmatpush3.bf16.msra.mxu1 %v5710_v60  ;;  %v3725_v56 = vmul.f32 0.125, %v3703_v27  ;;  %v3726_v60 = vmul.f32 0.125, %v3706_v40  ;;  %v7198_v3 = vadd.f32 9.999995e-07, %v3729_v58 }
 0x7b9   : > { %v3718_v41 = vpop.xlane.xlu1 %3717 }
 0x7ba   : > { %v3730_v19 = vmul.f32 0.125, %v3718_v41  ;;  %v3733_v35 = vadd.f32 9.999995e-07, %v3725_v56 }
 0x7bc   : > { %v7196_v61 = vadd.f32 9.999995e-07, %v3730_v19 }
 0x7d1   : > { %v7173_v53 = vpop.f32.mrb[80].mxu0 }
 0x7d2   : > { %v7175_v1 = vpop.f32.mrb[81].mxu0 }
 0x7d3   : > { %v7177_v44 = vpop.f32.mrb[82].mxu0 }
 0x7d4   : > { %v7179_v26 = vpop.f32.mrb[83].mxu0 }
 0x7d9   : > { %v7181_v11 = vpop.f32.mrb[84].mxu0 }
 0x7da   : > { %7612 = vst [vmem:[#allocation13_spill] sm:$0xff] %v7181_v11  ;;  %v7183_v54 = vpop.f32.mrb[85].mxu0 }
 0x7db   : > { %7613 = vst [vmem:[#allocation14_spill] sm:$0xff] %v7183_v54  ;;  %v7185_v7 = vpop.f32.mrb[86].mxu0 }
 0x7dc   : > { %7614 = vst [vmem:[#allocation15_spill] sm:$0xff] %v7185_v7  ;;  %v7187_v32 = vpop.f32.mrb[87].mxu0 }
 0x7dd   : > { %7615 = vst [vmem:[#allocation12_spill] sm:$0xff] %v7187_v32  ;;  %v7194_v32 = vadd.f32 9.999995e-07, %v3731_v51 }
 0x823   : > { %v3661_v16 = vpop.xlane.xlu0 %3660 }
 0x824   : > { %v3679_v4 = vmul.f32 0.125, %v3661_v16 }
 0x826   : > { %v3658_v25 = vpop.xlane.xlu1 %3657  ;;  %v3687_v18 = vadd.f32 9.999995e-07, %v3679_v4 }
 0x827   : > { %v3655_v30 = vpop.xlane.xlu0 %3654  ;;  %v3678_v27 = vmul.f32 0.125, %v3658_v25 }
 0x828   : > { %v3677_v50 = vmul.f32 0.125, %v3655_v30  ;;  %v7192_v30 = vadd.f32 9.999995e-07, %v3726_v60  ;;  %v3791_v40 = vmax.f32 %v3687_v18, %v3735_v52 }
 0x829   : > { %v3686_v57 = vadd.f32 9.999995e-07, %v3678_v27 }
 0x82b   : > { %v3664_v15 = vpop.xlane.xlu0 %3663  ;;  %v3673_v14 = vpop.xlane.xlu1 %3672 }
 0x82c   : > { %v3680_v43 = vmul.f32 0.125, %v3664_v15  ;;  %v3685_v15 = vadd.f32 %v3677_v50, %v2457_v39  ;;  %v3683_v25 = vmul.f32 0.125, %v3673_v14 }
 0x82e   : > { %v3688_v7 = vadd.f32 9.999995e-07, %v3680_v43  ;;  %v3789_v39 = vmax.f32 %v3685_v15, %v3733_v35 }
 0x82f   : > { %v3670_v23 = vpop.xlane.xlu0 %3669  ;;  %v3667_v24 = vpop.xlane.xlu1 %3666 }
 0x830   : > { %v3682_v62 = vmul.f32 0.125, %v3670_v23  ;;  %v3792_v49 = vmax.f32 %v3688_v7, %v3736_v2  ;;  %v3681_v19 = vmul.f32 0.125, %v3667_v24 }
 0x832   : > { %v7200_v51 = vadd.f32 9.999995e-07, %v3682_v62 }
 0x833   : > { %v3757_v21 = vpop.xlane.xlu0 %3756 }
 0x834   : > { %v3775_v16 = vmul.f32 0.125, %v3757_v21 }
 0x835   : > { %v3760_v0 = vpop.xlane.xlu1 %3759 }
 0x836   : > { %v3783_v4 = vadd.f32 9.999995e-07, %v3775_v16  ;;  %v3776_v11 = vmul.f32 0.125, %v3760_v0 }
 0x837   : > { %v3751_v41 = vpop.xlane.xlu0 %3750 }
 0x838   : > { %v3799_v56 = vmax.f32 %v3791_v40, %v3783_v4  ;;  %v3784_v43 = vadd.f32 9.999995e-07, %v3776_v11  ;;  %v3773_v21 = vmul.f32 0.125, %v3751_v41 }
 0x839   : > { %v3754_v50 = vpop.xlane.xlu1 %3753 }
 0x83a   : > { %v3807_v60 = vsub.f32 %v3687_v18, %v3799_v56  ;;  %v3831_v8 = vsub.f32 %v3735_v52, %v3799_v56  ;;  %v3855_v16 = vsub.f32 %v3783_v4, %v3799_v56  ;;  %v3800_v0 = vmax.f32 %v3792_v49, %v3784_v43 }
 0x83b   : > { %v3781_v63 = vadd.f32 9.999995e-07, %v3773_v21  ;;  %v3774_v23 = vmul.f32 0.125, %v3754_v50  ;;  %v3676_v59 = vpop.xlane.xlu0 %3675  ;;  %v3790_v18 = vmax.f32 %v3686_v57, %v7192_v30  ;;  %v7203_v52 = vadd.f32 9.999995e-07, %v3683_v25 }
 0x83c   : > { %v3817_v12 = vmul.f32 1.442695, %v3807_v60  ;;  %v3841_v40 = vmul.f32 1.442695, %v3831_v8  ;;  %v3865_v11 = vmul.f32 1.442695, %v3855_v16  ;;  %v3808_v41 = vsub.f32 %v3688_v7, %v3800_v0 }
 0x83d   : > { %v3832_v58 = vsub.f32 %v3736_v2, %v3800_v0  ;;  %v3856_v54 = vsub.f32 %v3784_v43, %v3800_v0  ;;  %v3797_v27 = vmax.f32 %v3789_v39, %v3781_v63  ;;  %v3782_v45 = vadd.f32 9.999995e-07, %v3774_v23  ;;  %v3724_v14 = vpop.xlane.xlu1 %3723 }
 0x83e   : > { %5785 = vpow2.f32 %v3817_v12  ;;  %v3819_v4 = vmul.f32 1.442695, %v3808_v41  ;;  %v3794_v2 = vmax.f32 %v7200_v51, %v7196_v61  ;;  %v3689_v43 = vadd.f32 9.999995e-07, %v3681_v19 }
 0x83f   : > { %5787 = vpow2.f32 %v3841_v40  ;;  %v3843_v24 = vmul.f32 1.442695, %v3832_v58  ;;  %v3867_v62 = vmul.f32 1.442695, %v3856_v54  ;;  %v3805_v49 = vsub.f32 %v3685_v15, %v3797_v27  ;;  %v3763_v56 = vpop.xlane.xlu0 %3762 }
 0x840   : > { %5789 = vpow2.f32 %v3865_v11  ;;  %v3829_v8 = vsub.f32 %v3733_v35, %v3797_v27  ;;  %v3853_v21 = vsub.f32 %v3781_v63, %v3797_v27  ;;  %v3798_v7 = vmax.f32 %v3790_v18, %v3782_v45 }
 0x841   : > { %5791 = vpow2.f32 %v3819_v4  ;;  %v3813_v39 = vmul.f32 1.442695, %v3805_v49  ;;  %v3766_v50 = vpop.xlane.xlu1 %3765  ;;  %v3732_v16 = vmul.f32 0.125, %v3724_v14  ;;  %v3777_v63 = vmul.f32 0.125, %v3763_v56 }
 0x842   : > { %5793 = vpow2.f32 %v3843_v24  ;;  %v3837_v25 = vmul.f32 1.442695, %v3829_v8  ;;  %v3861_v12 = vmul.f32 1.442695, %v3853_v21  ;;  %v3806_v60 = vsub.f32 %v3686_v57, %v3798_v7 }
 0x843   : > { %5795 = vpow2.f32 %v3867_v62  ;;  %v3830_v54 = vsub.f32 %v7192_v30, %v3798_v7  ;;  %v3854_v15 = vsub.f32 %v3782_v45, %v3798_v7  ;;  %v3769_v0 = vpop.xlane.xlu0 %3768  ;;  %v3778_v23 = vmul.f32 0.125, %v3766_v50 }
 0x844   : > { %5797 = vpow2.f32 %v3813_v39  ;;  %v3815_v35 = vmul.f32 1.442695, %v3806_v60  ;;  %v3779_v11 = vmul.f32 0.125, %v3769_v0  ;;  %v3793_v58 = vmax.f32 %v3689_v43, %v7198_v3 }
 0x845   : > { %5799 = vpow2.f32 %v3837_v25  ;;  %v3839_v40 = vmul.f32 1.442695, %v3830_v54  ;;  %v3863_v19 = vmul.f32 1.442695, %v3854_v15  ;;  %v3772_v41 = vpop.xlane.xlu1 %3771  ;;  %v3785_v27 = vadd.f32 9.999995e-07, %v3777_v63 }
 0x846   : > { %5801 = vpow2.f32 %v3861_v12  ;;  %v3786_v57 = vadd.f32 9.999995e-07, %v3778_v23  ;;  %v3684_v18 = vmul.f32 0.125, %v3676_v59  ;;  %v2472_v45 = vsel %vm2424_vm4, 9.999995e-07, %v7576_v9 }
 0x847   : > { %5803 = vpow2.f32 %v3815_v35  ;;  %v3780_v30 = vmul.f32 0.125, %v3772_v41  ;;  %v3801_v4 = vmax.f32 %v3793_v58, %v3785_v27  ;;  %v7214_v62 = vadd.f32 9.999995e-07, %v3779_v11 }
 0x848   : > { %v7212_v14 = vpop.eup %5785  ;;  %5805 = vpow2.f32 %v3839_v40  ;;  %v3802_v24 = vmax.f32 %v3794_v2, %v3786_v57  ;;  %v3795_v56 = vmax.f32 %v7203_v52, %v7194_v32  ;;  %v7220_v8 = vadd.f32 9.999995e-07, %v3732_v16  ;;  %v7244_v40 = vld [vmem:[#allocation2 + $0x200] sm:$0xff]  }
 0x849   : > { %v7216_v49 = vpop.eup %5787  ;;  %5807 = vpow2.f32 %v3863_v19  ;;  %v3809_v33 = vsub.f32 %v3689_v43, %v3801_v4  ;;  %v3833_v21 = vsub.f32 %v7198_v3, %v3801_v4  ;;  %v3857_v7 = vsub.f32 %v3785_v27, %v3801_v4  ;;  %5507 = vmatprep.subr.bf16.mxu1 %v7244_v40 }
 0x84a   : > { %v7222_v59 = vpop.eup %5789  ;;  %v3879_v9 = vadd.f32 %v7216_v49, %v7212_v14  ;;  %v3692_v39 = vadd.f32 9.999995e-07, %v3684_v18  ;;  %v3810_v50 = vsub.f32 %v7200_v51, %v3802_v24  ;;  %v7230_v25 = vadd.f32 %v3780_v30, %v2472_v45 }
 0x84b   : > { %v7227_v2 = vpop.eup %5791  ;;  %v3821_v54 = vmul.f32 1.442695, %v3809_v33  ;;  %v3845_v15 = vmul.f32 1.442695, %v3833_v21  ;;  %v3803_v16 = vmax.f32 %v3795_v56, %v7214_v62  ;;  %v3834_v43 = vsub.f32 %v7196_v61, %v3802_v24 }
 0x84c   : > { %v7232_v12 = vpop.eup %5793  ;;  %v3887_v60 = vadd.f32 %v7222_v59, %v3879_v9  ;;  %v3796_v51 = vmax.f32 %v3692_v39, %v7220_v8  ;;  %v3869_v63 = vmul.f32 1.442695, %v3857_v7  ;;  %v3858_v23 = vsub.f32 %v3786_v57, %v3802_v24 }
 0x84d   : > { %v7236_v0 = vpop.eup %5795  ;;  %v3880_v3 = vadd.f32 %v7232_v12, %v7227_v2  ;;  %v3823_v41 = vmul.f32 1.442695, %v3810_v50  ;;  %v3811_v27 = vsub.f32 %v7203_v52, %v3803_v16  ;;  %v3847_v45 = vmul.f32 1.442695, %v3834_v43 }
 0x84e   : > { %v7241_v35 = vpop.eup %5797  ;;  %5809 = vrcp.f32 %v3887_v60  ;;  %v3804_v18 = vmax.f32 %v3796_v51, %v7230_v25  ;;  %v3835_v30 = vsub.f32 %v7194_v32, %v3803_v16  ;;  %v3871_v56 = vmul.f32 1.442695, %v3858_v23 }
 0x84f   : > { %v7246_v19 = vpop.eup %5799  ;;  %v3888_v11 = vadd.f32 %v7236_v0, %v3880_v3  ;;  %5811 = vpow2.f32 %v3821_v54  ;;  %v3859_v33 = vsub.f32 %v7214_v62, %v3803_v16  ;;  %v3825_v21 = vmul.f32 1.442695, %v3811_v27 }
 0x850   : > { %v7249_v58 = vpop.eup %5801  ;;  %v3877_v61 = vadd.f32 %v7246_v19, %v7241_v35  ;;  %5813 = vpow2.f32 %v3845_v15  ;;  %v3812_v7 = vsub.f32 %v3692_v39, %v3804_v18  ;;  %v3836_v50 = vsub.f32 %v7220_v8, %v3804_v18 }
 0x851   : > { %v7256_v57 = vpop.eup %5803  ;;  %5815 = vrcp.f32 %v3888_v11  ;;  %v2992_v32 = vadd.f32 %v7028_v42, %v7080_v46  ;;  %v3849_v54 = vmul.f32 1.442695, %v3835_v30  ;;  %v2984_v15 = vadd.f32 %v7080_v46, %v7033_v5 }
 0x852   : > { %v7259_v4 = vpop.eup %5805  ;;  %v3885_v24 = vadd.f32 %v7249_v58, %v3877_v61  ;;  %5817 = vpow2.f32 %v3869_v63  ;;  %v2995_v3 = vadd.f32 %v7036_v29, %v7080_v46  ;;  %v3860_v62 = vsub.f32 %v7230_v25, %v3804_v18 }
 0x853   : > { %v7262_v9 = vpop.eup %5807  ;;  %v3878_v52 = vadd.f32 %v7259_v4, %v7256_v57  ;;  %5819 = vpow2.f32 %v3823_v41  ;;  %v7278_v39 = vadd.f32 %v7080_v46, %v7038_v36  ;;  %v3150_v42 = vadd.f32 %v7084_v37, %v7080_v46 }
 0x854   : > { %5821 = vrcp.f32 %v3885_v24  ;;  %v3873_v8 = vmul.f32 1.442695, %v3859_v33  ;;  %v3153_v43 = vadd.f32 %v7089_v34, %v7080_v46  ;;  %v3827_v5 = vmul.f32 1.442695, %v3812_v7 }
 0x855   : > { %v3886_v60 = vadd.f32 %v7262_v9, %v3878_v52  ;;  %5823 = vpow2.f32 %v3847_v45  ;;  %v3851_v51 = vmul.f32 1.442695, %v3836_v50  ;;  %v3145_v37 = vadd.f32 %v7080_v46, %v7091_v31 }
 0x856   : > { %5825 = vpow2.f32 %v3871_v56  ;;  %v3308_v34 = vadd.f32 %v7125_v10, %v7080_v46  ;;  %v3311_v11 = vadd.f32 %v7133_v6, %v7080_v46  ;;  %v3875_v41 = vmul.f32 1.442695, %v3860_v62 }
 0x857   : > { %5827 = vrcp.f32 %v3886_v60 }
 0x858   : > { %v5810_v16 = vpop.eup %5809  ;;  %5829 = vpow2.f32 %v3825_v21 }
 0x859   : > { %v7284_v29 = vpop.eup %5811  ;;  %v3911_v25 = vmul.f32 %v5810_v16, %v7212_v14  ;;  %v3927_v63 = vmul.f32 %v5810_v16, %v7216_v49  ;;  %v3951_v36 = vmul.f32 %v5810_v16, %v7222_v59  ;;  %5831 = vpow2.f32 %v3849_v54  ;;  %v7300_v14 = vld [vmem:[%s7520_s4 + $0x6] ss:$0 sm:$0xff] }
 0x85a   : > { %v7289_v23 = vpop.eup %5813  ;;  %5833 = vpow2.f32 %v3873_v8  ;;  %v3639_v33 = vadd.f32 %v7173_v53, %v7300_v14 }
 0x85b   : > { %v5816_v61 = vpop.eup %5815  ;;  %v3919_v49 = vmul.f32 %v3911_v25, %v3150_v42  ;;  %v3935_v59 = vmul.f32 %v3927_v63, %v2992_v32  ;;  %v3881_v27 = vadd.f32 %v7289_v23, %v7284_v29  ;;  %5835 = vpow2.f32 %v3827_v5 }
 0x85c   : > { %v7304_v31 = vpop.eup %5817  ;;  %v3912_v10 = vmul.f32 %v5816_v61, %v7227_v2  ;;  %v3928_v18 = vmul.f32 %v5816_v61, %v7232_v12  ;;  %v3952_v6 = vmul.f32 %v5816_v61, %v7236_v0  ;;  %v3959_v24 = vmul.f32 %v3951_v36, %v3308_v34 }
 0x85d   : > { %v7309_v45 = vpop.eup %5819  ;;  %v3943_v30 = vadd.f32 %v3935_v59, %v3919_v49  ;;  %v3889_v56 = vadd.f32 %v7304_v31, %v3881_v27  ;;  %5837 = vpow2.f32 %v3851_v51 }
 0x85e   : > { %v5822_v52 = vpop.eup %5821  ;;  %v3920_v21 = vmul.f32 %v3912_v10, %v3153_v43  ;;  %v3936_v7 = vmul.f32 %v3928_v18, %v2995_v3  ;;  %5839 = vpow2.f32 %v3875_v41  ;;  %v3960_v62 = vmul.f32 %v3952_v6, %v3311_v11 }
 0x85f   : > { %v7314_v2 = vpop.eup %5823  ;;  %v3967_v12 = vadd.f32 %v3959_v24, %v3943_v30  ;;  %v3909_v0 = vmul.f32 %v5822_v52, %v7241_v35  ;;  %v3925_v50 = vmul.f32 %v5822_v52, %v7246_v19  ;;  %v3949_v32 = vmul.f32 %v5822_v52, %v7249_v58 }
 0x860   : > { %v7319_v60 = vpop.eup %5825  ;;  %v3944_v54 = vadd.f32 %v3936_v7, %v3920_v21  ;;  %5841 = vrcp.f32 %v3889_v56  ;;  %v3882_v53 = vadd.f32 %v7314_v2, %v7309_v45  ;;  %v3300_v3 = vadd.f32 %v7080_v46, %v7129_v47 }
 0x861   : > { %v5828_v42 = vpop.eup %5827  ;;  %v7325_v8 = vadd.f32 %v3967_v12, %v3639_v33  ;;  %v3917_v35 = vmul.f32 %v3909_v0, %v7087_v55  ;;  %v3933_v16 = vmul.f32 %v3925_v50, %v2984_v15  ;;  %v3640_v58 = vadd.f32 %v7177_v44, %v7300_v14 }
 0x862   : > { %v7328_v19 = vpop.eup %5829  ;;  %v3968_v43 = vadd.f32 %v3960_v62, %v3944_v54  ;;  %v3910_v5 = vmul.f32 %v5828_v42, %v7256_v57  ;;  %v3926_v51 = vmul.f32 %v5828_v42, %v7259_v4  ;;  %v3957_v63 = vmul.f32 %v3949_v32, %v3300_v3 }
 0x863   : > { %v5832_v25 = vpop.eup %5831  ;;  %v3950_v36 = vmul.f32 %v5828_v42, %v7262_v9  ;;  %v3890_v47 = vadd.f32 %v7319_v60, %v3882_v53  ;;  %v3941_v34 = vadd.f32 %v3933_v16, %v3917_v35  ;;  %v3303_v55 = vadd.f32 %v7080_v46, %v7137_v22  ;;  %v7616_v35 = vld [vmem:[#allocation24_spill] sm:$0xff]  ;;  %v7617_v16 = vld [vmem:[#allocation14_spill] sm:$0xff] }
 0x864   : > { %v7338_v15 = vadd.f32 %v3968_v43, %v3640_v58  ;;  %v3883_v11 = vadd.f32 %v5832_v25, %v7328_v19  ;;  %v3918_v44 = vmul.f32 %v3910_v5, %v3145_v37  ;;  %v5834_v41 = vpop.eup %5833  ;;  %v3637_v57 = vadd.f32 %v7300_v14, %v7175_v1 }
 0x865   : > { %5843 = vrcp.f32 %v3890_v47  ;;  %v3934_v4 = vmul.f32 %v3926_v51, %v7278_v39  ;;  %v3965_v61 = vadd.f32 %v3957_v63, %v3941_v34  ;;  %v7344_v9 = vpop.eup %5835  ;;  %v3958_v27 = vmul.f32 %v3950_v36, %v3303_v55  ;;  %v7618_v51 = vld [vmem:[#allocation8_spill] sm:$0xff] }
 0x866   : > { %v3891_v49 = vadd.f32 %v5834_v41, %v3883_v11  ;;  %v3638_v1 = vadd.f32 %v7300_v14, %v7179_v26  ;;  %v3000_v30 = vadd.f32 %v7080_v46, %v7046_v20  ;;  %v3158_v24 = vadd.f32 %v7080_v46, %v7103_v48  ;;  %v7619_v11 = vld [vmem:[#allocation26_spill] sm:$0xff] }
 0x867   : > { %v7346_v59 = vpop.eup %5837  ;;  %v3942_v22 = vadd.f32 %v3934_v4, %v3918_v44  ;;  %v7348_v10 = vadd.f32 %v3965_v61, %v3637_v57  ;;  %v3316_v26 = vadd.f32 %v7080_v46, %v7152_v13  ;;  %v3161_v13 = vadd.f32 %v7080_v46, %v7111_v28  ;;  %v7620_v57 = vld [vmem:[#allocation10_spill] sm:$0xff] }
 0x868   : > { %v5840_v18 = vpop.eup %5839  ;;  %5845 = vrcp.f32 %v3891_v49  ;;  %v3884_v37 = vadd.f32 %v7346_v59, %v7344_v9  ;;  %v3984_v62 = vsel %vm395_vm0, %v7325_v8, 0.0  ;;  %v3641_v58 = vadd.f32 %v7300_v14, %v7617_v16 }
 0x869   : > { %v3966_v6 = vadd.f32 %v3958_v27, %v3942_v22  ;;  %v3981_v20 = vsel %vm395_vm0, %v7348_v10, 0.0  ;;  %v3986_v28 = vsel %vm395_vm0, %v7338_v15, 0.0  ;;  %v3319_v63 = vadd.f32 %v7080_v46, %v7618_v51  ;;  %v7621_v27 = vld [vmem:[#allocation9_spill] sm:$0xff] }
 0x86a   : > { %v5842_v39 = vpop.eup %5841  ;;  %v3892_v56 = vadd.f32 %v5840_v18, %v3884_v37  ;;  %v3011_v44 = vadd.f32 %v7619_v11, %v7080_v46  ;;  %v3324_v4 = vadd.f32 %v7620_v57, %v7080_v46  ;;  %v3169_v22 = vadd.f32 %v7621_v27, %v7080_v46 }
 0x86b   : > { %v3913_v52 = vmul.f32 %v5842_v39, %v7284_v29  ;;  %v3929_v33 = vmul.f32 %v5842_v39, %v7289_v23  ;;  %v3953_v21 = vmul.f32 %v5842_v39, %v7304_v31  ;;  %v7361_v7 = vadd.f32 %v3966_v6, %v3638_v1 }
 0x86c   : > { %5847 = vrcp.f32 %v3892_v56  ;;  %v3008_v29 = vadd.f32 %v7042_v38, %v7080_v46  ;;  %v3003_v23 = vadd.f32 %v7080_v46, %v7050_v17  ;;  %v3166_v17 = vadd.f32 %v7616_v35, %v7080_v46  ;;  %v7623_v46 = vld [vmem:[#allocation13_spill] sm:$0xff] }
 0x86d   : > { %v3921_v12 = vmul.f32 %v3913_v52, %v3158_v24  ;;  %v3937_v0 = vmul.f32 %v3929_v33, %v3000_v30  ;;  %v3982_v48 = vsel %vm395_vm0, %v7361_v7, 0.0  ;;  %v3961_v54 = vmul.f32 %v3953_v21, %v3316_v26  ;;  %v7622_v30 = vld [vmem:[#allocation12_spill] sm:$0xff] }
 0x86e   : > { %v3983_v31 = vadd.f32 %v3982_v48, %v3981_v20 }
 0x86f   : > { %v5844_v50 = vpop.eup %5843  ;;  %v3945_v32 = vadd.f32 %v3937_v0, %v3921_v12  ;;  %v3643_v12 = vadd.f32 %v7623_v46, %v7300_v14 }
 0x870   : > { %v3914_v53 = vmul.f32 %v5844_v50, %v7309_v45  ;;  %v3930_v42 = vmul.f32 %v5844_v50, %v7314_v2  ;;  %v3954_v3 = vmul.f32 %v5844_v50, %v7319_v60  ;;  %v3985_v38 = vadd.f32 %v3984_v62, %v3983_v31  ;;  %v7624_v50 = vld [vmem:[#allocation11_spill] sm:$0xff] }
 0x871   : > { %v3969_v43 = vadd.f32 %v3961_v54, %v3945_v32  ;;  %v7625_v54 = vld [vmem:[#allocation15_spill] sm:$0xff] }
 0x872   : > { %v5846_v5 = vpop.eup %5845  ;;  %v3922_v45 = vmul.f32 %v3914_v53, %v3161_v13  ;;  %v3938_v36 = vmul.f32 %v3930_v42, %v3003_v23  ;;  %v3987_v2 = vadd.f32 %v3986_v28, %v3985_v38  ;;  %v3962_v49 = vmul.f32 %v3954_v3, %v3319_v63 }
 0x873   : > { %v3977_v47 = vadd.f32 %v3969_v43, %v3641_v58  ;;  %v3915_v60 = vmul.f32 %v5846_v5, %v7328_v19  ;;  %v3931_v34 = vmul.f32 %v5846_v5, %v5832_v25  ;;  %v3955_v55 = vmul.f32 %v5846_v5, %v5834_v41 }
 0x874   : > { %v3946_v61 = vadd.f32 %v3938_v36, %v3922_v45  ;;  %v3642_v19 = vadd.f32 %v7300_v14, %v7622_v30 }
 0x875   : > { %v3988_v37 = vsel %vm395_vm0, %v3977_v47, 0.0  ;;  %v3923_v1 = vmul.f32 %v3915_v60, %v3166_v17  ;;  %v3939_v6 = vmul.f32 %v3931_v34, %v3008_v29  ;;  %v3963_v41 = vmul.f32 %v3955_v55, %v3324_v4 }
 0x876   : > { %v5848_v39 = vpop.eup %5847  ;;  %v3970_v25 = vadd.f32 %v3962_v49, %v3946_v61  ;;  %v3989_v24 = vadd.f32 %v3988_v37, %v3987_v2 }
 0x877   : > { %v3947_v56 = vadd.f32 %v3939_v6, %v3923_v1  ;;  %v3916_v52 = vmul.f32 %v5848_v39, %v7344_v9  ;;  %v3932_v33 = vmul.f32 %v5848_v39, %v7346_v59  ;;  %v3956_v21 = vmul.f32 %v5848_v39, %v5840_v18 }
 0x878   : > { %v3978_v26 = vadd.f32 %v3970_v25, %v3642_v19  ;;  %v3644_v9 = vadd.f32 %v7625_v54, %v7300_v14 }
 0x879   : > { %v3971_v0 = vadd.f32 %v3963_v41, %v3947_v56  ;;  %v3924_v20 = vmul.f32 %v3916_v52, %v3169_v22  ;;  %v3940_v48 = vmul.f32 %v3932_v33, %v3011_v44  ;;  %v3964_v13 = vmul.f32 %v3956_v21, %v7624_v50 }
 0x87a   : > { %v3990_v29 = vsel %vm395_vm0, %v3978_v26, 0.0 }
 0x87b   : > { %v3979_v23 = vadd.f32 %v3971_v0, %v3643_v12  ;;  %v3948_v31 = vadd.f32 %v3940_v48, %v3924_v20  ;;  %v3991_v32 = vadd.f32 %v3990_v29, %v3989_v24 }
 0x87d   : > { %v3992_v59 = vsel %vm395_vm0, %v3979_v23, 0.0  ;;  %v3972_v18 = vadd.f32 %v3964_v13, %v3948_v31 }
 0x87e   : > { %v3993_v62 = vadd.f32 %v3992_v59, %v3991_v32 }
 0x87f   : > { %v3980_v53 = vadd.f32 %v3972_v18, %v3644_v9 }
 0x881   : > { %v3994_v42 = vsel %vm395_vm0, %v3980_v53, 0.0 }
 0x882   : > { %v3995_v3 = vadd.f32 %v3994_v42, %v3993_v62  ;;  %v5712_v62 = vld [vmem:[#allocation2 + $0x208] sm:$0xff]   ;;  %v5714_v42 = vld [vmem:[#allocation2 + $0x218] sm:$0xff]  }
 0x884   : > { %v3996_v38 = vrot.slane %v3995_v3, 4 }
 0x886   : > { %v3997_v35 = vadd.f32 %v3996_v38, %v3995_v3  ;;  %v5715_v3 = vld [vmem:[%s7521_s5] sm:$0xff]   ;;  %v4786_v38 = vld [vmem:[%s7520_s4 + $0xa] ss:$0 sm:$0xff] }
 0x888   : > { %v3998_v17 = vrot.slane %v3997_v35, 2 }
 0x88a   : > { %v3999_v16 = vadd.f32 %v3998_v17, %v3997_v35 }
 0x88c   : > { %v4000_v58 = vrot.slane %v3999_v16, 1 }
 0x88e   : > { %v4001_v43 = vadd.f32 %v4000_v58, %v3999_v16 }
 0x890   : > { %v4002_v28 = vmul.f32 0.015625, %v4001_v43 }
 0x892   : > { %v4003_v5 = vsub.f32 %v7348_v10, %v4002_v28  ;;  %v4004_v51 = vsub.f32 %v7361_v7, %v4002_v28  ;;  %v4005_v14 = vsub.f32 %v7325_v8, %v4002_v28  ;;  %v4006_v63 = vsub.f32 %v7338_v15, %v4002_v28 }
 0x893   : > { %v4007_v45 = vsub.f32 %v3977_v47, %v4002_v28  ;;  %v4008_v36 = vsub.f32 %v3978_v26, %v4002_v28  ;;  %v4009_v2 = vsub.f32 %v3979_v23, %v4002_v28  ;;  %v4010_v60 = vsub.f32 %v3980_v53, %v4002_v28  ;;  %v5713_v53 = vld [vmem:[#allocation2 + $0x210] sm:$0xff]  }
 0x894   : > { %v4011_v34 = vmul.f32 %v4003_v5, %v4003_v5  ;;  %v4012_v55 = vmul.f32 %v4004_v51, %v4004_v51  ;;  %v4013_v11 = vmul.f32 %v4005_v14, %v4005_v14  ;;  %v4014_v44 = vmul.f32 %v4006_v63, %v4006_v63 }
 0x895   : > { %v4015_v10 = vmul.f32 %v4007_v45, %v4007_v45  ;;  %v4016_v8 = vmul.f32 %v4008_v36, %v4008_v36  ;;  %v4017_v27 = vmul.f32 %v4009_v2, %v4009_v2  ;;  %v4018_v1 = vmul.f32 %v4010_v60, %v4010_v60 }
 0x896   : > { %v4019_v57 = vsel %vm395_vm0, %v4011_v34, 0.0  ;;  %v4020_v4 = vsel %vm395_vm0, %v4012_v55, 0.0  ;;  %v4022_v7 = vsel %vm395_vm0, %v4013_v11, 0.0  ;;  %v4024_v15 = vsel %vm395_vm0, %v4014_v44, 0.0  ;;  %v5716_v11 = vld [vmem:[%s7521_s5 + $0x8] sm:$0xff]  }
 0x897   : > { %v4021_v61 = vadd.f32 %v4020_v4, %v4019_v57  ;;  %v4026_v22 = vsel %vm395_vm0, %v4015_v10, 0.0  ;;  %v4028_v6 = vsel %vm395_vm0, %v4016_v8, 0.0  ;;  %v4030_v30 = vsel %vm395_vm0, %v4017_v27, 0.0 }
 0x898   : > { %v4032_v25 = vsel %vm395_vm0, %v4018_v1, 0.0  ;;  %v4795_v1 = vld [vmem:[%s7520_s4 + $0xb] ss:$0 sm:$0xff] }
 0x899   : > { %v4023_v49 = vadd.f32 %v4022_v7, %v4021_v61 }
 0x89b   : > { %v4025_v47 = vadd.f32 %v4024_v15, %v4023_v49 }
 0x89d   : > { %v4027_v37 = vadd.f32 %v4026_v22, %v4025_v47  ;;  %v5717_v22 = vld [vmem:[%s7521_s5 + $0x10] sm:$0xff]  }
 0x89f   : > { %v4029_v39 = vadd.f32 %v4028_v6, %v4027_v37  ;;  %v5718_v37 = vld [vmem:[%s7521_s5 + $0x18] sm:$0xff]  }
 0x8a1   : > { %v4031_v19 = vadd.f32 %v4030_v30, %v4029_v39 }
 0x8a3   : > { %v4033_v41 = vadd.f32 %v4032_v25, %v4031_v19 }
 0x8a5   : > { %v4034_v24 = vrot.slane %v4033_v41, 4 }
 0x8a7   : > { %v4035_v56 = vadd.f32 %v4034_v24, %v4033_v41 }
 0x8a9   : > { %v4036_v52 = vrot.slane %v4035_v56, 2 }
 0x8ab   : > { %v4037_v33 = vadd.f32 %v4036_v52, %v4035_v56  ;;  %v7626_v52 = vld [vmem:[#allocation16_spill] sm:$0xff] }
 0x8ad   : > { %v4038_v21 = vrot.slane %v4037_v33, 1 }
 0x8af   : > { %v4039_v26 = vadd.f32 %v4038_v21, %v4037_v33  ;;  %v7627_v21 = vld [vmem:[#allocation27_spill] sm:$0xff] }
 0x8b1   : > { %v4040_v46 = vmul.f32 0.015625, %v4039_v26 }
 0x8b3   : > { %v4041_v12 = vadd.f32 1e-05, %v4040_v46  ;;  %v7628_v46 = vld [vmem:[#allocation20_spill] sm:$0xff] }
 0x8b5   : > { %5849 = vrsqrt.f32 %v4041_v12 }
 0x8bf   : > { %v5850_v0 = vpop.eup %5849 }
 0x8c0   : > { %v4043_v20 = vmul.f32 %v5850_v0, %v4003_v5  ;;  %v4044_v48 = vmul.f32 %v5850_v0, %v4004_v51  ;;  %v4045_v29 = vmul.f32 %v5850_v0, %v4005_v14  ;;  %v4046_v23 = vmul.f32 %v5850_v0, %v4006_v63 }
 0x8c1   : > { %v4047_v31 = vmul.f32 %v5850_v0, %v4007_v45  ;;  %v4048_v50 = vmul.f32 %v5850_v0, %v4008_v36  ;;  %v4049_v13 = vmul.f32 %v5850_v0, %v4009_v2  ;;  %v4050_v32 = vmul.f32 %v5850_v0, %v4010_v60  ;;  %v7629_v0 = vld [vmem:[#allocation22_spill] sm:$0xff] }
 0x8c2   : > { %v4051_v54 = vpack.c.bf16 %v4044_v48, %v4043_v20  ;;  %v4052_v9 = vpack.c.bf16 %v4046_v23, %v4045_v29 }
 0x8c3   : > { %v4053_v59 = vpack.c.bf16 %v4048_v50, %v4047_v31  ;;  %v4054_v18 = vpack.c.bf16 %v4050_v32, %v4049_v13 }
 0x8c4   : > { %5499 = vmatprep.mubr.msk.bf16.mxu1 %vm395_vm0, %v4051_v54 }
 0x8c5   : > { %5500 = vmatmul.mubr.msk.bf16.vlgmr.msra.gmra.mrb[96].mxu1 %vm395_vm0, %v4052_v9 }
 0x8c6   : > { %5503 = vmatprep.mubr.msk.bf16.mxu1 %vm395_vm0, %v4053_v59  ;;  %5508 = vmatpush3.bf16.msra.mxu1 %v7244_v40 }
 0x8c7   : > { %5509 = vmatprep.subr.bf16.mxu1 %v5712_v62 }
 0x8ca   : > { %5510 = vmatpush3.bf16.msra.mxu1 %v5712_v62 }
 0x8cb   : > { %5511 = vmatprep.subr.bf16.mxu1 %v5713_v53 }
 0x8cd   : > { %5504 = vmatmul.mubr.msk.bf16.gmra.mrb[100].mxu1 %vm395_vm0, %v4054_v18  ;;  %v7630_v18 = vld [vmem:[#allocation21_spill] sm:$0xff] }
 0x8ce   : > { %5512 = vmatpush3.bf16.msra.mxu1 %v5713_v53  ;;  %v7631_v53 = vld [vmem:[#allocation25_spill] sm:$0xff] }
 0x8cf   : > { %5513 = vmatprep.subr.bf16.mxu1 %v5714_v42 }
 0x8d2   : > { %5514 = vmatpush3.bf16.msra.mxu1 %v5714_v42 }
 0x8d3   : > { %5523 = vmatprep.subr.bf16.mxu1 %v5715_v3 }
 0x998   : > { %v5501_v40 = vpop.f32.mrb[96].mxu1 }
 0x999   : > { %v4148_v35 = vadd.f32 %v5501_v40, %v4786_v38  ;;  %v4139_v17 = vpop.f32.mrb[97].mxu1  ;;  %v7633_v40 = vld [vmem:[#allocation23_spill] sm:$0xff] }
 0x99a   : > { %v4140_v16 = vadd.f32 %v4786_v38, %v4139_v17  ;;  %v5502_v58 = vpop.f32.mrb[98].mxu1 }
 0x99b   : > { %v4151_v43 = vadd.f32 %v5502_v58, %v4786_v38  ;;  %v4142_v28 = vpop.f32.mrb[99].mxu1  ;;  %v4172_v51 = vmax.f32 %v4148_v35, 0.0  ;;  %v4804_v58 = vld [vmem:[%s7522_s6] ss:$0 sm:$0xff] }
 0x99c   : > { %v4143_v5 = vadd.f32 %v4786_v38, %v4142_v28  ;;  %v4170_v63 = vmax.f32 %v4140_v16, 0.0 }
 0x99d   : > { %v4173_v14 = vmax.f32 %v4151_v43, 0.0 }
 0x99e   : > { %v4171_v45 = vmax.f32 %v4143_v5, 0.0 }
 0x99f   : > { %v4179_v36 = vpack.c.bf16 %v4173_v14, %v4172_v51 }
 0x9a0   : > { %v4178_v2 = vpack.c.bf16 %v4171_v45, %v4170_v63  ;;  %v5505_v60 = vpop.f32.mrb[100].mxu1 }
 0x9a1   : > { %v4164_v34 = vadd.f32 %v5505_v60, %v4786_v38  ;;  %v4155_v55 = vpop.f32.mrb[101].mxu1 }
 0x9a2   : > { %v4156_v44 = vadd.f32 %v4786_v38, %v4155_v55  ;;  %v5506_v57 = vpop.f32.mrb[102].mxu1  ;;  %5515 = vmatprep.mubr.msk.bf16.mxu1 %vm395_vm0, %v4178_v2 }
 0x9a3   : > { %v4167_v4 = vadd.f32 %v5506_v57, %v4786_v38  ;;  %v4158_v61 = vpop.f32.mrb[103].mxu1  ;;  %5516 = vmatmul.mubr.msk.bf16.vlgmr.msra.gmra.mrb[104].mxu1 %vm395_vm0, %v4179_v36  ;;  %v4176_v7 = vmax.f32 %v4164_v34, 0.0 }
 0x9a4   : > { %v4159_v10 = vadd.f32 %v4786_v38, %v4158_v61  ;;  %5524 = vmatpush3.bf16.msra.mxu1 %v5715_v3  ;;  %v4174_v8 = vmax.f32 %v4156_v44, 0.0  ;;  %v7632_v3 = vld [vmem:[#allocation18_spill] sm:$0xff] }
 0x9a5   : > { %v4177_v49 = vmax.f32 %v4167_v4, 0.0  ;;  %5525 = vmatprep.subr.bf16.mxu1 %v5716_v11 }
 0x9a6   : > { %v4175_v15 = vmax.f32 %v4159_v10, 0.0 }
 0x9a7   : > { %v4181_v47 = vpack.c.bf16 %v4177_v49, %v4176_v7 }
 0x9a8   : > { %v4180_v27 = vpack.c.bf16 %v4175_v15, %v4174_v8  ;;  %5526 = vmatpush3.bf16.msra.mxu1 %v5716_v11 }
 0x9a9   : > { %5527 = vmatprep.subr.bf16.mxu1 %v5717_v22 }
 0x9aa   : > { %5519 = vmatprep.mubr.msk.bf16.mxu1 %vm395_vm0, %v4180_v27 }
 0x9ab   : > { %5520 = vmatmul.mubr.msk.bf16.gmra.mrb[108].mxu1 %vm395_vm0, %v4181_v47 }
 0x9ac   : > { %5528 = vmatpush3.bf16.msra.mxu1 %v5717_v22 }
 0x9ad   : > { %5529 = vmatprep.subr.bf16.mxu1 %v5718_v37 }
 0x9b0   : > { %5530 = vmatpush3.bf16.msra.mxu1 %v5718_v37 }
 0xa76   : > { %v5517_v6 = vpop.f32.mrb[104].mxu1 }
 0xa77   : > { %v4275_v39 = vadd.f32 %v5517_v6, %v4795_v1  ;;  %v4266_v30 = vpop.f32.mrb[105].mxu1 }
 0xa78   : > { %v4267_v19 = vadd.f32 %v4795_v1, %v4266_v30  ;;  %v5518_v25 = vpop.f32.mrb[106].mxu1 }
 0xa79   : > { %v4278_v41 = vadd.f32 %v5518_v25, %v4795_v1  ;;  %v4269_v24 = vpop.f32.mrb[107].mxu1  ;;  %v4299_v33 = vadd.f32 %v4275_v39, %v7626_v52 }
 0xa7a   : > { %v4270_v56 = vadd.f32 %v4795_v1, %v4269_v24  ;;  %v4297_v12 = vadd.f32 %v4267_v19, %v7628_v46 }
 0xa7b   : > { %v4300_v26 = vadd.f32 %v4278_v41, %v7627_v21 }
 0xa7c   : > { %v4298_v20 = vadd.f32 %v4270_v56, %v7629_v0 }
 0xa7d   : > { %v4306_v48 = vpack.c.bf16 %v4300_v26, %v4299_v33 }
 0xa7e   : > { %v4305_v29 = vpack.c.bf16 %v4298_v20, %v4297_v12  ;;  %v5521_v23 = vpop.f32.mrb[108].mxu1 }
 0xa7f   : > { %v4291_v31 = vadd.f32 %v5521_v23, %v4795_v1  ;;  %v4282_v50 = vpop.f32.mrb[109].mxu1 }
 0xa80   : > { %v4283_v13 = vadd.f32 %v4795_v1, %v4282_v50  ;;  %v5522_v32 = vpop.f32.mrb[110].mxu1  ;;  %5531 = vmatprep.mubr.msk.bf16.mxu1 %vm395_vm0, %v4305_v29 }
 0xa81   : > { %v4294_v54 = vadd.f32 %v5522_v32, %v4795_v1  ;;  %v4285_v9 = vpop.f32.mrb[111].mxu1  ;;  %5532 = vmatmul.mubr.msk.bf16.vlgmr.msra.gmra.mrb[112].mxu1 %vm395_vm0, %v4306_v48  ;;  %v4303_v62 = vadd.f32 %v4291_v31, %v7630_v18 }
 0xa82   : > { %v4286_v59 = vadd.f32 %v4795_v1, %v4285_v9  ;;  %v4301_v38 = vadd.f32 %v4283_v13, %v7632_v3 }
 0xa83   : > { %v4304_v42 = vadd.f32 %v4294_v54, %v7631_v53 }
 0xa84   : > { %v4302_v35 = vadd.f32 %v4286_v59, %v7633_v40 }
 0xa85   : > { %v4308_v17 = vpack.c.bf16 %v4304_v42, %v4303_v62 }
 0xa86   : > { %v4307_v16 = vpack.c.bf16 %v4302_v35, %v4301_v38 }
 0xa88   : > { %5535 = vmatprep.mubr.msk.bf16.mxu1 %vm395_vm0, %v4307_v16 }
 0xa89   : > { %5536 = vmatmul.mubr.msk.bf16.gmra.mrb[116].mxu1 %vm395_vm0, %v4308_v17 }
 0xb54   : > { %v5533_v43 = vpop.f32.mrb[112].mxu1 }
 0xb55   : > { %v4403_v28 = vadd.f32 %v5533_v43, %v4804_v58  ;;  %v4394_v5 = vpop.f32.mrb[113].mxu1 }
 0xb56   : > { %v4395_v51 = vadd.f32 %v4804_v58, %v4394_v5  ;;  %v5534_v14 = vpop.f32.mrb[114].mxu1 }
 0xb57   : > { %4427 = vst [vmem:[%s303_s22 + $0x10] sm:$0xff] %v4403_v28  ;;  %v4406_v63 = vadd.f32 %v5534_v14, %v4804_v58  ;;  %v4397_v45 = vpop.f32.mrb[115].mxu1 }
 0xb58   : > { %4425 = vst [vmem:[%s303_s22] sm:$0xff] %v4395_v51  ;;  %v4398_v36 = vadd.f32 %v4804_v58, %v4397_v45 }
 0xb59   : > { %4428 = vst [vmem:[%s303_s22 + $0x18] sm:$0xff] %v4406_v63 }
 0xb5a   : > { %4426 = vst [vmem:[%s303_s22 + $0x8] sm:$0xff] %v4398_v36 }
 0xb5c   : > { %v5537_v2 = vpop.f32.mrb[116].mxu1 }
 0xb5d   : > { %v4419_v60 = vadd.f32 %v5537_v2, %v4804_v58  ;;  %v4410_v34 = vpop.f32.mrb[117].mxu1 }
 0xb5e   : > { %v4411_v55 = vadd.f32 %v4804_v58, %v4410_v34  ;;  %v5538_v11 = vpop.f32.mrb[118].mxu1 }
 0xb5f   : > { %4431 = vst [vmem:[%s303_s22 + $0x30] sm:$0xff] %v4419_v60  ;;  %v4422_v44 = vadd.f32 %v5538_v11, %v4804_v58  ;;  %v4413_v57 = vpop.f32.mrb[119].mxu1 }
 0xb60   : > { %4429 = vst [vmem:[%s303_s22 + $0x20] sm:$0xff] %v4411_v55  ;;  %v4414_v4 = vadd.f32 %v4804_v58, %v4413_v57 }
 0xb61   : > { %4432 = vst [vmem:[%s303_s22 + $0x38] sm:$0xff] %v4422_v44 }
 0xb62   : > { %4430 = vst [vmem:[%s303_s22 + $0x28] sm:$0xff] %v4414_v4 }
 0xb63   : > { %5892 = shalt.err (!%p5889_p7)
}
 0xb64   : > { %s5893_s15 = scalar_lea.hbm %s7471_s14, 1024  ;;  %s5897_s21 = scalar_lea.hbm %s7523_s7, 2048 }
 0xb65   : > { %p5894_p8 = scmp.ne.s32.totalorder %s7471_s14, %s5893_s15  ;;  %p5898_p1 = scmp.lt.u32.totalorder %s7471_s14, %s7523_s7 }
 0xb66   : > { %p5899_p0 = scmp.lt.u32.totalorder %s5897_s21, %s5893_s15  ;;  %p5901_p6 = scmp.lt.u32.totalorder %s5893_s15, %s7471_s14 }
 0xb67   : > { %p5895_p11 = pnand %p5894_p8, %p7634_p9 }
 0xb68   : > { %p5900_p5 = por %p5899_p0, %p5898_p1 }
 0xb69   : > { %p5896_p13 = pneg %p5895_p11 }
 0xb6a   : > { %p5902_p10 = por %p5901_p6, %p5900_p5 }
 0xb6c   : > { %p5903_p12 = pnand %p5902_p10, %p5896_p13 }
 0xb6e   : > { %5906 = shalt.err (!%p5903_p12)
}
 0xb6f   : > { %s5953_s8 = smov 128   ;;  %s5954_s9 = smov 8  }
 0xb70   : > { %5575 = dma.vmem_to_hbm [thread:$0]  (%p7634_p9), %s7466_s23, 1024, %s7471_s14, %s7475_s28, %s5953_s8, %s5953_s8, %s5954_s9  }
 0xb71 PF: > { %p5587_p2 = scmp.ge.s32.totalorder %s5945_s27, 2  ;;  %s4462_s17 = sand.u32 1, %s5933_s24  }
 0xb72   : > { %p7635_p3 = scmp.ne.s32.totalorder %s7550_s12, 0  ;;  %s4463_s18 = scalar_lea.sflag [#allocation4], %s4462_s17 }
 0xb74   : > { %p5582_p4 = pnand %p5587_p2, %p7635_p3 }
 0xb76   : > { %5928 = dma.done.wait (!%p5582_p4), %s4463_s18, 1024  }
 0xb77   : > { %5930 = vsyncadd (!%p5582_p4), %s4463_s18, 4294966272  ;;  %p18_p7 = scmp.ge.s32.totalorder %s6020_s30, 4   ;;  %s7636_s24 = smov %s5937_s25 }
 0xb78   : > { %s7637_s25 = smov %s5941_s26  ;;  %s7638_s26 = smov %s6031_s10 }
 0xb79   : > { %s7639_s27 = smov %s6020_s30  ;;  %20 = sbr.rel (!%p18_p7) target bundleno = 4 (0x4), region = 110 }
 0xb80   :  { %4468 = vsyncpa [#allocation3], 1 }
 0xb81   :  { %4470 = vsyncpa [#allocation3 + $0x1], 1 }
 0xb82   :  { %4471 = vsyncpa [#allocation4], 1 }
 0xb83   :  { %4473 = vsyncpa [#allocation4 + $0x1], 1 }

</bundles_post_ra>
